<compile_context>
chip_gen: v5e
topology: v5e:2x2
jax: 0.10.0
libtpu: 0.0.40
codegen_flags: <defaults>
</compile_context>

<pallas_src>
import jax
import jax.numpy as jnp
from jax.experimental import pallas as pl
from jax.experimental.pallas import tpu as pltpu

Z_DIM = 20
IN_DIM = 784
HID_DIM = 400

Z_P = 128     # per-head slot width inside the fused mu|logvar head / z scratch
HID_P = 512   # 400 -> 512 (lane aligned)


def _round_up(n, m):
    return (n + m - 1) // m * m


def _pad2(a, rows, cols):
    r, c = a.shape
    return jnp.pad(a, ((0, rows - r), (0, cols - c)))


def _vae_kernel(x_ref, eps_ref,
                w1_ref, b1_ref, wenc_ref, benc_ref,
                w3_ref, b3_ref, w4_ref, b4_ref,
                recon_ref, mu_ref, logvar_ref,
                z_ref):
    # ---- encode: h1 = relu(x @ W1 + b1) ----
    x = x_ref[...].astype(jnp.bfloat16)                       # (TB, 784), cast in-kernel
    h1 = jnp.dot(x, w1_ref[...], preferred_element_type=jnp.float32) + b1_ref[...]
    h1 = jnp.maximum(h1, 0.0).astype(jnp.bfloat16)            # (TB, HID_P)

    # ---- fused mu|logvar head: one (HID_P, 2*Z_P) matmul, two aligned 128-wide slots ----
    enc = jnp.dot(h1, wenc_ref[...], preferred_element_type=jnp.float32) + benc_ref[...]
    mu = enc[:, :Z_DIM]                                       # (TB, 20) f32
    logvar = enc[:, Z_P:Z_P + Z_DIM]                          # (TB, 20) f32

    # ---- reparameterize (f32 elementwise) ----
    std = jnp.exp(0.5 * logvar)
    z = mu + eps_ref[...] * std                               # (TB, 20)

    # Stage z in a lane-aligned scratch so the decode matmul uses an aligned K=128.
    # Padded columns stay zero (and W3's padded rows are zero anyway).
    z_ref[...] = jnp.zeros_like(z_ref)
    z_ref[:, :Z_DIM] = z

    # ---- decode ----
    h3 = jnp.dot(z_ref[...].astype(jnp.bfloat16), w3_ref[...],
                 preferred_element_type=jnp.float32) + b3_ref[...]
    h3 = jnp.maximum(h3, 0.0).astype(jnp.bfloat16)
    logits = jnp.dot(h3, w4_ref[...], preferred_element_type=jnp.float32) + b4_ref[...]
    # sigmoid: EUP exp + near-free approx reciprocal; clamp BOTH ends of the approx error.
    recon = jnp.clip(pl.reciprocal(1.0 + jnp.exp(-logits), approx=True), 0.0, 1.0)

    recon_ref[...] = recon.astype(jnp.bfloat16)               # bf16 output stream
    mu_ref[...] = mu
    logvar_ref[...] = logvar


def prepare_params(params):
    """One-time packing: zero-pad hidden/z dims to lane-aligned widths, cast weights to
    bf16, fuse the mu/logvar heads into one weight/bias. Biases stay f32."""
    w1 = _pad2(params["w1"], IN_DIM, HID_P).astype(jnp.bfloat16)       # (784, 512)
    b1 = _pad2(params["b1"], 1, HID_P).astype(jnp.float32)             # (1, 512)
    wenc = jnp.concatenate(
        [_pad2(params["w21"], HID_P, Z_P), _pad2(params["w22"], HID_P, Z_P)],
        axis=1).astype(jnp.bfloat16)                                   # (512, 256)
    benc = jnp.concatenate(
        [_pad2(params["b21"], 1, Z_P), _pad2(params["b22"], 1, Z_P)],
        axis=1).astype(jnp.float32)                                    # (1, 256)
    w3 = _pad2(params["w3"], Z_P, HID_P).astype(jnp.bfloat16)          # (128, 512)
    b3 = _pad2(params["b3"], 1, HID_P).astype(jnp.float32)             # (1, 512)
    w4 = _pad2(params["w4"], HID_P, IN_DIM).astype(jnp.bfloat16)       # (512, 784)
    b4 = params["b4"].astype(jnp.float32)                              # (1, 784)
    return dict(w1=w1, b1=b1, wenc=wenc, benc=benc, w3=w3, b3=b3, w4=w4, b4=b4)


def vae_forward(x, eps, pp):
    """x: (B, 1, 28, 28) or (B, 784) f32. eps: (B, 20) f32. pp: prepare_params() output.
    Returns (recon[B,784] bf16, mu[B,20] f32, logvar[B,20] f32)."""
    x2 = x.reshape(-1, IN_DIM).astype(jnp.float32)    # matches x.view(-1, 784)
    eps2 = eps.astype(jnp.float32)
    B = x2.shape[0]

    # Batch tile: large TB to amortize per-step pipeline overhead, but keep >= 2 grid
    # steps once B >= 64 so the "parallel" batch axis can shard across v7x's 2 TCs.
    TB = min(512, _round_up(B, 8))
    if B >= 64 and _round_up(B, TB) // TB < 2:
        TB = _round_up(_round_up(B, 16) // 2, 16)     # multiple of 16 (bf16 sublane tile)
    B_pad = _round_up(B, TB)
    nb = B_pad // TB

    if B_pad != B:   # row-only padding; no column pad/slice round trips anywhere
        x2 = jnp.pad(x2, ((0, B_pad - B), (0, 0)))
        eps2 = jnp.pad(eps2, ((0, B_pad - B), (0, 0)))

    row_spec = lambda feat: pl.BlockSpec((TB, feat), lambda i: (i, 0))
    const_spec = lambda arr: pl.BlockSpec(arr.shape, lambda i: (0, 0))   # VMEM-resident

    in_specs = [
        row_spec(IN_DIM),          # x  (block last dim == full array dim -> legal)
        row_spec(Z_DIM),           # eps
        const_spec(pp["w1"]), const_spec(pp["b1"]),
        const_spec(pp["wenc"]), const_spec(pp["benc"]),
        const_spec(pp["w3"]), const_spec(pp["b3"]),
        const_spec(pp["w4"]), const_spec(pp["b4"]),
    ]
    out_specs = (row_spec(IN_DIM), row_spec(Z_DIM), row_spec(Z_DIM))

    flops_row = 2 * (IN_DIM * HID_P + HID_P * 2 * Z_P + Z_P * HID_P + HID_P * IN_DIM)
    weight_bytes = (2 * (IN_DIM * HID_P + HID_P * 2 * Z_P + Z_P * HID_P + HID_P * IN_DIM)
                    + 4 * (HID_P + 2 * Z_P + HID_P + IN_DIM))
    cost = pl.CostEstimate(
        flops=B_pad * flops_row,
        transcendentals=B_pad * (IN_DIM + Z_DIM),
        bytes_accessed=weight_bytes
        + B_pad * (IN_DIM * 4 + Z_DIM * 4)            # x + eps reads
        + B_pad * (IN_DIM * 2 + 2 * Z_DIM * 4),       # recon (bf16) + mu/logvar writes
    )

    recon, mu, logvar = pl.pallas_call(
        _vae_kernel,
        out_shape=(
            jax.ShapeDtypeStruct((B_pad, IN_DIM), jnp.bfloat16),
            jax.ShapeDtypeStruct((B_pad, Z_DIM), jnp.float32),
            jax.ShapeDtypeStruct((B_pad, Z_DIM), jnp.float32),
        ),
        grid=(nb,),
        in_specs=in_specs,
        out_specs=out_specs,
        scratch_shapes=[pltpu.VMEM((TB, Z_P), jnp.float32)],   # lane-aligned z staging
        compiler_params=pltpu.CompilerParams(
            dimension_semantics=("parallel",),        # shard batch grid across TCs (v7x)
            vmem_limit_bytes=32 << 20,                # ~16 MiB used at TB=512, v7x-safe
        ),
        cost_estimate=cost,
    )(x2, eps2, pp["w1"], pp["b1"], pp["wenc"], pp["benc"],
      pp["w3"], pp["b3"], pp["w4"], pp["b4"])

    if B_pad != B:
        recon, mu, logvar = recon[:B], mu[:B], logvar[:B]
    return recon, mu, logvar


def init_params(key):
    """Deterministic init. Weights stored as (in, out) — i.e. PyTorch W.T. Biases (1, out)."""
    def linear(k, fan_in, fan_out):
        kw, kb = jax.random.split(k)
        bound = 1.0 / jnp.sqrt(fan_in)
        w = jax.random.uniform(kw, (fan_in, fan_out), jnp.float32, -bound, bound)
        b = jax.random.uniform(kb, (1, fan_out), jnp.float32, -bound, bound)
        return w, b

    k1, k21, k22, k3, k4 = jax.random.split(key, 5)
    w1, b1 = linear(k1, IN_DIM, HID_DIM)
    w21, b21 = linear(k21, HID_DIM, Z_DIM)
    w22, b22 = linear(k22, HID_DIM, Z_DIM)
    w3, b3 = linear(k3, Z_DIM, HID_DIM)
    w4, b4 = linear(k4, HID_DIM, IN_DIM)
    return dict(w1=w1, b1=b1, w21=w21, b21=b21, w22=w22, b22=b22,
                w3=w3, b3=b3, w4=w4, b4=b4)


def vae_reference(x, eps, params):
    """Pure-JAX f32 reference matching the PyTorch module."""
    x = x.reshape(-1, IN_DIM).astype(jnp.float32)
    h1 = jnp.maximum(x @ params["w1"] + params["b1"], 0.0)
    mu = h1 @ params["w21"] + params["b21"]
    logvar = h1 @ params["w22"] + params["b22"]
    z = mu + eps * jnp.exp(0.5 * logvar)
    h3 = jnp.maximum(z @ params["w3"] + params["b3"], 0.0)
    recon = jax.nn.sigmoid(h3 @ params["w4"] + params["b4"])
    return recon, mu, logvar


if __name__ == "__main__":
    key = jax.random.PRNGKey(0)
    kp, kx, ke = jax.random.split(key, 3)

    params = init_params(kp)
    prepped = prepare_params(params)

    B = 8
    x = jax.random.uniform(kx, (B, 1, 28, 28), jnp.float32)   # MNIST-like NCHW input
    eps = jax.random.normal(ke, (B, Z_DIM), jnp.float32)      # torch.randn_like(std) equiv

    fwd = jax.jit(vae_forward)
    recon, mu, logvar = fwd(x, eps, prepped)
    jax.block_until_ready((recon, mu, logvar))

    assert recon.shape == (B, IN_DIM)
    assert mu.shape == (B, Z_DIM)
    assert logvar.shape == (B, Z_DIM)
    recon_f32 = recon.astype(jnp.float32)
    assert bool(jnp.all(jnp.isfinite(recon_f32)))
    assert bool(jnp.all((recon_f32 >= 0.0) & (recon_f32 <= 1.0)))

    # Numerical check vs pure-JAX f32 reference (bf16 matmul / bf16 recon tolerance).
    r_ref, m_ref, lv_ref = vae_reference(x, eps, params)
    assert float(jnp.max(jnp.abs(recon_f32 - r_ref))) < 0.06
    assert float(jnp.max(jnp.abs(mu - m_ref))) < 0.06
    assert float(jnp.max(jnp.abs(logvar - lv_ref))) < 0.06

    print("KERNEL_OK")
</pallas_src>

<mosaic_0001>
module attributes {stable_mosaic.version = 11 : i64} {
  func.func @_vae_kernel(%arg0: i32, %arg1: memref<8x784xf32, #tpu.memory_space<vmem>>, %arg2: memref<8x20xf32, #tpu.memory_space<vmem>>, %arg3: memref<784x512xbf16, #tpu.memory_space<vmem>>, %arg4: memref<1x512xf32, #tpu.memory_space<vmem>>, %arg5: memref<512x256xbf16, #tpu.memory_space<vmem>>, %arg6: memref<1x256xf32, #tpu.memory_space<vmem>>, %arg7: memref<128x512xbf16, #tpu.memory_space<vmem>>, %arg8: memref<1x512xf32, #tpu.memory_space<vmem>>, %arg9: memref<512x784xbf16, #tpu.memory_space<vmem>>, %arg10: memref<1x784xf32, #tpu.memory_space<vmem>>, %arg11: memref<8x784xbf16, #tpu.memory_space<vmem>>, %arg12: memref<8x20xf32, #tpu.memory_space<vmem>>, %arg13: memref<8x20xf32, #tpu.memory_space<vmem>>, %arg14: memref<8x128xf32, #tpu.memory_space<vmem>>) attributes {dimension_semantics = [#tpu.dimension_semantics<parallel>], iteration_bounds = array<i64: 1>, scalar_prefetch = 0 : i64, scratch_operands = 1 : i64, tpu.core_type = #tpu.core_type<tc>, window_params = [{transform_indices = @transform_0, window_bounds = array<i64: 8, 784>}, {transform_indices = @transform_1, window_bounds = array<i64: 8, 20>}, {pipeline_mode = #tpu.pipeline_mode<synchronous>, transform_indices = @transform_2, window_bounds = array<i64: 784, 512>}, {pipeline_mode = #tpu.pipeline_mode<synchronous>, transform_indices = @transform_3, window_bounds = array<i64: 1, 512>}, {pipeline_mode = #tpu.pipeline_mode<synchronous>, transform_indices = @transform_4, window_bounds = array<i64: 512, 256>}, {pipeline_mode = #tpu.pipeline_mode<synchronous>, transform_indices = @transform_5, window_bounds = array<i64: 1, 256>}, {pipeline_mode = #tpu.pipeline_mode<synchronous>, transform_indices = @transform_6, window_bounds = array<i64: 128, 512>}, {pipeline_mode = #tpu.pipeline_mode<synchronous>, transform_indices = @transform_7, window_bounds = array<i64: 1, 512>}, {pipeline_mode = #tpu.pipeline_mode<synchronous>, transform_indices = @transform_8, window_bounds = array<i64: 512, 784>}, {pipeline_mode = #tpu.pipeline_mode<synchronous>, transform_indices = @transform_9, window_bounds = array<i64: 1, 784>}, {transform_indices = @transform_10, window_bounds = array<i64: 8, 784>}, {transform_indices = @transform_11, window_bounds = array<i64: 8, 20>}, {transform_indices = @transform_12, window_bounds = array<i64: 8, 20>}]} {
    %c0 = arith.constant 0 : index
    %c0_0 = arith.constant 0 : index
    %0 = vector.load %arg1[%c0, %c0_0] : memref<8x784xf32, #tpu.memory_space<vmem>>, vector<8x784xf32>
    %1 = arith.truncf %0 : vector<8x784xf32> to vector<8x784xbf16>
    %c0_1 = arith.constant 0 : index
    %c0_2 = arith.constant 0 : index
    %2 = vector.load %arg3[%c0_1, %c0_2] : memref<784x512xbf16, #tpu.memory_space<vmem>>, vector<784x512xbf16>
    %cst = arith.constant dense<0.000000e+00> : vector<8x512xf32>
    %3 = tpu.matmul %1, %2, %cst {dimension_numbers = #tpu.dot_dimension_numbers<[1], [0], [0], [1], [0, 0, 1, 1], [], []>} : vector<8x784xbf16>, vector<784x512xbf16>, vector<8x512xf32> -> vector<8x512xf32>
    %c0_3 = arith.constant 0 : index
    %c0_4 = arith.constant 0 : index
    %4 = vector.load %arg4[%c0_3, %c0_4] : memref<1x512xf32, #tpu.memory_space<vmem>>, vector<1x512xf32>
    %5 = vector.broadcast %4 : vector<1x512xf32> to vector<8x512xf32>
    %6 = arith.addf %3, %5 : vector<8x512xf32>
    %cst_5 = arith.constant 0.000000e+00 : f32
    %7 = vector.broadcast %cst_5 : f32 to vector<8x512xf32>
    %8 = arith.maximumf %6, %7 : vector<8x512xf32>
    %9 = arith.truncf %8 : vector<8x512xf32> to vector<8x512xbf16>
    %c0_6 = arith.constant 0 : index
    %c0_7 = arith.constant 0 : index
    %10 = vector.load %arg5[%c0_6, %c0_7] : memref<512x256xbf16, #tpu.memory_space<vmem>>, vector<512x256xbf16>
    %cst_8 = arith.constant dense<0.000000e+00> : vector<8x256xf32>
    %11 = tpu.matmul %9, %10, %cst_8 {dimension_numbers = #tpu.dot_dimension_numbers<[1], [0], [0], [1], [0, 0, 1, 1], [], []>} : vector<8x512xbf16>, vector<512x256xbf16>, vector<8x256xf32> -> vector<8x256xf32>
    %c0_9 = arith.constant 0 : index
    %c0_10 = arith.constant 0 : index
    %12 = vector.load %arg6[%c0_9, %c0_10] : memref<1x256xf32, #tpu.memory_space<vmem>>, vector<1x256xf32>
    %13 = vector.broadcast %12 : vector<1x256xf32> to vector<8x256xf32>
    %14 = arith.addf %11, %13 : vector<8x256xf32>
    %15 = vector.extract_strided_slice %14 {offsets = [0, 0], sizes = [8, 20], strides = [1, 1]} : vector<8x256xf32> to vector<8x20xf32>
    %16 = vector.extract_strided_slice %14 {offsets = [0, 128], sizes = [8, 20], strides = [1, 1]} : vector<8x256xf32> to vector<8x20xf32>
    %cst_11 = arith.constant 5.000000e-01 : f32
    %17 = vector.broadcast %cst_11 : f32 to vector<8x20xf32>
    %18 = arith.mulf %17, %16 : vector<8x20xf32>
    %19 = math.exp %18 : vector<8x20xf32>
    %c0_12 = arith.constant 0 : index
    %c0_13 = arith.constant 0 : index
    %20 = vector.load %arg2[%c0_12, %c0_13] : memref<8x20xf32, #tpu.memory_space<vmem>>, vector<8x20xf32>
    %21 = arith.mulf %20, %19 : vector<8x20xf32>
    %22 = arith.addf %15, %21 : vector<8x20xf32>
    %cst_14 = arith.constant 0.000000e+00 : f32
    %23 = vector.broadcast %cst_14 : f32 to vector<8x128xf32>
    %c0_15 = arith.constant 0 : index
    %c0_16 = arith.constant 0 : index
    %24 = vector.load %arg14[%c0_15, %c0_16] : memref<8x128xf32, #tpu.memory_space<vmem>>, vector<8x128xf32>
    tpu.vector_store %arg14[%c0_15, %c0_16], %23 {strides = array<i32>} : memref<8x128xf32, #tpu.memory_space<vmem>>, vector<8x128xf32>,
    %c0_17 = arith.constant 0 : index
    %c0_18 = arith.constant 0 : index
    %25 = vector.load %arg14[%c0_17, %c0_18] : memref<8x128xf32, #tpu.memory_space<vmem>>, vector<8x20xf32>
    tpu.vector_store %arg14[%c0_17, %c0_18], %22 {strides = array<i32>} : memref<8x128xf32, #tpu.memory_space<vmem>>, vector<8x20xf32>,
    %c0_19 = arith.constant 0 : index
    %c0_20 = arith.constant 0 : index
    %26 = vector.load %arg14[%c0_19, %c0_20] : memref<8x128xf32, #tpu.memory_space<vmem>>, vector<8x128xf32>
    %27 = arith.truncf %26 : vector<8x128xf32> to vector<8x128xbf16>
    %c0_21 = arith.constant 0 : index
    %c0_22 = arith.constant 0 : index
    %28 = vector.load %arg7[%c0_21, %c0_22] : memref<128x512xbf16, #tpu.memory_space<vmem>>, vector<128x512xbf16>
    %cst_23 = arith.constant dense<0.000000e+00> : vector<8x512xf32>
    %29 = tpu.matmul %27, %28, %cst_23 {dimension_numbers = #tpu.dot_dimension_numbers<[1], [0], [0], [1], [0, 0, 1, 1], [], []>} : vector<8x128xbf16>, vector<128x512xbf16>, vector<8x512xf32> -> vector<8x512xf32>
    %c0_24 = arith.constant 0 : index
    %c0_25 = arith.constant 0 : index
    %30 = vector.load %arg8[%c0_24, %c0_25] : memref<1x512xf32, #tpu.memory_space<vmem>>, vector<1x512xf32>
    %31 = vector.broadcast %30 : vector<1x512xf32> to vector<8x512xf32>
    %32 = arith.addf %29, %31 : vector<8x512xf32>
    %cst_26 = arith.constant 0.000000e+00 : f32
    %33 = vector.broadcast %cst_26 : f32 to vector<8x512xf32>
    %34 = arith.maximumf %32, %33 : vector<8x512xf32>
    %35 = arith.truncf %34 : vector<8x512xf32> to vector<8x512xbf16>
    %c0_27 = arith.constant 0 : index
    %c0_28 = arith.constant 0 : index
    %36 = vector.load %arg9[%c0_27, %c0_28] : memref<512x784xbf16, #tpu.memory_space<vmem>>, vector<512x784xbf16>
    %cst_29 = arith.constant dense<0.000000e+00> : vector<8x784xf32>
    %37 = tpu.matmul %35, %36, %cst_29 {dimension_numbers = #tpu.dot_dimension_numbers<[1], [0], [0], [1], [0, 0, 1, 1], [], []>} : vector<8x512xbf16>, vector<512x784xbf16>, vector<8x784xf32> -> vector<8x784xf32>
    %c0_30 = arith.constant 0 : index
    %c0_31 = arith.constant 0 : index
    %38 = vector.load %arg10[%c0_30, %c0_31] : memref<1x784xf32, #tpu.memory_space<vmem>>, vector<1x784xf32>
    %39 = vector.broadcast %38 : vector<1x784xf32> to vector<8x784xf32>
    %40 = arith.addf %37, %39 : vector<8x784xf32>
    %cst_32 = arith.constant 0.000000e+00 : f32
    %41 = vector.broadcast %cst_32 : f32 to vector<8x784xf32>
    %42 = arith.subf %41, %40 : vector<8x784xf32>
    %43 = math.exp %42 : vector<8x784xf32>
    %cst_33 = arith.constant 1.000000e+00 : f32
    %44 = vector.broadcast %cst_33 : f32 to vector<8x784xf32>
    %45 = arith.addf %44, %43 : vector<8x784xf32>
    %46 = tpu.reciprocal %45 {approx = true} : vector<8x784xf32> -> vector<8x784xf32>
    %cst_34 = arith.constant 0.000000e+00 : f32
    %cst_35 = arith.constant 1.000000e+00 : f32
    %47 = vector.broadcast %cst_34 : f32 to vector<8x784xf32>
    %48 = arith.maximumf %47, %46 : vector<8x784xf32>
    %49 = vector.broadcast %cst_35 : f32 to vector<8x784xf32>
    %50 = arith.minimumf %49, %48 : vector<8x784xf32>
    %51 = arith.truncf %50 : vector<8x784xf32> to vector<8x784xbf16>
    %c0_36 = arith.constant 0 : index
    %c0_37 = arith.constant 0 : index
    %52 = vector.load %arg11[%c0_36, %c0_37] : memref<8x784xbf16, #tpu.memory_space<vmem>>, vector<8x784xbf16>
    tpu.vector_store %arg11[%c0_36, %c0_37], %51 {strides = array<i32>} : memref<8x784xbf16, #tpu.memory_space<vmem>>, vector<8x784xbf16>,
    %c0_38 = arith.constant 0 : index
    %c0_39 = arith.constant 0 : index
    %53 = vector.load %arg12[%c0_38, %c0_39] : memref<8x20xf32, #tpu.memory_space<vmem>>, vector<8x20xf32>
    tpu.vector_store %arg12[%c0_38, %c0_39], %15 {strides = array<i32>} : memref<8x20xf32, #tpu.memory_space<vmem>>, vector<8x20xf32>,
    %c0_40 = arith.constant 0 : index
    %c0_41 = arith.constant 0 : index
    %54 = vector.load %arg13[%c0_40, %c0_41] : memref<8x20xf32, #tpu.memory_space<vmem>>, vector<8x20xf32>
    tpu.vector_store %arg13[%c0_40, %c0_41], %16 {strides = array<i32>} : memref<8x20xf32, #tpu.memory_space<vmem>>, vector<8x20xf32>,
    return
  }
  func.func @transform_0(%arg0: i32) -> (i32, i32) {
    %c0_i32 = arith.constant 0 : i32
    %c0_i32_0 = arith.constant 0 : i32
    return %arg0, %c0_i32 : i32, i32
  }
  func.func @transform_1(%arg0: i32) -> (i32, i32) {
    %c0_i32 = arith.constant 0 : i32
    %c0_i32_0 = arith.constant 0 : i32
    return %arg0, %c0_i32 : i32, i32
  }
  func.func @transform_2(%arg0: i32) -> (i32, i32) {
    %c0_i32 = arith.constant 0 : i32
    %c0_i32_0 = arith.constant 0 : i32
    %c0_i32_1 = arith.constant 0 : i32
    return %c0_i32, %c0_i32_0 : i32, i32
  }
  func.func @transform_3(%arg0: i32) -> (i32, i32) {
    %c0_i32 = arith.constant 0 : i32
    %c0_i32_0 = arith.constant 0 : i32
    %c0_i32_1 = arith.constant 0 : i32
    return %c0_i32, %c0_i32_0 : i32, i32
  }
  func.func @transform_4(%arg0: i32) -> (i32, i32) {
    %c0_i32 = arith.constant 0 : i32
    %c0_i32_0 = arith.constant 0 : i32
    %c0_i32_1 = arith.constant 0 : i32
    return %c0_i32, %c0_i32_0 : i32, i32
  }
  func.func @transform_5(%arg0: i32) -> (i32, i32) {
    %c0_i32 = arith.constant 0 : i32
    %c0_i32_0 = arith.constant 0 : i32
    %c0_i32_1 = arith.constant 0 : i32
    return %c0_i32, %c0_i32_0 : i32, i32
  }
  func.func @transform_6(%arg0: i32) -> (i32, i32) {
    %c0_i32 = arith.constant 0 : i32
    %c0_i32_0 = arith.constant 0 : i32
    %c0_i32_1 = arith.constant 0 : i32
    return %c0_i32, %c0_i32_0 : i32, i32
  }
  func.func @transform_7(%arg0: i32) -> (i32, i32) {
    %c0_i32 = arith.constant 0 : i32
    %c0_i32_0 = arith.constant 0 : i32
    %c0_i32_1 = arith.constant 0 : i32
    return %c0_i32, %c0_i32_0 : i32, i32
  }
  func.func @transform_8(%arg0: i32) -> (i32, i32) {
    %c0_i32 = arith.constant 0 : i32
    %c0_i32_0 = arith.constant 0 : i32
    %c0_i32_1 = arith.constant 0 : i32
    return %c0_i32, %c0_i32_0 : i32, i32
  }
  func.func @transform_9(%arg0: i32) -> (i32, i32) {
    %c0_i32 = arith.constant 0 : i32
    %c0_i32_0 = arith.constant 0 : i32
    %c0_i32_1 = arith.constant 0 : i32
    return %c0_i32, %c0_i32_0 : i32, i32
  }
  func.func @transform_10(%arg0: i32) -> (i32, i32) {
    %c0_i32 = arith.constant 0 : i32
    %c0_i32_0 = arith.constant 0 : i32
    return %arg0, %c0_i32 : i32, i32
  }
  func.func @transform_11(%arg0: i32) -> (i32, i32) {
    %c0_i32 = arith.constant 0 : i32
    %c0_i32_0 = arith.constant 0 : i32
    return %arg0, %c0_i32 : i32, i32
  }
  func.func @transform_12(%arg0: i32) -> (i32, i32) {
    %c0_i32 = arith.constant 0 : i32
    %c0_i32_0 = arith.constant 0 : i32
    return %arg0, %c0_i32 : i32, i32
  }
}

</mosaic_0001>

<bundles_post_ra>
// kernel: vae_forward.1
= control target key start
LH: loop header
LB: loop body
LE: loop exit
PB: predicated region body
PF: predicated region fallthrough
CT: control target
= control target key end

     0   :  { %18 = vsyncpa [#allocation4], 0  ;;  %vm1241_vm0 = vcmask 130048   ;;  %s10330_s0 = inlined_call_operand.vmem [shape: f32[8,784], index: 0, kind: input, shape index: {}]   ;;  %s10331_s1 = inlined_call_operand.vmem [shape: f32[8,20], index: 1, kind: input, shape index: {}]   ;;  %s10332_s2 = inlined_call_operand.vmem [shape: bf16[784,512], index: 2, kind: input, shape index: {}]   ;;  %s10333_s3 = inlined_call_operand.vmem [shape: f32[1,512], index: 3, kind: input, shape index: {}]   ;;  %s10334_s4 = inlined_call_operand.vmem [shape: bf16[512,256], index: 4, kind: input, shape index: {}]   ;;  %s10335_s5 = inlined_call_operand.vmem [shape: f32[1,256], index: 5, kind: input, shape index: {}]   ;;  %s10336_s6 = inlined_call_operand.vmem [shape: bf16[128,512], index: 6, kind: input, shape index: {}]   ;;  %s10337_s7 = inlined_call_operand.vmem [shape: f32[1,512], index: 7, kind: input, shape index: {}]   ;;  %s10338_s8 = inlined_call_operand.vmem [shape: bf16[512,784], index: 8, kind: input, shape index: {}]   ;;  %s10339_s9 = inlined_call_operand.vmem [shape: f32[1,784], index: 9, kind: input, shape index: {}]   ;;  %s10340_s10 = inlined_call_operand.hbm [shape: bf16[8,784], index: 10, kind: output, shape index: {0}]   ;;  %s10341_s11 = inlined_call_operand.hbm [shape: f32[8,20], index: 11, kind: output, shape index: {1}]   ;;  %s10342_s12 = inlined_call_operand.hbm [shape: f32[8,20], index: 12, kind: output, shape index: {2}]  }
   0x1   :  { %v4393_v0 = vld [vmem:[%s10332_s2 + $0xe0] sm:$0xf]  ;;  %v6377_v1 = vld [vmem:[%s10332_s2 + $0xec] sm:$0xf0] }
   0x2   :  { %v4521_v2 = vld [vmem:[%s10332_s2 + $0x1e0] sm:$0xf]  ;;  %v4394_v3 = vor.u32 %v6377_v1, %v4393_v0  ;;  %v6409_v4 = vld [vmem:[%s10332_s2 + $0x1ec] sm:$0xf0] }
   0x3   :  { %v4649_v5 = vld [vmem:[%s10332_s2 + $0x2e0] sm:$0xf]  ;;  %v6441_v6 = vld [vmem:[%s10332_s2 + $0x2ec] sm:$0xf0]  ;;  %v4522_v7 = vor.u32 %v6409_v4, %v4521_v2 }
   0x4   :  { %v4650_v8 = vor.u32 %v6441_v6, %v4649_v5  ;;  %v4777_v9 = vld [vmem:[%s10332_s2 + $0x3e0] sm:$0xf]  ;;  %v6473_v10 = vld [vmem:[%s10332_s2 + $0x3ec] sm:$0xf0]  ;;  %1245 = vmatpush.bf16.msra.mxu0 %v4394_v3 }
   0x5   :  { %v4377_v11 = vld [vmem:[%s10332_s2 + $0xc0] sm:$0xf]  ;;  %v4778_v12 = vor.u32 %v6473_v10, %v4777_v9  ;;  %v6373_v13 = vld [vmem:[%s10332_s2 + $0xcc] sm:$0xf0]  ;;  %1258 = vmatpush.bf16.msra.mxu1 %v4522_v7 }
   0x6   :  { %v4505_v14 = vld [vmem:[%s10332_s2 + $0x1c0] sm:$0xf]  ;;  %v6405_v15 = vld [vmem:[%s10332_s2 + $0x1cc] sm:$0xf0]  ;;  %1271 = vmatpush.bf16.msra.mxu2 %v4650_v8  ;;  %v4378_v16 = vor.u32 %v6373_v13, %v4377_v11 }
   0x7   :  { %v4506_v17 = vor.u32 %v6405_v15, %v4505_v14  ;;  %v4633_v18 = vld [vmem:[%s10332_s2 + $0x2c0] sm:$0xf]  ;;  %v6437_v19 = vld [vmem:[%s10332_s2 + $0x2cc] sm:$0xf0]  ;;  %1284 = vmatpush.bf16.msra.mxu3 %v4778_v12 }
   0x8   :  { %v4761_v20 = vld [vmem:[%s10332_s2 + $0x3c0] sm:$0xf]  ;;  %v4634_v21 = vor.u32 %v6437_v19, %v4633_v18  ;;  %v6469_v22 = vld [vmem:[%s10332_s2 + $0x3cc] sm:$0xf0]  ;;  %1246 = vmatpush.bf16.msra.mxu0 %v4378_v16 }
   0x9   :  { %v4361_v23 = vld [vmem:[%s10332_s2 + $0xa0] sm:$0xf]  ;;  %v6369_v24 = vld [vmem:[%s10332_s2 + $0xac] sm:$0xf0]  ;;  %v4762_v25 = vor.u32 %v6469_v22, %v4761_v20  ;;  %1259 = vmatpush.bf16.msra.mxu1 %v4506_v17 }
   0xa   :  { %v4489_v26 = vld [vmem:[%s10332_s2 + $0x1a0] sm:$0xf]  ;;  %v6401_v27 = vld [vmem:[%s10332_s2 + $0x1ac] sm:$0xf0]  ;;  %v4362_v29 = vor.u32 %v6369_v24, %v4361_v23  ;;  %1272 = vmatpush.bf16.msra.mxu2 %v4634_v21 }
   0xb   :  { %v4617_v28 = vld [vmem:[%s10332_s2 + $0x2a0] sm:$0xf]  ;;  %v6433_v30 = vld [vmem:[%s10332_s2 + $0x2ac] sm:$0xf0]  ;;  %v4490_v33 = vor.u32 %v6401_v27, %v4489_v26  ;;  %1285 = vmatpush.bf16.msra.mxu3 %v4762_v25 }
   0xc   :  { %v4745_v31 = vld [vmem:[%s10332_s2 + $0x3a0] sm:$0xf]  ;;  %v6465_v32 = vld [vmem:[%s10332_s2 + $0x3ac] sm:$0xf0]  ;;  %v4618_v34 = vor.u32 %v6433_v30, %v4617_v28  ;;  %1247 = vmatpush.bf16.msra.mxu0 %v4362_v29 }
   0xd   :  { %v4345_v35 = vld [vmem:[%s10332_s2 + $0x80] sm:$0xf]  ;;  %v6365_v36 = vld [vmem:[%s10332_s2 + $0x8c] sm:$0xf0]  ;;  %v4746_v38 = vor.u32 %v6465_v32, %v4745_v31  ;;  %1260 = vmatpush.bf16.msra.mxu1 %v4490_v33  ;;  %v6375_v33 = vld [vmem:[%s10332_s2 + $0xe4] sm:$0xf] }
   0xe   :  { %v4473_v37 = vld [vmem:[%s10332_s2 + $0x180] sm:$0xf]  ;;  %v6397_v39 = vld [vmem:[%s10332_s2 + $0x18c] sm:$0xf0]  ;;  %v4346_v44 = vor.u32 %v6365_v36, %v4345_v35  ;;  %1273 = vmatpush.bf16.msra.mxu2 %v4618_v34  ;;  %v4395_v34 = vld [vmem:[%s10332_s2 + $0xf0] sm:$0xf0] }
   0xf   :  { %v4601_v40 = vld [vmem:[%s10332_s2 + $0x280] sm:$0xf]  ;;  %v6429_v41 = vld [vmem:[%s10332_s2 + $0x28c] sm:$0xf0]  ;;  %v4474_v45 = vor.u32 %v6397_v39, %v4473_v37  ;;  %1286 = vmatpush.bf16.msra.mxu3 %v4746_v38 }
  0x10   :  { %v4729_v42 = vld [vmem:[%s10332_s2 + $0x380] sm:$0xf]  ;;  %v6461_v43 = vld [vmem:[%s10332_s2 + $0x38c] sm:$0xf0]  ;;  %v4602_v46 = vor.u32 %v6429_v41, %v4601_v40  ;;  %1248 = vmatpush.bf16.msra.mxu0 %v4346_v44  ;;  %v4523_v44 = vld [vmem:[%s10332_s2 + $0x1f0] sm:$0xf0] }
  0x11   :  { %v4329_v47 = vld [vmem:[%s10332_s2 + $0x60] sm:$0xf]  ;;  %v6361_v48 = vld [vmem:[%s10332_s2 + $0x6c] sm:$0xf0]  ;;  %v4730_v50 = vor.u32 %v6461_v43, %v4729_v42  ;;  %1261 = vmatpush.bf16.msra.mxu1 %v4474_v45  ;;  %v6407_v43 = vld [vmem:[%s10332_s2 + $0x1e4] sm:$0xf] }
  0x12   :  { %v4457_v49 = vld [vmem:[%s10332_s2 + $0x160] sm:$0xf]  ;;  %v6393_v51 = vld [vmem:[%s10332_s2 + $0x16c] sm:$0xf0]  ;;  %v4330_v56 = vor.u32 %v6361_v48, %v4329_v47  ;;  %1274 = vmatpush.bf16.msra.mxu2 %v4602_v46  ;;  %v44_v45 = vld [vmem:[%s10330_s0 + $0x18] sm:$0xff]  ;;  %v4398_v47 = vor.u32 %v6375_v33, %v4395_v34 }
  0x13   :  { %v4585_v52 = vld [vmem:[%s10332_s2 + $0x260] sm:$0xf]  ;;  %v6425_v53 = vld [vmem:[%s10332_s2 + $0x26c] sm:$0xf0]  ;;  %v4458_v57 = vor.u32 %v6393_v51, %v4457_v49  ;;  %1287 = vmatpush.bf16.msra.mxu3 %v4730_v50 }
  0x14   :  { %v4713_v54 = vld [vmem:[%s10332_s2 + $0x360] sm:$0xf]  ;;  %v6457_v55 = vld [vmem:[%s10332_s2 + $0x36c] sm:$0xf0]  ;;  %v4586_v58 = vor.u32 %v6425_v53, %v4585_v52  ;;  %1249 = vmatpush.bf16.msra.mxu0 %v4330_v56  ;;  %v6371_v53 = vld [vmem:[%s10332_s2 + $0xc4] sm:$0xf] }
  0x15   :  { %v4313_v59 = vld [vmem:[%s10332_s2 + $0x40] sm:$0xf]  ;;  %v6357_v60 = vld [vmem:[%s10332_s2 + $0x4c] sm:$0xf0]  ;;  %v4714_v62 = vor.u32 %v6457_v55, %v4713_v54  ;;  %1262 = vmatpush.bf16.msra.mxu1 %v4458_v57  ;;  %v4379_v54 = vld [vmem:[%s10332_s2 + $0xd0] sm:$0xf0]  ;;  %v7295_v57 = vpack.c.bf16 %v44_v45, %v44_v45 }
  0x16   :  { %v4441_v61 = vld [vmem:[%s10332_s2 + $0x140] sm:$0xf]  ;;  %v6389_v63 = vld [vmem:[%s10332_s2 + $0x14c] sm:$0xf0]  ;;  %v4314_v4 = vor.u32 %v6357_v60, %v4313_v59  ;;  %1275 = vmatpush.bf16.msra.mxu2 %v4586_v58  ;;  %v42_v58 = vld [vmem:[%s10330_s0 + $0x8] sm:$0xff]  ;;  %v4526_v59 = vor.u32 %v6407_v43, %v4523_v44 }
  0x17   :  { %v4569_v0 = vld [vmem:[%s10332_s2 + $0x240] sm:$0xf]  ;;  %v6421_v1 = vld [vmem:[%s10332_s2 + $0x24c] sm:$0xf0]  ;;  %v4442_v5 = vor.u32 %v6389_v63, %v4441_v61  ;;  %1288 = vmatpush.bf16.msra.mxu3 %v4714_v62  ;;  %v6403_v61 = vld [vmem:[%s10332_s2 + $0x1c4] sm:$0xf] }
  0x18   :  { %v4697_v2 = vld [vmem:[%s10332_s2 + $0x340] sm:$0xf]  ;;  %v6453_v3 = vld [vmem:[%s10332_s2 + $0x34c] sm:$0xf0]  ;;  %v4570_v6 = vor.u32 %v6421_v1, %v4569_v0  ;;  %1250 = vmatpush.bf16.msra.mxu0 %v4314_v4  ;;  %v4507_v62 = vld [vmem:[%s10332_s2 + $0x1d0] sm:$0xf0]  ;;  %v4382_v0 = vor.u32 %v6371_v53, %v4379_v54 }
  0x19   :  { %v4297_v7 = vld [vmem:[%s10332_s2 + $0x20] sm:$0xf]  ;;  %v6353_v8 = vld [vmem:[%s10332_s2 + $0x2c] sm:$0xf0]  ;;  %v4698_v10 = vor.u32 %v6453_v3, %v4697_v2  ;;  %1263 = vmatpush.bf16.msra.mxu1 %v4442_v5  ;;  %v6367_v5 = vld [vmem:[%s10332_s2 + $0xa4] sm:$0xf] }
  0x1a   :  { %v4425_v9 = vld [vmem:[%s10332_s2 + $0x120] sm:$0xf]  ;;  %v6385_v11 = vld [vmem:[%s10332_s2 + $0x12c] sm:$0xf0]  ;;  %v4298_v16 = vor.u32 %v6353_v8, %v4297_v7  ;;  %1276 = vmatpush.bf16.msra.mxu2 %v4570_v6  ;;  %v4363_v6 = vld [vmem:[%s10332_s2 + $0xb0] sm:$0xf0]  ;;  %v7326_v7 = vpack.c.bf16 %v42_v58, %v42_v58  ;;  %v4510_v8 = vor.u32 %v6403_v61, %v4507_v62 }
  0x1b   :  { %v4553_v12 = vld [vmem:[%s10332_s2 + $0x220] sm:$0xf]  ;;  %v6417_v13 = vld [vmem:[%s10332_s2 + $0x22c] sm:$0xf0]  ;;  %v4426_v20 = vor.u32 %v6385_v11, %v4425_v9  ;;  %1289 = vmatpush.bf16.msra.mxu3 %v4698_v10  ;;  %v6399_v10 = vld [vmem:[%s10332_s2 + $0x1a4] sm:$0xf] }
  0x1c   :  { %v4681_v14 = vld [vmem:[%s10332_s2 + $0x320] sm:$0xf]  ;;  %v6449_v15 = vld [vmem:[%s10332_s2 + $0x32c] sm:$0xf0]  ;;  %v4554_v21 = vor.u32 %v6417_v13, %v4553_v12  ;;  %1251 = vmatpush.bf16.msra.mxu0 %v4298_v16  ;;  %v4491_v11 = vld [vmem:[%s10332_s2 + $0x1b0] sm:$0xf0]  ;;  %v4366_v13 = vor.u32 %v6367_v5, %v4363_v6 }
  0x1d   :  { %v4281_v17 = vld [vmem:[%s10332_s2] sm:$0xf]  ;;  %v6349_v18 = vld [vmem:[%s10332_s2 + $0xc] sm:$0xf0]  ;;  %v4682_v25 = vor.u32 %v6449_v15, %v4681_v14  ;;  %1264 = vmatpush.bf16.msra.mxu1 %v4426_v20  ;;  %v4494_v20 = vor.u32 %v6399_v10, %v4491_v11  ;;  %v6355_v43 = vld [vmem:[%s10332_s2 + $0x44] sm:$0xf] }
  0x1e   :  { %v4409_v19 = vld [vmem:[%s10332_s2 + $0x100] sm:$0xf]  ;;  %v6381_v22 = vld [vmem:[%s10332_s2 + $0x10c] sm:$0xf0]  ;;  %v4282_v32 = vor.u32 %v6349_v18, %v4281_v17  ;;  %1277 = vmatpush.bf16.msra.mxu2 %v4554_v21  ;;  %v6363_v18 = vld [vmem:[%s10332_s2 + $0x84] sm:$0xf] }
  0x1f   :  { %v4537_v23 = vld [vmem:[%s10332_s2 + $0x200] sm:$0xf]  ;;  %v6413_v24 = vld [vmem:[%s10332_s2 + $0x20c] sm:$0xf0]  ;;  %v4410_v36 = vor.u32 %v6381_v22, %v4409_v19  ;;  %1290 = vmatpush.bf16.msra.mxu3 %v4682_v25  ;;  %v4347_v19 = vld [vmem:[%s10332_s2 + $0x90] sm:$0xf0] }
  0x20   :  { %v4665_v26 = vld [vmem:[%s10332_s2 + $0x300] sm:$0xf]  ;;  %v6445_v27 = vld [vmem:[%s10332_s2 + $0x30c] sm:$0xf0]  ;;  %v4538_v37 = vor.u32 %v6413_v24, %v4537_v23  ;;  %1252 = vmatpush.bf16.msra.mxu0 %v4282_v32  ;;  %v6395_v22 = vld [vmem:[%s10332_s2 + $0x184] sm:$0xf]  ;;  %v4350_v25 = vor.u32 %v6363_v18, %v4347_v19 }
  0x21   :  { %v4905_v28 = vld [vmem:[%s10332_s2 + $0x4e0] sm:$0xf]  ;;  %v6505_v29 = vld [vmem:[%s10332_s2 + $0x4ec] sm:$0xf0]  ;;  %v4666_v41 = vor.u32 %v6445_v27, %v4665_v26  ;;  %1265 = vmatpush.bf16.msra.mxu1 %v4410_v36  ;;  %v4475_v23 = vld [vmem:[%s10332_s2 + $0x190] sm:$0xf0] }
  0x22   :  { %v5033_v30 = vld [vmem:[%s10332_s2 + $0x5e0] sm:$0xf]  ;;  %v6537_v31 = vld [vmem:[%s10332_s2 + $0x5ec] sm:$0xf0]  ;;  %v4906_v42 = vor.u32 %v6505_v29, %v4905_v28  ;;  %1278 = vmatpush.bf16.msra.mxu2 %v4538_v37  ;;  %v4478_v33 = vor.u32 %v6395_v22, %v4475_v23  ;;  %v4459_v36 = vld [vmem:[%s10332_s2 + $0x170] sm:$0xf0] }
  0x23   :  { %v43_v35 = vld [vmem:[%s10330_s0 + $0x10] sm:$0xff]  ;;  %v5049_v38 = vld [vmem:[%s10332_s2 + $0x600] sm:$0xf]  ;;  %v5034_v46 = vor.u32 %v6537_v31, %v5033_v30  ;;  %1291 = vmatpush.bf16.msra.mxu3 %v4666_v41  ;;  %v6359_v30 = vld [vmem:[%s10332_s2 + $0x64] sm:$0xf] }
  0x24   :  { %v6541_v39 = vld [vmem:[%s10332_s2 + $0x60c] sm:$0xf0]  ;;  %v41_v40 = vld [vmem:[%s10330_s0] sm:$0xff]  ;;  %v7282_v51 = vpack.c.bf16 %v43_v35, %v43_v35  ;;  %1297 = vmatpush.bf16.msrb.mxu0 %v4906_v42  ;;  %1266 = vmatmul.bf16.vlgmr.msra.gmra.mxu1 %v7326_v7  ;;  %v4331_v31 = vld [vmem:[%s10332_s2 + $0x70] sm:$0xf0] }
  0x25   :  { %v4889_v48 = vld [vmem:[%s10332_s2 + $0x4c0] sm:$0xf]  ;;  %v6501_v49 = vld [vmem:[%s10332_s2 + $0x4cc] sm:$0xf0]  ;;  %v7293_v55 = vpack.c.bf16 %v41_v40, %v41_v40  ;;  %v5050_v56 = vor.u32 %v6541_v39, %v5049_v38  ;;  %1310 = vmatpush.bf16.msrb.mxu1 %v5034_v46  ;;  %v6391_v35 = vld [vmem:[%s10332_s2 + $0x164] sm:$0xf]  ;;  %v4334_v38 = vor.u32 %v6359_v30, %v4331_v31 }
  0x26   :  { %v5017_v50 = vld [vmem:[%s10332_s2 + $0x5c0] sm:$0xf]  ;;  %v6533_v52 = vld [vmem:[%s10332_s2 + $0x5cc] sm:$0xf0]  ;;  %v4890_v60 = vor.u32 %v6501_v49, %v4889_v48  ;;  %1279 = vmatmul.bf16.vlgmr.msra.gmra.mxu2 %v7282_v51  ;;  %1292 = vmatmul.bf16.vlgmr.msra.gmra.mxu3 %v7295_v57  ;;  %v4315_v44 = vld [vmem:[%s10332_s2 + $0x50] sm:$0xf0]  ;;  %v4462_v46 = vor.u32 %v6391_v35, %v4459_v36 }
  0x27   :  { %1336 = vmatpush.bf16.msrb.mxu3 %v4398_v47  ;;  %v5018_v63 = vor.u32 %v6533_v52, %v5017_v50  ;;  %v4873_v1 = vld [vmem:[%s10332_s2 + $0x4a0] sm:$0xf]  ;;  %v6497_v2 = vld [vmem:[%s10332_s2 + $0x4ac] sm:$0xf0]  ;;  %1253 = vmatmul.bf16.vlgmr.msra.gmra.mxu0 %v7293_v55  ;;  %v6387_v48 = vld [vmem:[%s10332_s2 + $0x144] sm:$0xf]  ;;  %v4318_v52 = vor.u32 %v6355_v43, %v4315_v44 }
  0x28   :  { %v5001_v3 = vld [vmem:[%s10332_s2 + $0x5a0] sm:$0xf]  ;;  %v6529_v4 = vld [vmem:[%s10332_s2 + $0x5ac] sm:$0xf0]  ;;  %1330 = vmatpush.bf16.msrb.mxu2 %v5050_v56  ;;  %1298 = vmatpush.bf16.msrb.mxu0 %v4890_v60  ;;  %v4874_v9 = vor.u32 %v6497_v2, %v4873_v1  ;;  %v4443_v49 = vld [vmem:[%s10332_s2 + $0x150] sm:$0xf0] }
  0x29   :  { %1311 = vmatpush.bf16.msrb.mxu1 %v5018_v63  ;;  %v5002_v12 = vor.u32 %v6529_v4, %v5001_v3  ;;  %v4857_v14 = vld [vmem:[%s10332_s2 + $0x480] sm:$0xf]  ;;  %v6493_v15 = vld [vmem:[%s10332_s2 + $0x48c] sm:$0xf0]  ;;  %v4299_v60 = vld [vmem:[%s10332_s2 + $0x30] sm:$0xf0]  ;;  %v4446_v61 = vor.u32 %v6387_v48, %v4443_v49 }
  0x2a   :  { %v4985_v16 = vld [vmem:[%s10332_s2 + $0x580] sm:$0xf]  ;;  %v6525_v17 = vld [vmem:[%s10332_s2 + $0x58c] sm:$0xf0]  ;;  %v4858_v21 = vor.u32 %v6493_v15, %v4857_v14  ;;  %v6383_v63 = vld [vmem:[%s10332_s2 + $0x124] sm:$0xf] }
  0x2b   :  { %1337 = vmatpush.bf16.msrb.mxu3 %v4382_v0  ;;  %v4986_v24 = vor.u32 %v6525_v17, %v4985_v16  ;;  %v4841_v26 = vld [vmem:[%s10332_s2 + $0x460] sm:$0xf]  ;;  %v6489_v27 = vld [vmem:[%s10332_s2 + $0x46c] sm:$0xf0]  ;;  %v4427_v0 = vld [vmem:[%s10332_s2 + $0x130] sm:$0xf0] }
  0x2c   :  { %1349 = vmatpush.bf16.msra.mxu2 %v4526_v59  ;;  %1299 = vmatpush.bf16.msrb.mxu0 %v4874_v9  ;;  %v4969_v28 = vld [vmem:[%s10332_s2 + $0x560] sm:$0xf]  ;;  %v6521_v29 = vld [vmem:[%s10332_s2 + $0x56c] sm:$0xf0]  ;;  %v4842_v34 = vor.u32 %v6489_v27, %v4841_v26  ;;  %v6351_v59 = vld [vmem:[%s10332_s2 + $0x24] sm:$0xf]  ;;  %v4430_v14 = vor.u32 %v6383_v63, %v4427_v0 }
  0x2d   :  { %1312 = vmatpush.bf16.msrb.mxu1 %v5002_v12  ;;  %v47_v32 = vld [vmem:[%s10330_s0 + $0x30] sm:$0xff]  ;;  %v4970_v37 = vor.u32 %v6521_v29, %v4969_v28  ;;  %v4825_v39 = vld [vmem:[%s10332_s2 + $0x440] sm:$0xf]  ;;  %v4302_v3 = vor.u32 %v6351_v59, %v4299_v60  ;;  %v6439_v10 = vld [vmem:[%s10332_s2 + $0x2e4] sm:$0xf] }
  0x2e   :  { %v6485_v40 = vld [vmem:[%s10332_s2 + $0x44c] sm:$0xf0]  ;;  %v4953_v41 = vld [vmem:[%s10332_s2 + $0x540] sm:$0xf]  ;;  %v7405_v45 = vpack.c.bf16 %v47_v32, %v47_v32  ;;  %v4283_v9 = vld [vmem:[%s10332_s2 + $0x10] sm:$0xf0] }
  0x2f   :  { %1338 = vmatpush.bf16.msrb.mxu3 %v4366_v13  ;;  %v6517_v42 = vld [vmem:[%s10332_s2 + $0x54c] sm:$0xf0]  ;;  %v4826_v47 = vor.u32 %v6485_v40, %v4825_v39  ;;  %v4809_v53 = vld [vmem:[%s10332_s2 + $0x420] sm:$0xf]  ;;  %v4651_v11 = vld [vmem:[%s10332_s2 + $0x2f0] sm:$0xf0] }
  0x30   :  { %1350 = vmatpush.bf16.msra.mxu2 %v4510_v8  ;;  %1300 = vmatpush.bf16.msrb.mxu0 %v4858_v21  ;;  %v4954_v50 = vor.u32 %v6517_v42, %v4953_v41  ;;  %v6481_v54 = vld [vmem:[%s10332_s2 + $0x42c] sm:$0xf0]  ;;  %v4937_v56 = vld [vmem:[%s10332_s2 + $0x520] sm:$0xf]  ;;  %v6347_v8 = vld [vmem:[%s10332_s2 + $0x4] sm:$0xf] }
  0x31   :  { %1313 = vmatpush.bf16.msrb.mxu1 %v4986_v24  ;;  %v6513_v58 = vld [vmem:[%s10332_s2 + $0x52c] sm:$0xf0]  ;;  %v4810_v62 = vor.u32 %v6481_v54, %v4809_v53  ;;  %v4793_v1 = vld [vmem:[%s10332_s2 + $0x400] sm:$0xf]  ;;  %v6471_v12 = vld [vmem:[%s10332_s2 + $0x3e4] sm:$0xf]  ;;  %v4654_v24 = vor.u32 %v6439_v10, %v4651_v11 }
  0x32   :  { %v4938_v2 = vor.u32 %v6513_v58, %v4937_v56  ;;  %v6477_v4 = vld [vmem:[%s10332_s2 + $0x40c] sm:$0xf0]  ;;  %v4921_v5 = vld [vmem:[%s10332_s2 + $0x500] sm:$0xf]  ;;  %v4779_v13 = vld [vmem:[%s10332_s2 + $0x3f0] sm:$0xf0] }
  0x33   :  { %1339 = vmatpush.bf16.msrb.mxu3 %v4350_v25  ;;  %v6509_v6 = vld [vmem:[%s10332_s2 + $0x50c] sm:$0xf0]  ;;  %v4794_v15 = vor.u32 %v6477_v4, %v4793_v1  ;;  %v6503_v16 = vld [vmem:[%s10332_s2 + $0x4e4] sm:$0xf]  ;;  %v4907_v17 = vld [vmem:[%s10332_s2 + $0x4f0] sm:$0xf0]  ;;  %v4782_v25 = vor.u32 %v6471_v12, %v4779_v13 }
  0x34   :  { %1351 = vmatpush.bf16.msra.mxu2 %v4494_v20  ;;  %1301 = vmatpush.bf16.msrb.mxu0 %v4842_v34  ;;  %v45_v18 = vld [vmem:[%s10330_s0 + $0x20] sm:$0xff]  ;;  %v4922_v19 = vor.u32 %v6509_v6, %v4921_v5  ;;  %v4286_v20 = vor.u32 %v6347_v8, %v4283_v9  ;;  %v4411_v22 = vld [vmem:[%s10332_s2 + $0x110] sm:$0xf0]  ;;  %v46_v23 = vld [vmem:[%s10330_s0 + $0x28] sm:$0xff]  ;;  %v4910_v29 = vor.u32 %v6503_v16, %v4907_v17 }
  0x35   :  { %1314 = vmatpush.bf16.msrb.mxu1 %v4970_v37  ;;  %v6379_v21 = vld [vmem:[%s10332_s2 + $0x104] sm:$0xf]  ;;  %v5035_v27 = vld [vmem:[%s10332_s2 + $0x5f0] sm:$0xf0]  ;;  %v7496_v30 = vpack.c.bf16 %v45_v18, %v45_v18  ;;  %v7507_v35 = vpack.c.bf16 %v46_v23, %v46_v23 }
  0x36   :  { %5063 = vmatmul.msk.bf16.vlgmr.msrb.gmra.mxu2 %vm1241_vm0, %v7405_v45  ;;  %v6535_v26 = vld [vmem:[%s10332_s2 + $0x5e4] sm:$0xf]  ;;  %v4635_v31 = vld [vmem:[%s10332_s2 + $0x2d0] sm:$0xf0]  ;;  %v4414_v34 = vor.u32 %v6379_v21, %v4411_v22 }
  0x37   :  { %1340 = vmatpush.bf16.msrb.mxu3 %v4334_v38  ;;  %v6435_v28 = vld [vmem:[%s10332_s2 + $0x2c4] sm:$0xf]  ;;  %v4891_v37 = vld [vmem:[%s10332_s2 + $0x4d0] sm:$0xf0]  ;;  %v5038_v38 = vor.u32 %v6535_v26, %v5035_v27 }
  0x38   :  { %1352 = vmatpush.bf16.msra.mxu2 %v4478_v33  ;;  %1302 = vmatpush.bf16.msrb.mxu0 %v4826_v47  ;;  %v6467_v32 = vld [vmem:[%s10332_s2 + $0x3c4] sm:$0xf]  ;;  %v4763_v33 = vld [vmem:[%s10332_s2 + $0x3d0] sm:$0xf0]  ;;  %v4638_v39 = vor.u32 %v6435_v28, %v4635_v31 }
  0x39   :  { %1315 = vmatpush.bf16.msrb.mxu1 %v4954_v50  ;;  %v6499_v36 = vld [vmem:[%s10332_s2 + $0x4c4] sm:$0xf]  ;;  %v4766_v40 = vor.u32 %v6467_v32, %v4763_v33  ;;  %v5019_v42 = vld [vmem:[%s10332_s2 + $0x5d0] sm:$0xf0] }
  0x3a   :  { %v6531_v41 = vld [vmem:[%s10332_s2 + $0x5c4] sm:$0xf]  ;;  %v4894_v44 = vor.u32 %v6499_v36, %v4891_v37  ;;  %v4747_v48 = vld [vmem:[%s10332_s2 + $0x3b0] sm:$0xf0] }
  0x3b   :  { %1341 = vmatpush.bf16.msrb.mxu3 %v4318_v52  ;;  %v6431_v43 = vld [vmem:[%s10332_s2 + $0x2a4] sm:$0xf]  ;;  %v4875_v50 = vld [vmem:[%s10332_s2 + $0x4b0] sm:$0xf0]  ;;  %v5022_v52 = vor.u32 %v6531_v41, %v5019_v42 }
  0x3c   :  { %1353 = vmatpush.bf16.msra.mxu2 %v4462_v46  ;;  %1303 = vmatpush.bf16.msrb.mxu0 %v4810_v62  ;;  %v4619_v46 = vld [vmem:[%s10332_s2 + $0x2b0] sm:$0xf0]  ;;  %v6463_v47 = vld [vmem:[%s10332_s2 + $0x3a4] sm:$0xf] }
  0x3d   :  { %1316 = vmatpush.bf16.msrb.mxu1 %v4938_v2  ;;  %v6495_v49 = vld [vmem:[%s10332_s2 + $0x4a4] sm:$0xf]  ;;  %v4622_v53 = vor.u32 %v6431_v43, %v4619_v46  ;;  %v4750_v54 = vor.u32 %v6463_v47, %v4747_v48  ;;  %v5003_v58 = vld [vmem:[%s10332_s2 + $0x5b0] sm:$0xf0] }
  0x3e   :  { %v6527_v56 = vld [vmem:[%s10332_s2 + $0x5a4] sm:$0xf]  ;;  %v4878_v60 = vor.u32 %v6495_v49, %v4875_v50  ;;  %v4731_v63 = vld [vmem:[%s10332_s2 + $0x390] sm:$0xf0] }
  0x3f   :  { %1342 = vmatpush.bf16.msrb.mxu3 %v4302_v3  ;;  %v6427_v59 = vld [vmem:[%s10332_s2 + $0x284] sm:$0xf]  ;;  %v4859_v1 = vld [vmem:[%s10332_s2 + $0x490] sm:$0xf0]  ;;  %v5006_v2 = vor.u32 %v6527_v56, %v5003_v58 }
  0x40   :  { %1354 = vmatpush.bf16.msra.mxu2 %v4446_v61  ;;  %1304 = vmatpush.bf16.msrb.mxu0 %v4794_v15  ;;  %v4603_v61 = vld [vmem:[%s10332_s2 + $0x290] sm:$0xf0]  ;;  %v6459_v62 = vld [vmem:[%s10332_s2 + $0x384] sm:$0xf] }
  0x41   :  { %1317 = vmatpush.bf16.msrb.mxu1 %v4922_v19  ;;  %v6491_v0 = vld [vmem:[%s10332_s2 + $0x484] sm:$0xf]  ;;  %v4606_v3 = vor.u32 %v6427_v59, %v4603_v61  ;;  %v4734_v4 = vor.u32 %v6459_v62, %v4731_v63  ;;  %v4987_v6 = vld [vmem:[%s10332_s2 + $0x590] sm:$0xf0] }
  0x42   :  { %v6523_v5 = vld [vmem:[%s10332_s2 + $0x584] sm:$0xf]  ;;  %v4862_v9 = vor.u32 %v6491_v0, %v4859_v1  ;;  %v4587_v10 = vld [vmem:[%s10332_s2 + $0x270] sm:$0xf0] }
  0x43   :  { %1343 = vmatpush.bf16.msrb.mxu3 %v4286_v20  ;;  %1305 = vmatmul.bf16.vlgmr.msrb.gmra.mxu0 %v7496_v30  ;;  %v6423_v8 = vld [vmem:[%s10332_s2 + $0x264] sm:$0xf]  ;;  %v4715_v12 = vld [vmem:[%s10332_s2 + $0x370] sm:$0xf0]  ;;  %v4990_v15 = vor.u32 %v6523_v5, %v4987_v6 }
  0x44   :  { %1355 = vmatpush.bf16.msra.mxu2 %v4430_v14  ;;  %1362 = vmatpush.bf16.msra.mxu0 %v4654_v24  ;;  %v6455_v11 = vld [vmem:[%s10332_s2 + $0x364] sm:$0xf]  ;;  %v4843_v14 = vld [vmem:[%s10332_s2 + $0x470] sm:$0xf0]  ;;  %v4590_v16 = vor.u32 %v6423_v8, %v4587_v10 }
  0x45   :  { %1375 = vmatpush.bf16.msra.mxu1 %v4782_v25  ;;  %v6487_v13 = vld [vmem:[%s10332_s2 + $0x464] sm:$0xf]  ;;  %v4718_v17 = vor.u32 %v6455_v11, %v4715_v12  ;;  %v4971_v19 = vld [vmem:[%s10332_s2 + $0x570] sm:$0xf0] }
  0x46   :  { %1318 = vmatmul.bf16.vlgmr.msrb.gmra.mxu1 %v7507_v35  ;;  %1344 = vmatmul.bf16.vlgmr.msrb.gmra.mxu3 %v7293_v55  ;;  %v6519_v18 = vld [vmem:[%s10332_s2 + $0x564] sm:$0xf]  ;;  %v4846_v21 = vor.u32 %v6487_v13, %v4843_v14  ;;  %v4571_v22 = vld [vmem:[%s10332_s2 + $0x250] sm:$0xf0] }
  0x47   :  { %1388 = vmatpush.bf16.msra.mxu3 %v4910_v29  ;;  %v6419_v20 = vld [vmem:[%s10332_s2 + $0x244] sm:$0xf]  ;;  %v4699_v24 = vld [vmem:[%s10332_s2 + $0x350] sm:$0xf0]  ;;  %v4974_v27 = vor.u32 %v6519_v18, %v4971_v19 }
  0x48   :  { %1356 = vmatpush.bf16.msra.mxu2 %v4414_v34  ;;  %1363 = vmatpush.bf16.msra.mxu0 %v4638_v39  ;;  %v6451_v23 = vld [vmem:[%s10332_s2 + $0x344] sm:$0xf]  ;;  %v4827_v26 = vld [vmem:[%s10332_s2 + $0x450] sm:$0xf0]  ;;  %v4574_v28 = vor.u32 %v6419_v20, %v4571_v22 }
  0x49   :  { %1376 = vmatpush.bf16.msra.mxu1 %v4766_v40  ;;  %v6483_v25 = vld [vmem:[%s10332_s2 + $0x444] sm:$0xf]  ;;  %v4702_v29 = vor.u32 %v6451_v23, %v4699_v24  ;;  %v4955_v32 = vld [vmem:[%s10332_s2 + $0x550] sm:$0xf0] }
  0x4a   :  { %v6515_v31 = vld [vmem:[%s10332_s2 + $0x544] sm:$0xf]  ;;  %v4830_v34 = vor.u32 %v6483_v25, %v4827_v26  ;;  %v4555_v36 = vld [vmem:[%s10332_s2 + $0x230] sm:$0xf0] }
  0x4b   :  { %1389 = vmatpush.bf16.msra.mxu3 %v4894_v44  ;;  %1357 = vmatmul.bf16.vlgmr.msra.gmra.mxu2 %v7326_v7  ;;  %v6415_v33 = vld [vmem:[%s10332_s2 + $0x224] sm:$0xf]  ;;  %v4811_v40 = vld [vmem:[%s10332_s2 + $0x430] sm:$0xf0]  ;;  %v4958_v41 = vor.u32 %v6515_v31, %v4955_v32 }
  0x4c   :  { %1401 = vmatpush.bf16.msrb.mxu2 %v5038_v38  ;;  %1364 = vmatpush.bf16.msra.mxu0 %v4622_v53  ;;  %v6447_v37 = vld [vmem:[%s10332_s2 + $0x324] sm:$0xf]  ;;  %v4683_v38 = vld [vmem:[%s10332_s2 + $0x330] sm:$0xf0]  ;;  %v4558_v46 = vor.u32 %v6415_v33, %v4555_v36 }
  0x4d   :  { %1377 = vmatpush.bf16.msra.mxu1 %v4750_v54  ;;  %v6479_v39 = vld [vmem:[%s10332_s2 + $0x424] sm:$0xf]  ;;  %v4939_v43 = vld [vmem:[%s10332_s2 + $0x530] sm:$0xf0]  ;;  %v4686_v47 = vor.u32 %v6447_v37, %v4683_v38 }
  0x4e   :  { %v6511_v42 = vld [vmem:[%s10332_s2 + $0x524] sm:$0xf]  ;;  %v4539_v48 = vld [vmem:[%s10332_s2 + $0x210] sm:$0xf0] }
  0x4f   :  { %1390 = vmatpush.bf16.msra.mxu3 %v4878_v60  ;;  %v6411_v44 = vld [vmem:[%s10332_s2 + $0x204] sm:$0xf]  ;;  %v4667_v50 = vld [vmem:[%s10332_s2 + $0x310] sm:$0xf0] }
  0x50   :  { %1402 = vmatpush.bf16.msrb.mxu2 %v5022_v52  ;;  %1365 = vmatpush.bf16.msra.mxu0 %v4606_v3  ;;  %v6443_v49 = vld [vmem:[%s10332_s2 + $0x304] sm:$0xf]  ;;  %v4814_v52 = vor.u32 %v6479_v39, %v4811_v40  ;;  %v4795_v54 = vld [vmem:[%s10332_s2 + $0x410] sm:$0xf0] }
  0x51   :  { %1378 = vmatpush.bf16.msra.mxu1 %v4734_v4  ;;  %v6475_v53 = vld [vmem:[%s10332_s2 + $0x404] sm:$0xf] }
  0x53   :  { %1391 = vmatpush.bf16.msra.mxu3 %v4862_v9 }
  0x54   :  { %1403 = vmatpush.bf16.msrb.mxu2 %v5006_v2  ;;  %1366 = vmatpush.bf16.msra.mxu0 %v4590_v16 }
  0x55   :  { %1379 = vmatpush.bf16.msra.mxu1 %v4718_v17 }
  0x57   :  { %1392 = vmatpush.bf16.msra.mxu3 %v4846_v21 }
  0x58   :  { %1404 = vmatpush.bf16.msrb.mxu2 %v4990_v15  ;;  %1367 = vmatpush.bf16.msra.mxu0 %v4574_v28 }
  0x59   :  { %1380 = vmatpush.bf16.msra.mxu1 %v4702_v29 }
  0x5b   :  { %1393 = vmatpush.bf16.msra.mxu3 %v4830_v34 }
  0x5c   :  { %1405 = vmatpush.bf16.msrb.mxu2 %v4974_v27 }
  0x5d   :  { %19 = vsyncpa [#allocation6], 0  ;;  %v4401_v56 = vld [vmem:[%s10332_s2 + $0xe8] sm:$0xf]  ;;  %v6378_v58 = vld [vmem:[%s10332_s2 + $0xf4] sm:$0xf0]  ;;  %v4942_v60 = vor.u32 %v6511_v42, %v4939_v43  ;;  %1368 = vmatpush.bf16.msra.mxu0 %v4558_v46  ;;  %1381 = vmatpush.bf16.msra.mxu1 %v4686_v47  ;;  %v4542_v0 = vor.u32 %v6411_v44, %v4539_v48  ;;  %v4670_v1 = vor.u32 %v6443_v49, %v4667_v50 }
  0x5e   :  { %v6539_v59 = vld [vmem:[%s10332_s2 + $0x604] sm:$0xf]  ;;  %v5051_v61 = vld [vmem:[%s10332_s2 + $0x610] sm:$0xf0]  ;;  %v4657_v62 = vld [vmem:[%s10332_s2 + $0x2e8] sm:$0xf]  ;;  %v4798_v4 = vor.u32 %v6475_v53, %v4795_v54  ;;  %v4402_v5 = vor.u32 %v6378_v58, %v4401_v56 }
  0x5f   :  { %v6442_v63 = vld [vmem:[%s10332_s2 + $0x2f4] sm:$0xf0]  ;;  %v6507_v2 = vld [vmem:[%s10332_s2 + $0x504] sm:$0xf]  ;;  %v4923_v3 = vld [vmem:[%s10332_s2 + $0x510] sm:$0xf0]  ;;  %1394 = vmatpush.bf16.msra.mxu3 %v4814_v52  ;;  %v5054_v9 = vor.u32 %v6539_v59, %v5051_v61 }
  0x60   :  { %1406 = vmatpush.bf16.msrb.mxu2 %v4958_v41  ;;  %v4785_v6 = vld [vmem:[%s10332_s2 + $0x3e8] sm:$0xf]  ;;  %v6474_v8 = vld [vmem:[%s10332_s2 + $0x3f4] sm:$0xf0]  ;;  %v4658_v12 = vor.u32 %v6442_v63, %v4657_v62  ;;  %v4926_v13 = vor.u32 %v6507_v2, %v4923_v3  ;;  %vm2118_vm1 = vcmask 162816   ;;  %s4250_s19 = sshll.u32 %s10341_s11, 4  ;;  %s4251_s19 = int_to_ptr.hbm [resolvable:$true] %s4250_s19 }
  0x61   :  { %v4529_v10 = vld [vmem:[%s10332_s2 + $0x1e8] sm:$0xf]  ;;  %v6410_v11 = vld [vmem:[%s10332_s2 + $0x1f4] sm:$0xf0]  ;;  %1369 = vmatpush.bf16.msra.mxu0 %v4542_v0  ;;  %1382 = vmatpush.bf16.msra.mxu1 %v4670_v1  ;;  %v4786_v16 = vor.u32 %v6474_v8, %v4785_v6  ;;  %s6974_s20 = smov [#allocation5]   ;;  %s6976_s11 = smov [#allocation3]  }
  0x62   :  { %v4385_v14 = vld [vmem:[%s10332_s2 + $0xc8] sm:$0xf]  ;;  %v6374_v15 = vld [vmem:[%s10332_s2 + $0xd4] sm:$0xf0]  ;;  %v4530_v19 = vor.u32 %v6410_v11, %v4529_v10  ;;  %vm4228_vm2 = vcmask 125952  }
  0x63   :  { %v4641_v17 = vld [vmem:[%s10332_s2 + $0x2c8] sm:$0xf]  ;;  %v6438_v18 = vld [vmem:[%s10332_s2 + $0x2d4] sm:$0xf0]  ;;  %1395 = vmatpush.bf16.msra.mxu3 %v4798_v4  ;;  %v4386_v22 = vor.u32 %v6374_v15, %v4385_v14 }
  0x64   :  { %1407 = vmatpush.bf16.msrb.mxu2 %v4942_v60  ;;  %v4769_v20 = vld [vmem:[%s10332_s2 + $0x3c8] sm:$0xf]  ;;  %v6470_v21 = vld [vmem:[%s10332_s2 + $0x3d4] sm:$0xf0]  ;;  %1370 = vmatmul.bf16.vlgmr.msra.gmra.mxu0 %v7282_v51  ;;  %v4642_v25 = vor.u32 %v6438_v18, %v4641_v17 }
  0x65   :  { %1427 = vmatpush.bf16.msrb.mxu1 %v4402_v5  ;;  %1453 = vmatpush.bf16.msrb.mxu0 %v4658_v12  ;;  %v4513_v23 = vld [vmem:[%s10332_s2 + $0x1c8] sm:$0xf]  ;;  %v6406_v24 = vld [vmem:[%s10332_s2 + $0x1d4] sm:$0xf0]  ;;  %v4770_v28 = vor.u32 %v6470_v21, %v4769_v20 }
  0x66   :  { %v4369_v26 = vld [vmem:[%s10332_s2 + $0xa8] sm:$0xf]  ;;  %v6370_v27 = vld [vmem:[%s10332_s2 + $0xb4] sm:$0xf0]  ;;  %1396 = vmatmul.bf16.vlgmr.msra.gmra.mxu3 %v7496_v30  ;;  %1383 = vmatmul.bf16.vlgmr.msra.gmra.mxu1 %v7295_v57  ;;  %v4514_v32 = vor.u32 %v6406_v24, %v4513_v23 }
  0x67   :  { %1421 = vmatpush.bf16.msrb.mxu3 %v5054_v9  ;;  %v4625_v29 = vld [vmem:[%s10332_s2 + $0x2a8] sm:$0xf]  ;;  %v6434_v31 = vld [vmem:[%s10332_s2 + $0x2b4] sm:$0xf0]  ;;  %v4370_v36 = vor.u32 %v6370_v27, %v4369_v26 }
  0x68   :  { %1408 = vmatpush.bf16.msrb.mxu2 %v4926_v13  ;;  %v4753_v33 = vld [vmem:[%s10332_s2 + $0x3a8] sm:$0xf]  ;;  %v6466_v34 = vld [vmem:[%s10332_s2 + $0x3b4] sm:$0xf0]  ;;  %v4626_v39 = vor.u32 %v6434_v31, %v4625_v29 }
  0x69   :  { %1428 = vmatpush.bf16.msrb.mxu1 %v4386_v22  ;;  %v4497_v37 = vld [vmem:[%s10332_s2 + $0x1a8] sm:$0xf]  ;;  %v6402_v38 = vld [vmem:[%s10332_s2 + $0x1b4] sm:$0xf0]  ;;  %1454 = vmatpush.bf16.msrb.mxu0 %v4642_v25  ;;  %v4754_v42 = vor.u32 %v6466_v34, %v4753_v33 }
  0x6a   :  { %v4353_v40 = vld [vmem:[%s10332_s2 + $0x88] sm:$0xf]  ;;  %v6366_v41 = vld [vmem:[%s10332_s2 + $0x94] sm:$0xf0]  ;;  %v4498_v46 = vor.u32 %v6402_v38, %v4497_v37 }
  0x6b   :  { %1440 = vmatpush.bf16.msra.mxu3 %v4530_v19  ;;  %1409 = vmatmul.bf16.vlgmr.msrb.gmra.mxu2 %v7507_v35  ;;  %v4609_v43 = vld [vmem:[%s10332_s2 + $0x288] sm:$0xf]  ;;  %v6430_v44 = vld [vmem:[%s10332_s2 + $0x294] sm:$0xf0]  ;;  %v4354_v49 = vor.u32 %v6366_v41, %v4353_v40 }
  0x6c   :  { %1466 = vmatpush.bf16.msra.mxu2 %v4786_v16  ;;  %v4737_v47 = vld [vmem:[%s10332_s2 + $0x388] sm:$0xf]  ;;  %v6462_v48 = vld [vmem:[%s10332_s2 + $0x394] sm:$0xf0]  ;;  %v4610_v53 = vor.u32 %v6430_v44, %v4609_v43 }
  0x6d   :  { %1429 = vmatpush.bf16.msrb.mxu1 %v4370_v36  ;;  %v4481_v50 = vld [vmem:[%s10332_s2 + $0x188] sm:$0xf]  ;;  %v6398_v52 = vld [vmem:[%s10332_s2 + $0x194] sm:$0xf0]  ;;  %1455 = vmatpush.bf16.msrb.mxu0 %v4626_v39  ;;  %v4738_v58 = vor.u32 %v6462_v48, %v4737_v47  ;;  %v6376_v47 = vld [vmem:[%s10332_s2 + $0xec] sm:$0xf] }
  0x6e   :  { %v4337_v54 = vld [vmem:[%s10332_s2 + $0x68] sm:$0xf]  ;;  %v6362_v56 = vld [vmem:[%s10332_s2 + $0x74] sm:$0xf0]  ;;  %v4482_v61 = vor.u32 %v6398_v52, %v4481_v50  ;;  %v4403_v48 = vld [vmem:[%s10332_s2 + $0xf8] sm:$0xf0] }
  0x6f   :  { %1441 = vmatpush.bf16.msra.mxu3 %v4514_v32  ;;  %v4593_v59 = vld [vmem:[%s10332_s2 + $0x268] sm:$0xf]  ;;  %v6426_v60 = vld [vmem:[%s10332_s2 + $0x274] sm:$0xf0]  ;;  %v4338_v0 = vor.u32 %v6362_v56, %v4337_v54 }
  0x70   :  { %1467 = vmatpush.bf16.msra.mxu2 %v4770_v28  ;;  %v4721_v62 = vld [vmem:[%s10332_s2 + $0x368] sm:$0xf]  ;;  %v6458_v63 = vld [vmem:[%s10332_s2 + $0x374] sm:$0xf0]  ;;  %v4594_v3 = vor.u32 %v6426_v60, %v4593_v59  ;;  %v6408_v60 = vld [vmem:[%s10332_s2 + $0x1ec] sm:$0xf] }
  0x71   :  { %1430 = vmatpush.bf16.msrb.mxu1 %v4354_v49  ;;  %v4465_v1 = vld [vmem:[%s10332_s2 + $0x168] sm:$0xf]  ;;  %v6394_v2 = vld [vmem:[%s10332_s2 + $0x174] sm:$0xf0]  ;;  %1456 = vmatpush.bf16.msrb.mxu0 %v4610_v53  ;;  %v4722_v6 = vor.u32 %v6458_v63, %v4721_v62  ;;  %v4406_v63 = vor.u32 %v6376_v47, %v4403_v48 }
  0x72   :  { %v4321_v4 = vld [vmem:[%s10332_s2 + $0x48] sm:$0xf]  ;;  %v6358_v5 = vld [vmem:[%s10332_s2 + $0x54] sm:$0xf0]  ;;  %v4466_v10 = vor.u32 %v6394_v2, %v4465_v1  ;;  %v6372_v1 = vld [vmem:[%s10332_s2 + $0xcc] sm:$0xf] }
  0x73   :  { %1442 = vmatpush.bf16.msra.mxu3 %v4498_v46  ;;  %v4577_v8 = vld [vmem:[%s10332_s2 + $0x248] sm:$0xf]  ;;  %v6422_v9 = vld [vmem:[%s10332_s2 + $0x254] sm:$0xf0]  ;;  %v4322_v13 = vor.u32 %v6358_v5, %v4321_v4  ;;  %v4387_v2 = vld [vmem:[%s10332_s2 + $0xd8] sm:$0xf0] }
  0x74   :  { %1468 = vmatpush.bf16.msra.mxu2 %v4754_v42  ;;  %v4705_v11 = vld [vmem:[%s10332_s2 + $0x348] sm:$0xf]  ;;  %v6454_v12 = vld [vmem:[%s10332_s2 + $0x354] sm:$0xf0]  ;;  %v4578_v16 = vor.u32 %v6422_v9, %v4577_v8 }
  0x75   :  { %1431 = vmatpush.bf16.msrb.mxu1 %v4338_v0  ;;  %v4449_v14 = vld [vmem:[%s10332_s2 + $0x148] sm:$0xf]  ;;  %v6390_v15 = vld [vmem:[%s10332_s2 + $0x154] sm:$0xf0]  ;;  %1457 = vmatpush.bf16.msrb.mxu0 %v4594_v3  ;;  %v4706_v19 = vor.u32 %v6454_v12, %v4705_v11  ;;  %v4515_v11 = vld [vmem:[%s10332_s2 + $0x1d8] sm:$0xf0]  ;;  %v4390_v12 = vor.u32 %v6372_v1, %v4387_v2 }
  0x76   :  { %v4305_v17 = vld [vmem:[%s10332_s2 + $0x28] sm:$0xf]  ;;  %v6354_v18 = vld [vmem:[%s10332_s2 + $0x34] sm:$0xf0]  ;;  %5064 = vmatmul.msk.bf16.vlgmr.msrb.gmra.mxu3 %vm1241_vm0, %v7405_v45  ;;  %v4450_v22 = vor.u32 %v6390_v15, %v4449_v14  ;;  %v6368_v14 = vld [vmem:[%s10332_s2 + $0xac] sm:$0xf] }
  0x77   :  { %1443 = vmatpush.bf16.msra.mxu3 %v4482_v61  ;;  %v4561_v20 = vld [vmem:[%s10332_s2 + $0x228] sm:$0xf]  ;;  %v6418_v21 = vld [vmem:[%s10332_s2 + $0x234] sm:$0xf0]  ;;  %v4306_v25 = vor.u32 %v6354_v18, %v4305_v17  ;;  %v4531_v61 = vld [vmem:[%s10332_s2 + $0x1f8] sm:$0xf0] }
  0x78   :  { %1469 = vmatpush.bf16.msra.mxu2 %v4738_v58  ;;  %v4689_v23 = vld [vmem:[%s10332_s2 + $0x328] sm:$0xf]  ;;  %v6450_v24 = vld [vmem:[%s10332_s2 + $0x334] sm:$0xf0]  ;;  %v4562_v29 = vor.u32 %v6418_v21, %v4561_v20  ;;  %v4534_v4 = vor.u32 %v6408_v60, %v4531_v61  ;;  %v4371_v15 = vld [vmem:[%s10332_s2 + $0xb8] sm:$0xf0] }
  0x79   :  { %1432 = vmatpush.bf16.msrb.mxu1 %v4322_v13  ;;  %v4433_v26 = vld [vmem:[%s10332_s2 + $0x128] sm:$0xf]  ;;  %v6386_v27 = vld [vmem:[%s10332_s2 + $0x134] sm:$0xf0]  ;;  %1458 = vmatpush.bf16.msrb.mxu0 %v4578_v16  ;;  %v4690_v34 = vor.u32 %v6450_v24, %v4689_v23  ;;  %v4499_v23 = vld [vmem:[%s10332_s2 + $0x1b8] sm:$0xf0]  ;;  %v4374_v24 = vor.u32 %v6368_v14, %v4371_v15 }
  0x7a   :  { %v4289_v28 = vld [vmem:[%s10332_s2 + $0x8] sm:$0xf]  ;;  %v6350_v31 = vld [vmem:[%s10332_s2 + $0x14] sm:$0xf0]  ;;  %v4434_v40 = vor.u32 %v6386_v27, %v4433_v26  ;;  %v6364_v26 = vld [vmem:[%s10332_s2 + $0x8c] sm:$0xf] }
  0x7b   :  { %1444 = vmatpush.bf16.msra.mxu3 %v4466_v10  ;;  %v4913_v32 = vld [vmem:[%s10332_s2 + $0x4e8] sm:$0xf]  ;;  %v6506_v33 = vld [vmem:[%s10332_s2 + $0x4f4] sm:$0xf0]  ;;  %v4290_v44 = vor.u32 %v6350_v31, %v4289_v28  ;;  %v6404_v10 = vld [vmem:[%s10332_s2 + $0x1cc] sm:$0xf] }
  0x7c   :  { %1470 = vmatpush.bf16.msra.mxu2 %v4722_v6  ;;  %v4417_v36 = vld [vmem:[%s10332_s2 + $0x108] sm:$0xf]  ;;  %v6414_v38 = vld [vmem:[%s10332_s2 + $0x214] sm:$0xf0]  ;;  %v4914_v49 = vor.u32 %v6506_v33, %v4913_v32  ;;  %v4518_v17 = vor.u32 %v6404_v10, %v4515_v11  ;;  %v4355_v27 = vld [vmem:[%s10332_s2 + $0x98] sm:$0xf0] }
  0x7d   :  { %v4545_v37 = vld [vmem:[%s10332_s2 + $0x208] sm:$0xf]  ;;  %v6446_v41 = vld [vmem:[%s10332_s2 + $0x314] sm:$0xf0]  ;;  %1433 = vmatpush.bf16.msrb.mxu1 %v4306_v25  ;;  %1459 = vmatpush.bf16.msrb.mxu0 %v4562_v29  ;;  %v4451_v1 = vld [vmem:[%s10332_s2 + $0x158] sm:$0xf0] }
  0x7e   :  { %v4673_v39 = vld [vmem:[%s10332_s2 + $0x308] sm:$0xf]  ;;  %v6542_v43 = vld [vmem:[%s10332_s2 + $0x614] sm:$0xf0]  ;;  %v4546_v50 = vor.u32 %v6414_v38, %v4545_v37  ;;  %v4483_v37 = vld [vmem:[%s10332_s2 + $0x198] sm:$0xf0]  ;;  %v4358_v38 = vor.u32 %v6364_v26, %v4355_v27 }
  0x7f   :  { %1445 = vmatpush.bf16.msra.mxu3 %v4450_v22  ;;  %v5057_v42 = vld [vmem:[%s10332_s2 + $0x608] sm:$0xf]  ;;  %v6382_v46 = vld [vmem:[%s10332_s2 + $0x114] sm:$0xf0]  ;;  %v4674_v56 = vor.u32 %v6446_v41, %v4673_v39  ;;  %v6400_v22 = vld [vmem:[%s10332_s2 + $0x1ac] sm:$0xf] }
  0x80   :  { %1471 = vmatpush.bf16.msra.mxu2 %v4706_v19  ;;  %v5041_v52 = vld [vmem:[%s10332_s2 + $0x5e8] sm:$0xf]  ;;  %v6538_v53 = vld [vmem:[%s10332_s2 + $0x5f4] sm:$0xf0]  ;;  %v5058_v59 = vor.u32 %v6542_v43, %v5057_v42  ;;  %v4418_v62 = vor.u32 %v6382_v46, %v4417_v36  ;;  %v4502_v29 = vor.u32 %v6400_v22, %v4499_v23  ;;  %v6396_v36 = vld [vmem:[%s10332_s2 + $0x18c] sm:$0xf] }
  0x81   :  { %v4897_v54 = vld [vmem:[%s10332_s2 + $0x4c8] sm:$0xf]  ;;  %v6502_v58 = vld [vmem:[%s10332_s2 + $0x4d4] sm:$0xf0]  ;;  %1434 = vmatpush.bf16.msrb.mxu1 %v4290_v44  ;;  %v5042_v0 = vor.u32 %v6538_v53, %v5041_v52  ;;  %1460 = vmatpush.bf16.msrb.mxu0 %v4546_v50  ;;  %v4339_v41 = vld [vmem:[%s10332_s2 + $0x78] sm:$0xf0]  ;;  %v4486_v43 = vor.u32 %v6396_v36, %v4483_v37 }
  0x82   :  { %v4898_v3 = vor.u32 %v6502_v58, %v4897_v54  ;;  %v5025_v5 = vld [vmem:[%s10332_s2 + $0x5c8] sm:$0xf]  ;;  %v6534_v6 = vld [vmem:[%s10332_s2 + $0x5d4] sm:$0xf0]  ;;  %v4467_v50 = vld [vmem:[%s10332_s2 + $0x178] sm:$0xf0] }
  0x83   :  { %1446 = vmatpush.bf16.msra.mxu3 %v4434_v40  ;;  %v4881_v8 = vld [vmem:[%s10332_s2 + $0x4a8] sm:$0xf]  ;;  %v6498_v9 = vld [vmem:[%s10332_s2 + $0x4b4] sm:$0xf0]  ;;  %v5026_v13 = vor.u32 %v6534_v6, %v5025_v5  ;;  %v6360_v40 = vld [vmem:[%s10332_s2 + $0x6c] sm:$0xf] }
  0x84   :  { %1472 = vmatpush.bf16.msra.mxu2 %v4690_v34  ;;  %1461 = vmatmul.bf16.vlgmr.msrb.gmra.mxu0 %v7282_v51  ;;  %v4882_v16 = vor.u32 %v6498_v9, %v4881_v8  ;;  %v5009_v18 = vld [vmem:[%s10332_s2 + $0x5a8] sm:$0xf]  ;;  %v6530_v19 = vld [vmem:[%s10332_s2 + $0x5b4] sm:$0xf0]  ;;  %v4342_v52 = vor.u32 %v6360_v40, %v4339_v41  ;;  %v6356_v54 = vld [vmem:[%s10332_s2 + $0x4c] sm:$0xf] }
  0x85   :  { %1479 = vmatpush.bf16.msra.mxu1 %v4914_v49  ;;  %1512 = vmatpush.bf16.msra.mxu0 %v5058_v59  ;;  %v4865_v20 = vld [vmem:[%s10332_s2 + $0x488] sm:$0xf]  ;;  %v6494_v21 = vld [vmem:[%s10332_s2 + $0x494] sm:$0xf0]  ;;  %v5010_v25 = vor.u32 %v6530_v19, %v5009_v18  ;;  %v6392_v49 = vld [vmem:[%s10332_s2 + $0x16c] sm:$0xf] }
  0x86   :  { %1435 = vmatmul.bf16.vlgmr.msrb.gmra.mxu1 %v7293_v55  ;;  %v4866_v28 = vor.u32 %v6494_v21, %v4865_v20  ;;  %v4993_v31 = vld [vmem:[%s10332_s2 + $0x588] sm:$0xf]  ;;  %v6526_v32 = vld [vmem:[%s10332_s2 + $0x594] sm:$0xf0]  ;;  %v4470_v59 = vor.u32 %v6392_v49, %v4467_v50  ;;  %v4307_v5 = vld [vmem:[%s10332_s2 + $0x38] sm:$0xf0] }
  0x87   :  { %1447 = vmatpush.bf16.msra.mxu3 %v4418_v62  ;;  %v4849_v33 = vld [vmem:[%s10332_s2 + $0x468] sm:$0xf]  ;;  %v6490_v34 = vld [vmem:[%s10332_s2 + $0x474] sm:$0xf0]  ;;  %v4994_v39 = vor.u32 %v6526_v32, %v4993_v31  ;;  %v4435_v14 = vld [vmem:[%s10332_s2 + $0x138] sm:$0xf0] }
  0x88   :  { %1473 = vmatpush.bf16.msra.mxu2 %v4674_v56  ;;  %v4850_v42 = vor.u32 %v6490_v34, %v4849_v33  ;;  %v4977_v44 = vld [vmem:[%s10332_s2 + $0x568] sm:$0xf]  ;;  %v6522_v46 = vld [vmem:[%s10332_s2 + $0x574] sm:$0xf0]  ;;  %v4323_v56 = vld [vmem:[%s10332_s2 + $0x58] sm:$0xf0] }
  0x89   :  { %1480 = vmatpush.bf16.msra.mxu1 %v4898_v3  ;;  %1531 = vmatpush.bf16.msrb.mxu0 %v4534_v4  ;;  %v4833_v47 = vld [vmem:[%s10332_s2 + $0x448] sm:$0xf]  ;;  %v6486_v48 = vld [vmem:[%s10332_s2 + $0x454] sm:$0xf0]  ;;  %v4978_v53 = vor.u32 %v6522_v46, %v4977_v44  ;;  %v4326_v2 = vor.u32 %v6356_v54, %v4323_v56  ;;  %v6352_v4 = vld [vmem:[%s10332_s2 + $0x2c] sm:$0xf] }
  0x8a   :  { %1448 = vmatmul.bf16.vlgmr.msra.gmra.mxu3 %v7326_v7  ;;  %v4834_v58 = vor.u32 %v6486_v48, %v4833_v47  ;;  %v4961_v60 = vld [vmem:[%s10332_s2 + $0x548] sm:$0xf]  ;;  %v6518_v61 = vld [vmem:[%s10332_s2 + $0x554] sm:$0xf0]  ;;  %v4310_v15 = vor.u32 %v6352_v4, %v4307_v5  ;;  %v6348_v20 = vld [vmem:[%s10332_s2 + $0xc] sm:$0xf] }
  0x8b   :  { %1492 = vmatpush.bf16.msrb.mxu3 %v5042_v0  ;;  %1474 = vmatmul.bf16.vlgmr.msra.gmra.mxu2 %v7295_v57  ;;  %v4817_v62 = vld [vmem:[%s10332_s2 + $0x428] sm:$0xf]  ;;  %v6388_v0 = vld [vmem:[%s10332_s2 + $0x14c] sm:$0xf]  ;;  %v4962_v3 = vor.u32 %v6518_v61, %v4961_v60  ;;  %v6514_v10 = vld [vmem:[%s10332_s2 + $0x534] sm:$0xf0] }
  0x8c   :  { %1518 = vmatpush.bf16.msrb.mxu2 %v4406_v63  ;;  %v6482_v63 = vld [vmem:[%s10332_s2 + $0x434] sm:$0xf0]  ;;  %v4454_v8 = vor.u32 %v6388_v0, %v4451_v1  ;;  %v4945_v9 = vld [vmem:[%s10332_s2 + $0x528] sm:$0xf]  ;;  %v4291_v21 = vld [vmem:[%s10332_s2 + $0x18] sm:$0xf0] }
  0x8d   :  { %1481 = vmatpush.bf16.msra.mxu1 %v4882_v16  ;;  %1532 = vmatpush.bf16.msrb.mxu0 %v4518_v17  ;;  %v4818_v6 = vor.u32 %v6482_v63, %v4817_v62  ;;  %v4801_v11 = vld [vmem:[%s10332_s2 + $0x408] sm:$0xf]  ;;  %v6440_v16 = vld [vmem:[%s10332_s2 + $0x2ec] sm:$0xf]  ;;  %v4659_v17 = vld [vmem:[%s10332_s2 + $0x2f8] sm:$0xf0]  ;;  %v4946_v18 = vor.u32 %v6514_v10, %v4945_v9  ;;  %v4294_v32 = vor.u32 %v6348_v20, %v4291_v21 }
  0x8e   :  { %v4929_v19 = vld [vmem:[%s10332_s2 + $0x508] sm:$0xf]  ;;  %v4787_v26 = vld [vmem:[%s10332_s2 + $0x3f8] sm:$0xf0]  ;;  %v4662_v27 = vor.u32 %v6440_v16, %v4659_v17  ;;  %v6436_v31 = vld [vmem:[%s10332_s2 + $0x2cc] sm:$0xf] }
  0x8f   :  { %1493 = vmatpush.bf16.msrb.mxu3 %v5026_v13  ;;  %v6384_v13 = vld [vmem:[%s10332_s2 + $0x12c] sm:$0xf]  ;;  %v4643_v33 = vld [vmem:[%s10332_s2 + $0x2d8] sm:$0xf0] }
  0x90   :  { %1519 = vmatpush.bf16.msrb.mxu2 %v4390_v12  ;;  %v6478_v12 = vld [vmem:[%s10332_s2 + $0x414] sm:$0xf0]  ;;  %v4438_v23 = vor.u32 %v6384_v13, %v4435_v14  ;;  %v6380_v34 = vld [vmem:[%s10332_s2 + $0x10c] sm:$0xf]  ;;  %v4419_v36 = vld [vmem:[%s10332_s2 + $0x118] sm:$0xf0] }
  0x91   :  { %1482 = vmatpush.bf16.msra.mxu1 %v4866_v28  ;;  %1533 = vmatpush.bf16.msrb.mxu0 %v4502_v29  ;;  %v4802_v22 = vor.u32 %v6478_v12, %v4801_v11  ;;  %v6504_v28 = vld [vmem:[%s10332_s2 + $0x4ec] sm:$0xf]  ;;  %v4915_v29 = vld [vmem:[%s10332_s2 + $0x4f8] sm:$0xf0]  ;;  %v4422_v44 = vor.u32 %v6380_v34, %v4419_v36 }
  0x92   :  { %v4918_v41 = vor.u32 %v6504_v28, %v4915_v29  ;;  %v4771_v46 = vld [vmem:[%s10332_s2 + $0x3d8] sm:$0xf0]  ;;  %v6500_v47 = vld [vmem:[%s10332_s2 + $0x4cc] sm:$0xf] }
  0x93   :  { %1494 = vmatpush.bf16.msrb.mxu3 %v5010_v25  ;;  %v6472_v25 = vld [vmem:[%s10332_s2 + $0x3ec] sm:$0xf]  ;;  %v4899_v48 = vld [vmem:[%s10332_s2 + $0x4d8] sm:$0xf0] }
  0x94   :  { %1520 = vmatpush.bf16.msrb.mxu2 %v4374_v24  ;;  %5065 = vmatmul.msk.bf16.vlgmr.msra.gmra.mxu0 %vm1241_vm0, %v7405_v45  ;;  %v6510_v24 = vld [vmem:[%s10332_s2 + $0x514] sm:$0xf0]  ;;  %v4790_v40 = vor.u32 %v6472_v25, %v4787_v26  ;;  %v6432_v50 = vld [vmem:[%s10332_s2 + $0x2ac] sm:$0xf]  ;;  %v5027_v54 = vld [vmem:[%s10332_s2 + $0x5d8] sm:$0xf0] }
  0x95   :  { %1483 = vmatpush.bf16.msra.mxu1 %v4850_v42  ;;  %1534 = vmatpush.bf16.msrb.mxu0 %v4486_v43  ;;  %v4930_v37 = vor.u32 %v6510_v24, %v4929_v19  ;;  %v6468_v42 = vld [vmem:[%s10332_s2 + $0x3cc] sm:$0xf]  ;;  %v4646_v43 = vor.u32 %v6436_v31, %v4643_v33  ;;  %v4755_v61 = vld [vmem:[%s10332_s2 + $0x3b8] sm:$0xf0] }
  0x96   :  { %v4774_v56 = vor.u32 %v6468_v42, %v4771_v46  ;;  %v6496_v62 = vld [vmem:[%s10332_s2 + $0x4ac] sm:$0xf]  ;;  %v4883_v63 = vld [vmem:[%s10332_s2 + $0x4b8] sm:$0xf0] }
  0x97   :  { %1495 = vmatpush.bf16.msrb.mxu3 %v4994_v39  ;;  %v5043_v39 = vld [vmem:[%s10332_s2 + $0x5f8] sm:$0xf0]  ;;  %v6428_v1 = vld [vmem:[%s10332_s2 + $0x28c] sm:$0xf] }
  0x98   :  { %1521 = vmatpush.bf16.msrb.mxu2 %v4358_v38  ;;  %v6536_v38 = vld [vmem:[%s10332_s2 + $0x5ec] sm:$0xf]  ;;  %v5011_v4 = vld [vmem:[%s10332_s2 + $0x5b8] sm:$0xf0] }
  0x99   :  { %1484 = vmatpush.bf16.msra.mxu1 %v4834_v58  ;;  %1535 = vmatpush.bf16.msrb.mxu0 %v4470_v59  ;;  %v5046_v49 = vor.u32 %v6536_v38, %v5043_v39  ;;  %v4902_v58 = vor.u32 %v6500_v47, %v4899_v48  ;;  %v6464_v59 = vld [vmem:[%s10332_s2 + $0x3ac] sm:$0xf]  ;;  %v4867_v11 = vld [vmem:[%s10332_s2 + $0x498] sm:$0xf0] }
  0x9a   :  { %v4758_v5 = vor.u32 %v6464_v59, %v4755_v61  ;;  %v6492_v10 = vld [vmem:[%s10332_s2 + $0x48c] sm:$0xf]  ;;  %v4595_v14 = vld [vmem:[%s10332_s2 + $0x278] sm:$0xf0] }
  0x9b   :  { %1496 = vmatpush.bf16.msrb.mxu3 %v4978_v53  ;;  %v6532_v53 = vld [vmem:[%s10332_s2 + $0x5cc] sm:$0xf]  ;;  %v4723_v21 = vld [vmem:[%s10332_s2 + $0x378] sm:$0xf0] }
  0x9c   :  { %1522 = vmatpush.bf16.msrb.mxu2 %v4342_v52  ;;  %v4627_v52 = vld [vmem:[%s10332_s2 + $0x2b8] sm:$0xf0]  ;;  %v5030_v0 = vor.u32 %v6532_v53, %v5027_v54  ;;  %v6424_v13 = vld [vmem:[%s10332_s2 + $0x26c] sm:$0xf] }
  0x9d   :  { %1485 = vmatpush.bf16.msra.mxu1 %v4818_v6  ;;  %1536 = vmatpush.bf16.msrb.mxu0 %v4454_v8  ;;  %v4630_v60 = vor.u32 %v6432_v50, %v4627_v52  ;;  %v4886_v6 = vor.u32 %v6496_v62, %v4883_v63  ;;  %v6460_v8 = vld [vmem:[%s10332_s2 + $0x38c] sm:$0xf]  ;;  %v4598_v20 = vor.u32 %v6424_v13, %v4595_v14  ;;  %v4979_v29 = vld [vmem:[%s10332_s2 + $0x578] sm:$0xf0]  ;;  %v5125_v13 = vld [vmem:[%s10334_s4 + $0x70] sm:$0xf] }
  0x9e   :  { %v6524_v16 = vld [vmem:[%s10332_s2 + $0x58c] sm:$0xf]  ;;  %v4707_v38 = vld [vmem:[%s10332_s2 + $0x358] sm:$0xf0]  ;;  %v6558_v14 = vld [vmem:[%s10334_s4 + $0x74] sm:$0xf0] }
  0x9f   :  { %1497 = vmatpush.bf16.msrb.mxu3 %v4962_v3  ;;  %v6528_v3 = vld [vmem:[%s10332_s2 + $0x5ac] sm:$0xf]  ;;  %v4963_v47 = vld [vmem:[%s10332_s2 + $0x558] sm:$0xf0] }
  0xa0   :  { %1523 = vmatpush.bf16.msrb.mxu2 %v4326_v2  ;;  %v4611_v2 = vld [vmem:[%s10332_s2 + $0x298] sm:$0xf0]  ;;  %v5014_v12 = vor.u32 %v6528_v3, %v5011_v4  ;;  %v6456_v19 = vld [vmem:[%s10332_s2 + $0x36c] sm:$0xf] }
  0xa1   :  { %1486 = vmatpush.bf16.msra.mxu1 %v4802_v22  ;;  %1537 = vmatpush.bf16.msrb.mxu0 %v4438_v23  ;;  %v4614_v9 = vor.u32 %v6428_v1, %v4611_v2  ;;  %v6488_v22 = vld [vmem:[%s10332_s2 + $0x46c] sm:$0xf]  ;;  %v4851_v23 = vld [vmem:[%s10332_s2 + $0x478] sm:$0xf0]  ;;  %v8197_v25 = vpop.f32.mrf.mxu1  ;;  %v8272_v2 = vld [vmem:[%s10333_s3] sm:$0xf] }
  0xa2   :  { %v6420_v26 = vld [vmem:[%s10332_s2 + $0x24c] sm:$0xf]  ;;  %v4854_v33 = vor.u32 %v6488_v22, %v4851_v23  ;;  %v4691_v53 = vld [vmem:[%s10332_s2 + $0x338] sm:$0xf0]  ;;  %v5126_v23 = vor.u32 %v6558_v14, %v5125_v13  ;;  %v5069_v13 = vld [vmem:[%s10334_s4] sm:$0xf] }
  0xa3   :  { %1498 = vmatpush.bf16.msrb.mxu3 %v4946_v18  ;;  %v4870_v18 = vor.u32 %v6492_v10, %v4867_v11  ;;  %v6520_v28 = vld [vmem:[%s10332_s2 + $0x56c] sm:$0xf]  ;;  %v4947_v63 = vld [vmem:[%s10332_s2 + $0x538] sm:$0xf0]  ;;  %v6544_v14 = vld [vmem:[%s10334_s4 + $0x4] sm:$0xf0] }
  0xa4   :  { %1524 = vmatpush.bf16.msrb.mxu2 %v4310_v15  ;;  %1487 = vmatmul.bf16.vlgmr.msra.gmra.mxu1 %v7496_v30  ;;  %v8177_v15 = vpop.f32.mrf.mxu0  ;;  %v6452_v34 = vld [vmem:[%s10332_s2 + $0x34c] sm:$0xf]  ;;  %v5059_v1 = vld [vmem:[%s10332_s2 + $0x618] sm:$0xf0] }
  0xa5   :  { %1544 = vmatpush.bf16.msrb.mxu1 %v4662_v27  ;;  %1538 = vmatpush.bf16.msrb.mxu0 %v4422_v44  ;;  %v4579_v27 = vld [vmem:[%s10332_s2 + $0x258] sm:$0xf0]  ;;  %v6484_v39 = vld [vmem:[%s10332_s2 + $0x44c] sm:$0xf]  ;;  %v4710_v48 = vor.u32 %v6452_v34, %v4707_v38  ;;  %v5109_v38 = vld [vmem:[%s10334_s4 + $0x50] sm:$0xf] }
  0xa6   :  { %v4582_v36 = vor.u32 %v6420_v26, %v4579_v27  ;;  %v6416_v42 = vld [vmem:[%s10332_s2 + $0x22c] sm:$0xf]  ;;  %v4803_v10 = vld [vmem:[%s10332_s2 + $0x418] sm:$0xf0]  ;;  %v5117_v26 = vld [vmem:[%s10334_s4 + $0x60] sm:$0xf] }
  0xa7   :  { %1499 = vmatpush.bf16.msrb.mxu3 %v4930_v37  ;;  %v6516_v46 = vld [vmem:[%s10332_s2 + $0x54c] sm:$0xf]  ;;  %v6556_v27 = vld [vmem:[%s10334_s4 + $0x64] sm:$0xf0] }
  0xa8   :  { %1525 = vmatpush.bf16.msrb.mxu2 %v4294_v32  ;;  %1539 = vmatmul.bf16.vlgmr.msrb.gmra.mxu0 %v7326_v7  ;;  %v4995_v7 = vld [vmem:[%s10332_s2 + $0x598] sm:$0xf0]  ;;  %v4726_v32 = vor.u32 %v6456_v19, %v4723_v21  ;;  %v6448_v50 = vld [vmem:[%s10332_s2 + $0x32c] sm:$0xf]  ;;  %v6574_v19 = vld [vmem:[%s10334_s4 + $0xf4] sm:$0xf0] }
  0xa9   :  { %1545 = vmatpush.bf16.msrb.mxu1 %v4646_v43  ;;  %1583 = vmatpush.bf16.msra.mxu0 %v5046_v49  ;;  %v4998_v24 = vor.u32 %v6524_v16, %v4995_v7  ;;  %v8211_v31 = vpop.f32.mrf.mxu2  ;;  %v8216_v37 = vpop.f32.mrf.mxu3  ;;  %v4563_v43 = vld [vmem:[%s10332_s2 + $0x238] sm:$0xf0]  ;;  %v6480_v54 = vld [vmem:[%s10332_s2 + $0x42c] sm:$0xf]  ;;  %v4694_v4 = vor.u32 %v6448_v50, %v4691_v53  ;;  %v5093_v50 = vld [vmem:[%s10334_s4 + $0x30] sm:$0xf] }
  0xaa   :  { %1500 = vmatmul.bf16.vlgmr.msrb.gmra.mxu3 %v7507_v35  ;;  %v4566_v52 = vor.u32 %v6416_v42, %v4563_v43  ;;  %v6412_v59 = vld [vmem:[%s10332_s2 + $0x20c] sm:$0xf]  ;;  %v1269_v62 = vpop.f32.mrf.mxu1  ;;  %v6552_v43 = vld [vmem:[%s10334_s4 + $0x44] sm:$0xf0] }
  0xab   :  { %1557 = vmatpush.bf16.msra.mxu3 %v4790_v40  ;;  %1526 = vmatmul.bf16.vlgmr.msrb.gmra.mxu2 %v7293_v55  ;;  %v4739_v55 = vld [vmem:[%s10332_s2 + $0x398] sm:$0xf0]  ;;  %v6512_v61 = vld [vmem:[%s10332_s2 + $0x52c] sm:$0xf] }
  0xac   :  { %1570 = vmatpush.bf16.msra.mxu2 %v4918_v41  ;;  %v4742_v17 = vor.u32 %v6460_v8, %v4739_v55  ;;  %v4835_v40 = vld [vmem:[%s10332_s2 + $0x458] sm:$0xf0]  ;;  %v4982_v41 = vor.u32 %v6520_v28, %v4979_v29  ;;  %v1256_v44 = vpop.f32.mrf.mxu0  ;;  %v6476_v55 = vld [vmem:[%s10332_s2 + $0x40c] sm:$0xf]  ;;  %v5181_v29 = vld [vmem:[%s10334_s4 + $0xe0] sm:$0xf] }
  0xad   :  { %1546 = vmatpush.bf16.msrb.mxu1 %v4630_v60  ;;  %1584 = vmatpush.bf16.msra.mxu0 %v5030_v0  ;;  %v4838_v49 = vor.u32 %v6484_v39, %v4835_v40  ;;  %v4547_v60 = vld [vmem:[%s10332_s2 + $0x218] sm:$0xf0]  ;;  %v6540_v0 = vld [vmem:[%s10332_s2 + $0x60c] sm:$0xf]  ;;  %v4806_v22 = vor.u32 %v6476_v55, %v4803_v10  ;;  %v6554_v39 = vld [vmem:[%s10334_s4 + $0x54] sm:$0xf0] }
  0xae   :  { %v4550_v8 = vor.u32 %v6412_v59, %v4547_v60  ;;  %v6508_v16 = vld [vmem:[%s10332_s2 + $0x50c] sm:$0xf]  ;;  %v5062_v7 = vor.u32 %v6540_v0, %v5059_v1  ;;  %v5110_v42 = vor.u32 %v6554_v39, %v5109_v38  ;;  %v5085_v60 = vld [vmem:[%s10334_s4 + $0x20] sm:$0xf]  ;;  %v6564_v1 = vld [vmem:[%s10334_s4 + $0xa4] sm:$0xf0] }
  0xaf   :  { %1558 = vmatpush.bf16.msra.mxu3 %v4774_v56  ;;  %v4819_v56 = vld [vmem:[%s10332_s2 + $0x438] sm:$0xf0]  ;;  %v6562_v10 = vld [vmem:[%s10334_s4 + $0x94] sm:$0xf0] }
  0xb0   :  { %1571 = vmatpush.bf16.msra.mxu2 %v4902_v58  ;;  %v4966_v58 = vor.u32 %v6516_v46, %v4963_v47 }
  0xb1   :  { %1547 = vmatpush.bf16.msrb.mxu1 %v4614_v9  ;;  %1585 = vmatpush.bf16.msra.mxu0 %v5014_v12  ;;  %v1282_v3 = vpop.f32.mrf.mxu2  ;;  %v4675_v9 = vld [vmem:[%s10332_s2 + $0x318] sm:$0xf0]  ;;  %v1295_v11 = vpop.f32.mrf.mxu3  ;;  %v4950_v12 = vor.u32 %v6512_v61, %v4947_v63  ;;  %v6548_v61 = vld [vmem:[%s10334_s4 + $0x24] sm:$0xf0] }
  0xb3   :  { %1559 = vmatpush.bf16.msra.mxu3 %v4758_v5  ;;  %v4822_v5 = vor.u32 %v6480_v54, %v4819_v56  ;;  %v5157_v54 = vld [vmem:[%s10334_s4 + $0xb0] sm:$0xf] }
  0xb4   :  { %1572 = vmatpush.bf16.msra.mxu2 %v4886_v6  ;;  %v6444_v6 = vld [vmem:[%s10332_s2 + $0x30c] sm:$0xf] }
  0xb5   :  { %1548 = vmatpush.bf16.msrb.mxu1 %v4598_v20  ;;  %1586 = vmatpush.bf16.msra.mxu0 %v4998_v24  ;;  %v253_v20 = vperm.slane %v8272_v2, 0  ;;  %v4678_v21 = vor.u32 %v6444_v6, %v4675_v9  ;;  %v6546_v9 = vld [vmem:[%s10334_s4 + $0x14] sm:$0xf0] }
  0xb7   :  { %1560 = vmatpush.bf16.msra.mxu3 %v4742_v17  ;;  %v4931_v17 = vld [vmem:[%s10332_s2 + $0x518] sm:$0xf0] }
  0xb8   :  { %1573 = vmatpush.bf16.msra.mxu2 %v4870_v18  ;;  %v5189_v18 = vld [vmem:[%s10334_s4 + $0xf0] sm:$0xf]  ;;  %v4934_v24 = vor.u32 %v6508_v16, %v4931_v17  ;;  %v6557_v16 = vld [vmem:[%s10334_s4 + $0x74] sm:$0xf] }
  0xb9   :  { %1549 = vmatpush.bf16.msrb.mxu1 %v4582_v36  ;;  %1587 = vmatpush.bf16.msra.mxu0 %v4982_v41  ;;  %v5190_v28 = vor.u32 %v6574_v19, %v5189_v18  ;;  %v1332_v34 = vpop.f32.mrf.mxu2  ;;  %v5118_v36 = vor.u32 %v6556_v27, %v5117_v26  ;;  %v5127_v18 = vld [vmem:[%s10334_s4 + $0x78] sm:$0xf0]  ;;  %v5133_v19 = vld [vmem:[%s10334_s4 + $0x80] sm:$0xf] }
  0xba   :  { %v5130_v27 = vor.u32 %v6557_v16, %v5127_v18  ;;  %v5079_v16 = vld [vmem:[%s10334_s4 + $0x18] sm:$0xf0]  ;;  %v6561_v18 = vld [vmem:[%s10334_s4 + $0x94] sm:$0xf] }
  0xbb   :  { %1561 = vmatpush.bf16.msra.mxu3 %v4726_v32  ;;  %v6572_v32 = vld [vmem:[%s10334_s4 + $0xe4] sm:$0xf0] }
  0xbc   :  { %1574 = vmatpush.bf16.msra.mxu2 %v4854_v33  ;;  %v1255_v33 = vadd.f32 %v8177_v15, %v253_v20  ;;  %v5182_v40 = vor.u32 %v6572_v32, %v5181_v29  ;;  %v6570_v15 = vld [vmem:[%s10334_s4 + $0xd4] sm:$0xf0]  ;;  %v6560_v20 = vld [vmem:[%s10334_s4 + $0x84] sm:$0xf0]  ;;  %v6555_v29 = vld [vmem:[%s10334_s4 + $0x64] sm:$0xf] }
  0xbd   :  { %1550 = vmatpush.bf16.msrb.mxu1 %v4566_v52  ;;  %1588 = vmatpush.bf16.msra.mxu0 %v4966_v58  ;;  %v6550_v52 = vld [vmem:[%s10334_s4 + $0x34] sm:$0xf0]  ;;  %v5119_v32 = vld [vmem:[%s10334_s4 + $0x68] sm:$0xf0] }
  0xbe   :  { %v1268_v41 = vadd.f32 %v8197_v25, %v1255_v33  ;;  %v5165_v25 = vld [vmem:[%s10334_s4 + $0xc0] sm:$0xf]  ;;  %v5094_v58 = vor.u32 %v6550_v52, %v5093_v50  ;;  %v5122_v39 = vor.u32 %v6555_v29, %v5119_v32  ;;  %v6588_v52 = vld [vmem:[%s10334_s4 + $0x164] sm:$0xf0]  ;;  %v5221_v29 = vld [vmem:[%s10334_s4 + $0x130] sm:$0xf] }
  0xbf   :  { %1562 = vmatpush.bf16.msra.mxu3 %v4710_v48  ;;  %v5245_v50 = vld [vmem:[%s10334_s4 + $0x160] sm:$0xf]  ;;  %v6582_v32 = vld [vmem:[%s10334_s4 + $0x134] sm:$0xf0] }
  0xc0   :  { %1575 = vmatpush.bf16.msra.mxu2 %v4838_v49  ;;  %v1306_v46 = vpop.f32.mrf.mxu0 }
  0xc1   :  { %1551 = vmatpush.bf16.msrb.mxu1 %v4550_v8  ;;  %1589 = vmatpush.bf16.msra.mxu0 %v4950_v12  ;;  %v1334_v48 = vpop.f32.mrf.mxu2  ;;  %v5077_v8 = vld [vmem:[%s10334_s4 + $0x10] sm:$0xf] }
  0xc2   :  { %v5078_v11 = vor.u32 %v6546_v9, %v5077_v8  ;;  %v5237_v9 = vld [vmem:[%s10334_s4 + $0x150] sm:$0xf] }
  0xc3   :  { %1563 = vmatpush.bf16.msra.mxu3 %v4694_v4  ;;  %v1319_v47 = vpop.f32.mrf.mxu1  ;;  %v5086_v4 = vor.u32 %v6548_v61, %v5085_v60  ;;  %v5246_v60 = vor.u32 %v6588_v52, %v5245_v50  ;;  %v6565_v61 = vld [vmem:[%s10334_s4 + $0xb4] sm:$0xf]  ;;  %v6576_v50 = vld [vmem:[%s10334_s4 + $0x104] sm:$0xf0] }
  0xc4   :  { %1576 = vmatpush.bf16.msra.mxu2 %v4822_v5  ;;  %1552 = vmatmul.bf16.vlgmr.msrb.gmra.mxu1 %v7282_v51  ;;  %v5173_v51 = vld [vmem:[%s10334_s4 + $0xd0] sm:$0xf] }
  0xc5   :  { %1603 = vmatpush.bf16.msra.mxu1 %v5062_v7  ;;  %1590 = vmatpush.bf16.msra.mxu0 %v4934_v24  ;;  %v5174_v44 = vor.u32 %v6570_v15, %v5173_v51  ;;  %v5111_v51 = vld [vmem:[%s10334_s4 + $0x58] sm:$0xf0] }
  0xc7   :  { %1564 = vmatpush.bf16.msra.mxu3 %v4678_v21  ;;  %v6573_v21 = vld [vmem:[%s10334_s4 + $0xf4] sm:$0xf] }
  0xc8   :  { %1577 = vmatpush.bf16.msra.mxu2 %v4806_v22  ;;  %1591 = vmatmul.bf16.vlgmr.msra.gmra.mxu0 %v7507_v35  ;;  %v1281_v35 = vadd.f32 %v8211_v31, %v1268_v41  ;;  %v6566_v31 = vld [vmem:[%s10334_s4 + $0xb4] sm:$0xf0]  ;;  %v1308_v0 = vpop.f32.mrf.mxu0  ;;  %v5191_v22 = vld [vmem:[%s10334_s4 + $0xf8] sm:$0xf0]  ;;  %v6569_v41 = vld [vmem:[%s10334_s4 + $0xd4] sm:$0xf] }
  0xc9   :  { %2020 = vmatpush.bf16.msrb.mxu1 %v5190_v28  ;;  %v5158_v62 = vor.u32 %v6566_v31, %v5157_v54  ;;  %v8367_v63 = vpop.f32.mrf.mxu3  ;;  %v5134_v28 = vor.u32 %v6560_v20, %v5133_v19  ;;  %v5194_v33 = vor.u32 %v6573_v21, %v5191_v22  ;;  %v254_v54 = vperm.slane %v8272_v2, 1  ;;  %v5229_v19 = vld [vmem:[%s10334_s4 + $0x140] sm:$0xf]  ;;  %v6584_v20 = vld [vmem:[%s10334_s4 + $0x144] sm:$0xf0] }
  0xca   :  { %1565 = vmatmul.bf16.vlgmr.msra.gmra.mxu3 %v7295_v57  ;;  %v5101_v57 = vld [vmem:[%s10334_s4 + $0x40] sm:$0xf]  ;;  %v1294_v56 = vadd.f32 %v8216_v37, %v1281_v35  ;;  %v5253_v35 = vld [vmem:[%s10334_s4 + $0x170] sm:$0xf]  ;;  %v5230_v22 = vor.u32 %v6584_v20, %v5229_v19 }
  0xcb   :  { %2007 = vmatpush.bf16.msrb.mxu3 %v5126_v23  ;;  %1578 = vmatmul.bf16.vlgmr.msra.gmra.mxu2 %v7496_v30  ;;  %v6568_v30 = vld [vmem:[%s10334_s4 + $0xc4] sm:$0xf0]  ;;  %v5102_v49 = vor.u32 %v6552_v43, %v5101_v57  ;;  %v5149_v37 = vld [vmem:[%s10334_s4 + $0xa0] sm:$0xf]  ;;  %v1321_v3 = vpop.f32.mrf.mxu1  ;;  %v5070_v23 = vor.u32 %v6544_v14, %v5069_v13  ;;  %v6551_v43 = vld [vmem:[%s10334_s4 + $0x44] sm:$0xf] }
  0xcc   :  { %v5166_v53 = vor.u32 %v6568_v30, %v5165_v25  ;;  %v1307_v59 = vadd.f32 %v1306_v46, %v1294_v56  ;;  %v5150_v55 = vor.u32 %v6564_v1, %v5149_v37  ;;  %v6567_v25 = vld [vmem:[%s10334_s4 + $0xc4] sm:$0xf]  ;;  %v5167_v30 = vld [vmem:[%s10334_s4 + $0xc8] sm:$0xf0]  ;;  %v6549_v56 = vld [vmem:[%s10334_s4 + $0x34] sm:$0xf]  ;;  %v1346_v37 = vadd.f32 %v8367_v63, %v254_v54 }
  0xcd   :  { %2021 = vmatpush.bf16.msrb.mxu1 %v5182_v40  ;;  %v6553_v40 = vld [vmem:[%s10334_s4 + $0x54] sm:$0xf]  ;;  %v6547_v1 = vld [vmem:[%s10334_s4 + $0x24] sm:$0xf]  ;;  %v5087_v3 = vld [vmem:[%s10334_s4 + $0x28] sm:$0xf0] }
  0xce   :  { %v8377_v5 = vpop.f32.mrf.mxu2  ;;  %v1320_v6 = vadd.f32 %v1319_v47, %v1307_v59  ;;  %v5114_v57 = vor.u32 %v6553_v40, %v5111_v51  ;;  %v6590_v47 = vld [vmem:[%s10334_s4 + $0x174] sm:$0xf0]  ;;  %v5170_v59 = vor.u32 %v6567_v25, %v5167_v30  ;;  %v5151_v63 = vld [vmem:[%s10334_s4 + $0xa8] sm:$0xf0]  ;;  %v6545_v14 = vld [vmem:[%s10334_s4 + $0x14] sm:$0xf] }
  0xcf   :  { %2008 = vmatpush.bf16.msrb.mxu3 %v5118_v36  ;;  %v5183_v36 = vld [vmem:[%s10334_s4 + $0xe8] sm:$0xf0]  ;;  %v1359_v13 = vadd.f32 %v8377_v5, %v1346_v37  ;;  %v5143_v5 = vld [vmem:[%s10334_s4 + $0x98] sm:$0xf0]  ;;  %v6580_v40 = vld [vmem:[%s10334_s4 + $0x124] sm:$0xf0] }
  0xd0   :  { %v1333_v12 = vadd.f32 %v1332_v34, %v1320_v6  ;;  %v6571_v34 = vld [vmem:[%s10334_s4 + $0xe4] sm:$0xf]  ;;  %v6589_v54 = vld [vmem:[%s10334_s4 + $0x174] sm:$0xf]  ;;  %v5293_v20 = vld [vmem:[%s10334_s4 + $0x1c0] sm:$0xf] }
  0xd1   :  { %2022 = vmatpush.bf16.msrb.mxu1 %v5174_v44  ;;  %v1347_v17 = vpop.f32.mrf.mxu3  ;;  %v5186_v15 = vor.u32 %v6571_v34, %v5183_v36  ;;  %v5103_v44 = vld [vmem:[%s10334_s4 + $0x48] sm:$0xf0]  ;;  %v6563_v6 = vld [vmem:[%s10334_s4 + $0xa4] sm:$0xf]  ;;  %v5222_v36 = vor.u32 %v6582_v32, %v5221_v29 }
  0xd2   :  { %v1609_v26 = vmax.f32 %v1333_v12, 0.0  ;;  %v5090_v12 = vor.u32 %v6547_v1, %v5087_v3  ;;  %v5154_v17 = vor.u32 %v6563_v6, %v5151_v63  ;;  %v5135_v34 = vld [vmem:[%s10334_s4 + $0x88] sm:$0xf0]  ;;  %v6585_v3 = vld [vmem:[%s10334_s4 + $0x154] sm:$0xf] }
  0xd3   :  { %2009 = vmatpush.bf16.msrb.mxu3 %v5110_v42  ;;  %v5175_v42 = vld [vmem:[%s10334_s4 + $0xd8] sm:$0xf0]  ;;  %v6604_v63 = vld [vmem:[%s10334_s4 + $0x1e4] sm:$0xf0] }
  0xd4   :  { %5066 = vmatmul.msk.bf16.vlgmr.msra.gmra.mxu1 %vm1241_vm0, %v7405_v45  ;;  %v5141_v45 = vld [vmem:[%s10334_s4 + $0x90] sm:$0xf]  ;;  %v8427_v38 = vpack.c.bf16 %v1609_v26, %v1609_v26  ;;  %v5178_v46 = vor.u32 %v6569_v41, %v5175_v42  ;;  %v5071_v26 = vld [vmem:[%s10334_s4 + $0x8] sm:$0xf0] }
  0xd5   :  { %2023 = vmatpush.bf16.msrb.mxu1 %v5166_v53  ;;  %v5142_v7 = vor.u32 %v6562_v10, %v5141_v45  ;;  %v5106_v53 = vor.u32 %v6551_v43, %v5103_v44  ;;  %v5205_v44 = vld [vmem:[%s10334_s4 + $0x110] sm:$0xf] }
  0xd6   :  { %v1360_v24 = vpop.f32.mrf.mxu2 }
  0xd7   :  { %2010 = vmatpush.bf16.msrb.mxu3 %v5102_v49  ;;  %v5254_v49 = vor.u32 %v6590_v47, %v5253_v35  ;;  %v6543_v24 = vld [vmem:[%s10334_s4 + $0x4] sm:$0xf] }
  0xd9   :  { %2024 = vmatpush.bf16.msrb.mxu1 %v5158_v62  ;;  %2033 = vmatpush.bf16.msrb.mxu2 %v5254_v49  ;;  %v5159_v62 = vld [vmem:[%s10334_s4 + $0xb8] sm:$0xf0]  ;;  %v5197_v49 = vld [vmem:[%s10334_s4 + $0x100] sm:$0xf] }
  0xdb   :  { %2011 = vmatpush.bf16.msrb.mxu3 %v5094_v58  ;;  %v5095_v58 = vld [vmem:[%s10334_s4 + $0x38] sm:$0xf0] }
  0xdc   :  { %v5098_v0 = vor.u32 %v6549_v56, %v5095_v58  ;;  %v5247_v58 = vld [vmem:[%s10334_s4 + $0x168] sm:$0xf0] }
  0xdd   :  { %2025 = vmatpush.bf16.msrb.mxu1 %v5150_v55  ;;  %2034 = vmatpush.bf16.msrb.mxu2 %v5246_v60  ;;  %v6586_v55 = vld [vmem:[%s10334_s4 + $0x154] sm:$0xf0] }
  0xde   :  { %v5238_v10 = vor.u32 %v6586_v55, %v5237_v9  ;;  %v6606_v60 = vld [vmem:[%s10334_s4 + $0x1f4] sm:$0xf0] }
  0xdf   :  { %2012 = vmatpush.bf16.msrb.mxu3 %v5086_v4  ;;  %v5162_v4 = vor.u32 %v6565_v61, %v5159_v62 }
  0xe1   :  { %2026 = vmatpush.bf16.msrb.mxu1 %v5142_v7  ;;  %v1371_v48 = vpop.f32.mrf.mxu0  ;;  %2035 = vmatpush.bf16.msrb.mxu2 %v5238_v10  ;;  %v6583_v10 = vld [vmem:[%s10334_s4 + $0x144] sm:$0xf] }
  0xe2   :  { %v1372_v21 = vadd.f32 %v1371_v48, %v1359_v13 }
  0xe3   :  { %2013 = vmatpush.bf16.msrb.mxu3 %v5078_v11  ;;  %v1384_v31 = vpop.f32.mrf.mxu1 }
  0xe4   :  { %v1385_v51 = vadd.f32 %v1384_v31, %v1372_v21  ;;  %v6587_v31 = vld [vmem:[%s10334_s4 + $0x164] sm:$0xf]  ;;  %v6600_v21 = vld [vmem:[%s10334_s4 + $0x1c4] sm:$0xf0] }
  0xe5   :  { %2027 = vmatpush.bf16.msrb.mxu1 %v5134_v28  ;;  %v6559_v28 = vld [vmem:[%s10334_s4 + $0x84] sm:$0xf]  ;;  %2036 = vmatpush.bf16.msrb.mxu2 %v5230_v22  ;;  %v5250_v37 = vor.u32 %v6587_v31, %v5247_v58  ;;  %v5319_v31 = vld [vmem:[%s10334_s4 + $0x1f8] sm:$0xf0] }
  0xe6   :  { %v6579_v22 = vld [vmem:[%s10334_s4 + $0x124] sm:$0xf] }
  0xe7   :  { %2014 = vmatpush.bf16.msrb.mxu3 %v5070_v23  ;;  %v5082_v23 = vor.u32 %v6545_v14, %v5079_v16  ;;  %v5301_v16 = vld [vmem:[%s10334_s4 + $0x1d0] sm:$0xf] }
  0xe9   :  { %2072 = vmatpush.bf16.msra.mxu1 %v5194_v33  ;;  %v1397_v8 = vpop.f32.mrf.mxu3  ;;  %v1373_v45 = vpop.f32.mrf.mxu0  ;;  %2037 = vmatpush.bf16.msrb.mxu2 %v5222_v36  ;;  %v5207_v36 = vld [vmem:[%s10334_s4 + $0x118] sm:$0xf0] }
  0xea   :  { %2015 = vmatmul.bf16.vlgmr.msrb.gmra.mxu3 %v8427_v38  ;;  %v1398_v42 = vadd.f32 %v1397_v8, %v1385_v51  ;;  %v5309_v8 = vld [vmem:[%s10334_s4 + $0x1e0] sm:$0xf] }
  0xeb   :  { %2059 = vmatpush.bf16.msra.mxu3 %v5130_v27  ;;  %v1386_v7 = vpop.f32.mrf.mxu1  ;;  %v5146_v27 = vor.u32 %v6561_v18, %v5143_v5  ;;  %v5310_v9 = vor.u32 %v6604_v63, %v5309_v8  ;;  %v6581_v18 = vld [vmem:[%s10334_s4 + $0x134] sm:$0xf]  ;;  %v5223_v5 = vld [vmem:[%s10334_s4 + $0x138] sm:$0xf0]  ;;  %v5277_v51 = vld [vmem:[%s10334_s4 + $0x1a0] sm:$0xf] }
  0xec   :  { %v6602_v7 = vld [vmem:[%s10334_s4 + $0x1d4] sm:$0xf0]  ;;  %v5226_v19 = vor.u32 %v6581_v18, %v5223_v5  ;;  %v5303_v8 = vld [vmem:[%s10334_s4 + $0x1d8] sm:$0xf0]  ;;  %v6595_v5 = vld [vmem:[%s10334_s4 + $0x1a4] sm:$0xf] }
  0xed   :  { %2073 = vmatpush.bf16.msra.mxu1 %v5186_v15  ;;  %v5074_v15 = vor.u32 %v6543_v24, %v5071_v26  ;;  %v5215_v24 = vld [vmem:[%s10334_s4 + $0x128] sm:$0xf0]  ;;  %v5285_v26 = vld [vmem:[%s10334_s4 + $0x1b0] sm:$0xf] }
  0xee   :  { %v1410_v11 = vpop.f32.mrf.mxu2  ;;  %v5218_v32 = vor.u32 %v6579_v22, %v5215_v24  ;;  %v5271_v22 = vld [vmem:[%s10334_s4 + $0x198] sm:$0xf0] }
  0xef   :  { %2060 = vmatpush.bf16.msra.mxu3 %v5122_v39  ;;  %v5213_v39 = vld [vmem:[%s10334_s4 + $0x120] sm:$0xf]  ;;  %v1411_v25 = vadd.f32 %v1410_v11, %v1398_v42  ;;  %v5231_v11 = vld [vmem:[%s10334_s4 + $0x148] sm:$0xf0] }
  0xf0   :  { %v5214_v43 = vor.u32 %v6580_v40, %v5213_v39  ;;  %v5234_v14 = vor.u32 %v6583_v10, %v5231_v11  ;;  %v255_v39 = vperm.slane %v8272_v2, 2  ;;  %v6599_v10 = vld [vmem:[%s10334_s4 + $0x1c4] sm:$0xf]  ;;  %v5295_v11 = vld [vmem:[%s10334_s4 + $0x1c8] sm:$0xf0] }
  0xf1   :  { %2074 = vmatpush.bf16.msra.mxu1 %v5178_v46  ;;  %v1399_v33 = vpop.f32.mrf.mxu3  ;;  %v6578_v46 = vld [vmem:[%s10334_s4 + $0x114] sm:$0xf0] }
  0xf2   :  { %2038 = vmatpush.bf16.msrb.mxu2 %v5214_v43  ;;  %v5206_v30 = vor.u32 %v6578_v46, %v5205_v44  ;;  %v6575_v44 = vld [vmem:[%s10334_s4 + $0x104] sm:$0xf]  ;;  %v5199_v46 = vld [vmem:[%s10334_s4 + $0x108] sm:$0xf0] }
  0xf3   :  { %2061 = vmatpush.bf16.msra.mxu3 %v5114_v57  ;;  %v5138_v57 = vor.u32 %v6559_v28, %v5135_v34  ;;  %v6577_v34 = vld [vmem:[%s10334_s4 + $0x114] sm:$0xf] }
  0xf5   :  { %2075 = vmatpush.bf16.msra.mxu1 %v5170_v59  ;;  %v5317_v59 = vld [vmem:[%s10334_s4 + $0x1f0] sm:$0xf] }
  0xf6   :  { %v1412_v41 = vpop.f32.mrf.mxu2  ;;  %2039 = vmatpush.bf16.msrb.mxu2 %v5206_v30  ;;  %v5318_v61 = vor.u32 %v6606_v60, %v5317_v59  ;;  %v5202_v30 = vor.u32 %v6575_v44, %v5199_v46  ;;  %v6603_v60 = vld [vmem:[%s10334_s4 + $0x1e4] sm:$0xf] }
  0xf7   :  { %2062 = vmatpush.bf16.msra.mxu3 %v5106_v53  ;;  %v5198_v53 = vor.u32 %v6576_v50, %v5197_v49  ;;  %v5210_v41 = vor.u32 %v6577_v34, %v5207_v36 }
  0xf8   :  { %2046 = vmatpush.bf16.msrb.mxu0 %v5318_v61  ;;  %v5311_v61 = vld [vmem:[%s10334_s4 + $0x1e8] sm:$0xf0] }
  0xf9   :  { %2076 = vmatpush.bf16.msra.mxu1 %v5162_v4  ;;  %v1423_v35 = vpop.f32.mrf.mxu3  ;;  %v5239_v4 = vld [vmem:[%s10334_s4 + $0x158] sm:$0xf0] }
  0xfa   :  { %v1424_v47 = vadd.f32 %v1423_v35, %v1411_v25  ;;  %2040 = vmatpush.bf16.msrb.mxu2 %v5198_v53  ;;  %v5242_v6 = vor.u32 %v6585_v3, %v5239_v4  ;;  %v5269_v35 = vld [vmem:[%s10334_s4 + $0x190] sm:$0xf]  ;;  %v6592_v53 = vld [vmem:[%s10334_s4 + $0x184] sm:$0xf0] }
  0xfb   :  { %2063 = vmatpush.bf16.msra.mxu3 %v5098_v0 }
  0xfc   :  { %v1610_v48 = vmax.f32 %v1424_v47, 0.0  ;;  %2047 = vmatpush.bf16.msrb.mxu0 %v5310_v9  ;;  %v6594_v47 = vld [vmem:[%s10334_s4 + $0x194] sm:$0xf0] }
  0xfd   :  { %2077 = vmatpush.bf16.msra.mxu1 %v5154_v17  ;;  %v5302_v17 = vor.u32 %v6602_v7, %v5301_v16  ;;  %v6597_v7 = vld [vmem:[%s10334_s4 + $0x1b4] sm:$0xf] }
  0xfe   :  { %v1614_v52 = vpack.c.bf16 %v1610_v48, %v1610_v48  ;;  %v5270_v48 = vor.u32 %v6594_v47, %v5269_v35 }
  0xff   :  { %2064 = vmatpush.bf16.msra.mxu3 %v5090_v12 }
 0x100   :  { %2028 = vmatmul.bf16.vlgmr.msrb.gmra.mxu1 %v1614_v52  ;;  %2048 = vmatpush.bf16.msrb.mxu0 %v5302_v17  ;;  %v5287_v17 = vld [vmem:[%s10334_s4 + $0x1b8] sm:$0xf0] }
 0x101   :  { %2078 = vmatpush.bf16.msra.mxu1 %v5146_v27  ;;  %v1425_v62 = vpop.f32.mrf.mxu3  ;;  %v8572_v0 = vpop.f32.mrf.mxu0  ;;  %v6598_v27 = vld [vmem:[%s10334_s4 + $0x1b4] sm:$0xf0]  ;;  %v5290_v18 = vor.u32 %v6597_v7, %v5287_v17  ;;  %v5423_v17 = vld [vmem:[%s10336_s6 + $0xd0] sm:$0xf0] }
 0x102   :  { %v5286_v33 = vor.u32 %v6598_v27, %v5285_v26  ;;  %v6591_v26 = vld [vmem:[%s10334_s4 + $0x184] sm:$0xf]  ;;  %v5263_v27 = vld [vmem:[%s10334_s4 + $0x188] sm:$0xf0] }
 0x103   :  { %2065 = vmatpush.bf16.msra.mxu3 %v5082_v23  ;;  %v1436_v1 = vpop.f32.mrf.mxu1  ;;  %v5294_v23 = vor.u32 %v6600_v21, %v5293_v20  ;;  %v6593_v21 = vld [vmem:[%s10334_s4 + $0x194] sm:$0xf] }
 0x104   :  { %v5274_v24 = vor.u32 %v6593_v21, %v5271_v22  ;;  %v6632_v21 = vld [vmem:[%s10336_s6 + $0xcc] sm:$0xf]  ;;  %v5431_v22 = vld [vmem:[%s10336_s6 + $0xd8] sm:$0xf0] }
 0x105   :  { %2079 = vmatpush.bf16.msra.mxu1 %v5138_v57  ;;  %2049 = vmatpush.bf16.msrb.mxu0 %v5294_v23  ;;  %v1437_v57 = vadd.f32 %v1436_v1, %v255_v39  ;;  %v256_v23 = vperm.slane %v8272_v2, 3 }
 0x107   :  { %2066 = vmatpush.bf16.msra.mxu3 %v5074_v15  ;;  %v6596_v15 = vld [vmem:[%s10334_s4 + $0x1a4] sm:$0xf0] }
 0x108   :  { %v5278_v42 = vor.u32 %v6596_v15, %v5277_v51 }
 0x109   :  { %v1464_v45 = vpop.f32.mrf.mxu0  ;;  %2050 = vmatpush.bf16.msrb.mxu0 %v5286_v33 }
 0x10a   :  { %2067 = vmatmul.bf16.vlgmr.msra.gmra.mxu3 %v8427_v38  ;;  %v5255_v38 = vld [vmem:[%s10334_s4 + $0x178] sm:$0xf0] }
 0x10b   :  { %v5258_v56 = vor.u32 %v6589_v54, %v5255_v38  ;;  %v1438_v13 = vpop.f32.mrf.mxu1  ;;  %v6605_v38 = vld [vmem:[%s10334_s4 + $0x1f4] sm:$0xf] }
 0x10c   :  { %v5298_v13 = vor.u32 %v6599_v10, %v5295_v11  ;;  %v5447_v10 = vld [vmem:[%s10336_s6 + $0xf8] sm:$0xf0] }
 0x10d   :  { %2085 = vmatpush.bf16.msra.mxu2 %v5258_v56  ;;  %v1449_v55 = vpop.f32.mrf.mxu3  ;;  %2051 = vmatpush.bf16.msrb.mxu0 %v5278_v42  ;;  %v5322_v56 = vor.u32 %v6605_v38, %v5319_v31 }
 0x10e   :  { %v1475_v12 = vpop.f32.mrf.mxu2  ;;  %v1450_v25 = vadd.f32 %v1449_v55, %v1437_v57 }
 0x110   :  { %2080 = vmatmul.bf16.vlgmr.msra.gmra.mxu1 %v1614_v52  ;;  %v1463_v50 = vadd.f32 %v8572_v0, %v1450_v25  ;;  %v5261_v52 = vld [vmem:[%s10334_s4 + $0x180] sm:$0xf] }
 0x111   :  { %2086 = vmatpush.bf16.msra.mxu2 %v5250_v37  ;;  %v1514_v29 = vpop.f32.mrf.mxu0  ;;  %2052 = vmatpush.bf16.msrb.mxu0 %v5270_v48  ;;  %v5262_v54 = vor.u32 %v6592_v53, %v5261_v52  ;;  %v5314_v37 = vor.u32 %v6603_v60, %v5311_v61 }
 0x112   :  { %v1476_v58 = vadd.f32 %v1475_v12, %v1463_v50 }
 0x115   :  { %2087 = vmatpush.bf16.msra.mxu2 %v5242_v6  ;;  %v1451_v28 = vpop.f32.mrf.mxu3  ;;  %2053 = vmatpush.bf16.msrb.mxu0 %v5262_v54  ;;  %v6601_v6 = vld [vmem:[%s10334_s4 + $0x1d4] sm:$0xf] }
 0x116   :  { %v1477_v40 = vpop.f32.mrf.mxu2  ;;  %v5306_v9 = vor.u32 %v6601_v6, %v5303_v8  ;;  %v5439_v6 = vld [vmem:[%s10336_s6 + $0xf0] sm:$0xf0]  ;;  %v5445_v8 = vld [vmem:[%s10336_s6 + $0xe8] sm:$0xf] }
 0x119   :  { %2088 = vmatpush.bf16.msra.mxu2 %v5234_v14  ;;  %v1516_v43 = vpop.f32.mrf.mxu0  ;;  %2098 = vmatpush.bf16.msra.mxu0 %v5322_v56 }
 0x11d   :  { %2089 = vmatpush.bf16.msra.mxu2 %v5226_v19  ;;  %2099 = vmatpush.bf16.msra.mxu0 %v5314_v37  ;;  %v5279_v19 = vld [vmem:[%s10334_s4 + $0x1a8] sm:$0xf0]  ;;  %v5437_v37 = vld [vmem:[%s10336_s6 + $0xe0] sm:$0xf]  ;;  %s6975_s4 = smov [#allocation7]  }
 0x11e   :  { %v5282_v20 = vor.u32 %v6595_v5, %v5279_v19  ;;  %v6634_v5 = vld [vmem:[%s10336_s6 + $0xd4] sm:$0xf0]  ;;  %s4259_s23 = sshll.u32 %s6975_s4, 4  ;;  %s4260_s23 = int_to_ptr.vmem [resolvable:$true] %s4259_s23 }
 0x121   :  { %2090 = vmatpush.bf16.msra.mxu2 %v5218_v32  ;;  %v1488_v49 = vpop.f32.mrf.mxu1  ;;  %2100 = vmatpush.bf16.msra.mxu0 %v5306_v9  ;;  %v5266_v32 = vor.u32 %v6591_v26, %v5263_v27  ;;  %v6629_v26 = vld [vmem:[%s10336_s6 + $0xac] sm:$0xf0]  ;;  %v6627_v27 = vld [vmem:[%s10336_s6 + $0xa4] sm:$0xf] }
 0x122   :  { %v1489_v62 = vadd.f32 %v1488_v49, %v1476_v58  ;;  %v1681_v49 = vld [vmem:[%s10335_s5] sm:$0x3]  ;;  %s4239_s5 = sshll.u32 %s10340_s10, 4  ;;  %s4240_s5 = int_to_ptr.hbm [resolvable:$true] %s4239_s5 }
 0x123   :  { %v1683_v50 = vperm.slane %v1681_v49, 0  ;;  %v1684_v58 = vperm.slane %v1681_v49, 1  ;;  %v5373_v49 = vld [vmem:[%s10336_s6 + $0x60] sm:$0xf] }
 0x125   :  { %2091 = vmatpush.bf16.msra.mxu2 %v5210_v41  ;;  %v1540_v59 = vpop.f32.mrf.mxu0  ;;  %2101 = vmatpush.bf16.msra.mxu0 %v5298_v13  ;;  %v5421_v13 = vld [vmem:[%s10336_s6 + $0xc0] sm:$0xf] }
 0x129   :  { %2092 = vmatpush.bf16.msra.mxu2 %v5202_v30  ;;  %v1490_v0 = vpop.f32.mrf.mxu1  ;;  %2102 = vmatpush.bf16.msra.mxu0 %v5290_v18  ;;  %v5429_v18 = vld [vmem:[%s10336_s6 + $0xc8] sm:$0xf] }
 0x12d   :  { %v1501_v1 = vpop.f32.mrf.mxu3  ;;  %v1542_v45 = vpop.f32.mrf.mxu0  ;;  %2103 = vmatpush.bf16.msra.mxu0 %v5282_v20  ;;  %v5430_v20 = vor.u32 %v6634_v5, %v5429_v18  ;;  %v6611_v5 = vld [vmem:[%s10336_s6 + $0x24] sm:$0xf] }
 0x12e   :  { %v1502_v3 = vadd.f32 %v1501_v1, %v1489_v62  ;;  %v1527_v4 = vpop.f32.mrf.mxu2  ;;  %v6637_v1 = vld [vmem:[%s10336_s6 + $0xec] sm:$0xf0]  ;;  %v6636_v45 = vld [vmem:[%s10336_s6 + $0xec] sm:$0xf] }
 0x12f   :  { %v1528_v28 = vadd.f32 %v1527_v4, %v256_v23  ;;  %v5438_v4 = vor.u32 %v6637_v1, %v5437_v37  ;;  %v5450_v11 = vor.u32 %v6636_v45, %v5447_v10  ;;  %v5434_v23 = vor.u32 %v6632_v21, %v5431_v22  ;;  %v5383_v37 = vld [vmem:[%s10336_s6 + $0x78] sm:$0xf0]  ;;  %v5349_v21 = vld [vmem:[%s10336_s6 + $0x28] sm:$0xf]  ;;  %v6614_v22 = vld [vmem:[%s10336_s6 + $0x34] sm:$0xf0] }
 0x130   :  { %v1515_v63 = vadd.f32 %v1514_v29, %v1502_v3  ;;  %v6635_v3 = vld [vmem:[%s10336_s6 + $0xe4] sm:$0xf]  ;;  %v6973_v45 = vmov 0.0  }
 0x131   :  { %2104 = vmatpush.bf16.msra.mxu0 %v5274_v24  ;;  %v1541_v33 = vadd.f32 %v1540_v59, %v1528_v28  ;;  %v5442_v9 = vor.u32 %v6635_v3, %v5439_v6  ;;  %2324 = vmatpush.bf16.msrb.mxu3 %v5438_v4  ;;  %v5405_v24 = vld [vmem:[%s10336_s6 + $0xa0] sm:$0xf]  ;;  %v6617_v6 = vld [vmem:[%s10336_s6 + $0x4c] sm:$0xf0]  ;;  %2117 = vst [vmem:[#allocation2] sm:$0xff] %v6973_v45 }
 0x132   :  { %v1611_v55 = vmax.f32 %v1515_v63, 0.0  ;;  %v6638_v63 = vld [vmem:[%s10336_s6 + $0xf4] sm:$0xf0]  ;;  %v5357_v4 = vld [vmem:[%s10336_s6 + $0x40] sm:$0xf] }
 0x133   :  { %2337 = vmatpush.bf16.msrb.mxu1 %v5442_v9  ;;  %v5358_v9 = vor.u32 %v6617_v6, %v5357_v4  ;;  %v6845_v4 = vld [vmem:[%s10338_s8 + $0x670] sm:$0xf0]  ;;  %v5621_v6 = vld [vmem:[%s10338_s8 + $0x150] sm:$0xf] }
 0x134   :  { %v1615_v12 = vpack.c.bf16 %v1611_v55, %v1611_v55  ;;  %v5446_v55 = vor.u32 %v6638_v63, %v5445_v8  ;;  %v6615_v8 = vld [vmem:[%s10336_s6 + $0x44] sm:$0xf] }
 0x135   :  { %v1503_v14 = vpop.f32.mrf.mxu3  ;;  %2105 = vmatpush.bf16.msra.mxu0 %v5266_v32  ;;  %v5407_v32 = vld [vmem:[%s10336_s6 + $0xb0] sm:$0xf0] }
 0x136   :  { %2041 = vmatmul.bf16.vlgmr.msrb.gmra.mxu2 %v1615_v12  ;;  %v1529_v16 = vpop.f32.mrf.mxu2  ;;  %v6633_v14 = vld [vmem:[%s10336_s6 + $0xcc] sm:$0xf0] }
 0x137   :  { %2350 = vmatpush.bf16.msrb.mxu2 %v5446_v55  ;;  %v6631_v16 = vld [vmem:[%s10336_s6 + $0xc4] sm:$0xf]  ;;  %v5422_v7 = vor.u32 %v6633_v14, %v5421_v13  ;;  %v5367_v14 = vld [vmem:[%s10336_s6 + $0x58] sm:$0xf0] }
 0x138   :  { %v5426_v19 = vor.u32 %v6631_v16, %v5423_v17  ;;  %v5341_v16 = vld [vmem:[%s10336_s6 + $0x20] sm:$0xf] }
 0x139   :  { %2325 = vmatpush.bf16.msrb.mxu3 %v5422_v7  ;;  %v6613_v7 = vld [vmem:[%s10336_s6 + $0x2c] sm:$0xf0] }
 0x13a   :  { %2338 = vmatpush.bf16.msrb.mxu1 %v5426_v19  ;;  %v5342_v18 = vor.u32 %v6613_v7, %v5341_v16  ;;  %v5343_v19 = vld [vmem:[%s10336_s6 + $0x30] sm:$0xf0]  ;;  %v6838_v7 = vld [vmem:[%s10338_s8 + $0x638] sm:$0xf0] }
 0x13b   :  { %2351 = vmatpush.bf16.msrb.mxu2 %v5430_v20  ;;  %v5346_v20 = vor.u32 %v6611_v5, %v5343_v19  ;;  %v6041_v5 = vld [vmem:[%s10338_s8 + $0x498] sm:$0xf]  ;;  %v6789_v19 = vld [vmem:[%s10338_s8 + $0x4b0] sm:$0xf0] }
 0x141   :  { %v1553_v29 = vpop.f32.mrf.mxu1 }
 0x142   :  { %v1554_v36 = vadd.f32 %v1553_v29, %v1541_v33  ;;  %v5406_v29 = vor.u32 %v6629_v26, %v5405_v24  ;;  %v5413_v33 = vld [vmem:[%s10336_s6 + $0xa8] sm:$0xf]  ;;  %v5350_v24 = vor.u32 %v6614_v22, %v5349_v21  ;;  %v5351_v26 = vld [vmem:[%s10336_s6 + $0x38] sm:$0xf0]  ;;  %v6042_v21 = vor.u32 %v6789_v19, %v6041_v5 }
 0x143   :  { %v6754_v19 = vld [vmem:[%s10338_s8 + $0x398] sm:$0xf0] }
 0x144   :  { %2326 = vmatpush.bf16.msrb.mxu3 %v5406_v29  ;;  %v6609_v29 = vld [vmem:[%s10336_s6 + $0xc] sm:$0xf0] }
 0x145   :  { %v1592_v34 = vpop.f32.mrf.mxu0 }
 0x146   :  { %2093 = vmatmul.bf16.vlgmr.msra.gmra.mxu2 %v1615_v12 }
 0x149   :  { %v1555_v2 = vpop.f32.mrf.mxu1 }
 0x14d   :  { %v1566_v39 = vpop.f32.mrf.mxu3  ;;  %v1594_v41 = vpop.f32.mrf.mxu0 }
 0x14e   :  { %v1567_v40 = vadd.f32 %v1566_v39, %v1554_v36  ;;  %v1579_v51 = vpop.f32.mrf.mxu2  ;;  %v5410_v36 = vor.u32 %v6627_v27, %v5407_v32  ;;  %v6628_v39 = vld [vmem:[%s10336_s6 + $0xac] sm:$0xf]  ;;  %v6625_v41 = vld [vmem:[%s10336_s6 + $0x8c] sm:$0xf0]  ;;  %v5325_v27 = vld [vmem:[%s10336_s6] sm:$0xf] }
 0x150   :  { %v1580_v15 = vadd.f32 %v1579_v51, %v1567_v40  ;;  %v5415_v40 = vld [vmem:[%s10336_s6 + $0xb8] sm:$0xf0]  ;;  %2339 = vmatpush.bf16.msrb.mxu1 %v5410_v36  ;;  %v5327_v36 = vld [vmem:[%s10336_s6 + $0x10] sm:$0xf0] }
 0x151   :  { %v1605_v57 = vpop.f32.mrf.mxu1  ;;  %v5418_v51 = vor.u32 %v6628_v39, %v5415_v40  ;;  %v6610_v40 = vld [vmem:[%s10336_s6 + $0x14] sm:$0xf0] }
 0x152   :  { %v1593_v42 = vadd.f32 %v1592_v34, %v1580_v15  ;;  %v6630_v34 = vld [vmem:[%s10336_s6 + $0xb4] sm:$0xf0]  ;;  %v5389_v15 = vld [vmem:[%s10336_s6 + $0x80] sm:$0xf] }
 0x153   :  { %v5414_v2 = vor.u32 %v6630_v34, %v5413_v33  ;;  %v5326_v33 = vor.u32 %v6609_v29, %v5325_v27  ;;  %v6607_v34 = vld [vmem:[%s10336_s6 + $0x4] sm:$0xf]  ;;  %v6670_v27 = vld [vmem:[%s10338_s8 + $0xf8] sm:$0xf0] }
 0x154   :  { %v1606_v43 = vadd.f32 %v1605_v57, %v1593_v42  ;;  %v5390_v42 = vor.u32 %v6625_v41, %v5389_v15  ;;  %v6623_v57 = vld [vmem:[%s10336_s6 + $0x84] sm:$0xf]  ;;  %v5330_v39 = vor.u32 %v6607_v34, %v5327_v36  ;;  %v5335_v15 = vld [vmem:[%s10336_s6 + $0x18] sm:$0xf0]  ;;  %v6209_v36 = vld [vmem:[%s10338_s8 + $0x5e8] sm:$0xf] }
 0x155   :  { %v1568_v44 = vpop.f32.mrf.mxu3  ;;  %2352 = vmatpush.bf16.msrb.mxu2 %v5414_v2  ;;  %v5333_v2 = vld [vmem:[%s10336_s6 + $0x8] sm:$0xf]  ;;  %v6782_v34 = vld [vmem:[%s10338_s8 + $0x478] sm:$0xf0] }
 0x156   :  { %v1581_v46 = vpop.f32.mrf.mxu2  ;;  %v1612_v25 = vmax.f32 %v1606_v43, 0.0  ;;  %v5391_v43 = vld [vmem:[%s10336_s6 + $0x90] sm:$0xf0]  ;;  %v5397_v44 = vld [vmem:[%s10336_s6 + $0x88] sm:$0xf]  ;;  %2327 = vmatpush.bf16.msrb.mxu3 %v5390_v42  ;;  %v5334_v42 = vor.u32 %v6610_v40, %v5333_v2 }
 0x157   :  { %v5394_v46 = vor.u32 %v6623_v57, %v5391_v43  ;;  %v5873_v43 = vld [vmem:[%s10338_s8 + $0x348] sm:$0xf]  ;;  %v6831_v2 = vld [vmem:[%s10338_s8 + $0x600] sm:$0xf0] }
 0x158   :  { %v1616_v30 = vpack.c.bf16 %v1612_v25, %v1612_v25  ;;  %v6626_v25 = vld [vmem:[%s10336_s6 + $0x94] sm:$0xf0] }
 0x159   :  { %v1607_v35 = vpop.f32.mrf.mxu1  ;;  %2340 = vmatpush.bf16.msrb.mxu1 %v5394_v46  ;;  %v6321_v46 = vld [vmem:[%s10338_s8 + $0x6c8] sm:$0xf] }
 0x15a   :  { %2054 = vmatmul.bf16.vlgmr.msrb.gmra.mxu0 %v1616_v30  ;;  %v5399_v35 = vld [vmem:[%s10336_s6 + $0x98] sm:$0xf0] }
 0x15b   :  { %2363 = vmatpush.bf16.msrb.mxu0 %v5450_v11  ;;  %v6618_v11 = vld [vmem:[%s10336_s6 + $0x54] sm:$0xf0] }
 0x15f   :  { %2364 = vmatpush.bf16.msrb.mxu0 %v5434_v23  ;;  %v6612_v23 = vld [vmem:[%s10336_s6 + $0x2c] sm:$0xf] }
 0x160   :  { %v5354_v32 = vor.u32 %v6612_v23, %v5351_v26  ;;  %v5565_v26 = vld [vmem:[%s10338_s8 + $0xe0] sm:$0xf] }
 0x161   :  { %v5566_v40 = vor.u32 %v6670_v27, %v5565_v26  ;;  %v6800_v26 = vld [vmem:[%s10338_s8 + $0x50c] sm:$0xf]  ;;  %v6099_v27 = vld [vmem:[%s10338_s8 + $0x524] sm:$0xf0] }
 0x163   :  { %2365 = vmatpush.bf16.msrb.mxu0 %v5418_v51  ;;  %v6608_v51 = vld [vmem:[%s10336_s6 + $0xc] sm:$0xf] }
 0x164   :  { %v5338_v57 = vor.u32 %v6608_v51, %v5335_v15  ;;  %v5537_v15 = vld [vmem:[%s10338_s8 + $0xa8] sm:$0xf] }
 0x16a   :  { %2106 = vmatmul.bf16.vlgmr.msra.gmra.mxu0 %v1616_v30  ;;  %v6624_v30 = vld [vmem:[%s10336_s6 + $0x8c] sm:$0xf] }
 0x16d   :  { %v2016_v47 = vpop.f32.mrf.mxu3 }
 0x16e   :  { %v2017_v52 = vadd.f32 %v2016_v47, %v1683_v50  ;;  %v5398_v47 = vor.u32 %v6626_v25, %v5397_v44  ;;  %v6621_v50 = vld [vmem:[%s10336_s6 + $0x6c] sm:$0xf0]  ;;  %v6747_v44 = vld [vmem:[%s10338_s8 + $0x360] sm:$0xf0] }
 0x16f   :  { %v5874_v25 = vor.u32 %v6747_v44, %v5873_v43  ;;  %v6775_v43 = vld [vmem:[%s10338_s8 + $0x440] sm:$0xf0] }
 0x170   :  { %2353 = vmatpush.bf16.msrb.mxu2 %v5398_v47  ;;  %v6740_v47 = vld [vmem:[%s10338_s8 + $0x328] sm:$0xf0] }
 0x175   :  { %v2018_v48 = vpop.f32.mrf.mxu3 }
 0x176   :  { %v5402_v48 = vor.u32 %v6624_v30, %v5399_v35  ;;  %v6859_v30 = vld [vmem:[%s10338_s8 + $0x6e0] sm:$0xf0]  ;;  %v5845_v35 = vld [vmem:[%s10338_s8 + $0x310] sm:$0xf] }
 0x178   :  { %2366 = vmatpush.bf16.msrb.mxu0 %v5402_v48 }
 0x17d   :  { %v2029_v53 = vpop.f32.mrf.mxu1 }
 0x17e   :  { %v8706_v38 = vadd.f32 %v2029_v53, %v2017_v52  ;;  %v6619_v52 = vld [vmem:[%s10336_s6 + $0x64] sm:$0xf] }
 0x185   :  { %v2031_v31 = vpop.f32.mrf.mxu1 }
 0x186   :  { %v5375_v31 = vld [vmem:[%s10336_s6 + $0x70] sm:$0xf0] }
 0x18d   :  { %v2068_v54 = vpop.f32.mrf.mxu3  ;;  %v2081_v60 = vpop.f32.mrf.mxu1 }
 0x18e   :  { %v2069_v59 = vadd.f32 %v2068_v54, %v1684_v58  ;;  %v5374_v54 = vor.u32 %v6621_v50, %v5373_v49  ;;  %v6622_v58 = vld [vmem:[%s10336_s6 + $0x74] sm:$0xf0]  ;;  %v6322_v49 = vor.u32 %v6859_v30, %v6321_v46  ;;  %v6293_v50 = vld [vmem:[%s10338_s8 + $0x690] sm:$0xf]  ;;  %v6210_v46 = vor.u32 %v6831_v2, %v6209_v36  ;;  %v6712_v30 = vld [vmem:[%s10338_s8 + $0x248] sm:$0xf0] }
 0x18f   :  { %v6849_v36 = vld [vmem:[%s10338_s8 + $0x694] sm:$0xf]  ;;  %v6295_v2 = vld [vmem:[%s10338_s8 + $0x6ac] sm:$0xf0] }
 0x190   :  { %v8708_v61 = vadd.f32 %v2081_v60, %v2069_v59  ;;  %v5378_v59 = vor.u32 %v6619_v52, %v5375_v31  ;;  %2328 = vmatpush.bf16.msrb.mxu3 %v5374_v54  ;;  %v6852_v52 = vld [vmem:[%s10338_s8 + $0x6a8] sm:$0xf0]  ;;  %v5846_v31 = vor.u32 %v6740_v47, %v5845_v35  ;;  %v6181_v47 = vld [vmem:[%s10338_s8 + $0x5b0] sm:$0xf] }
 0x192   :  { %2341 = vmatpush.bf16.msrb.mxu1 %v5378_v59  ;;  %v6294_v59 = vor.u32 %v6852_v52, %v6293_v50  ;;  %v5509_v52 = vld [vmem:[%s10338_s8 + $0x70] sm:$0xf] }
 0x194   :  { %2329 = vmatpush.bf16.msrb.mxu3 %v5358_v9 }
 0x195   :  { %v2070_v56 = vpop.f32.mrf.mxu3  ;;  %v2083_v62 = vpop.f32.mrf.mxu1 }
 0x196   :  { %v5381_v56 = vld [vmem:[%s10336_s6 + $0x68] sm:$0xf]  ;;  %v6620_v62 = vld [vmem:[%s10336_s6 + $0x6c] sm:$0xf] }
 0x197   :  { %v5382_v60 = vor.u32 %v6622_v58, %v5381_v56  ;;  %v5386_v1 = vor.u32 %v6620_v62, %v5383_v37  ;;  %v6803_v56 = vld [vmem:[%s10338_s8 + $0x520] sm:$0xf0]  ;;  %v5817_v37 = vld [vmem:[%s10338_s8 + $0x2d8] sm:$0xf] }
 0x198   :  { %2330 = vmatpush.bf16.msrb.mxu3 %v5342_v18  ;;  %v6677_v18 = vld [vmem:[%s10338_s8 + $0x130] sm:$0xf0] }
 0x199   :  { %2354 = vmatpush.bf16.msrb.mxu2 %v5382_v60  ;;  %2367 = vmatpush.bf16.msrb.mxu0 %v5386_v1  ;;  %v6733_v1 = vld [vmem:[%s10338_s8 + $0x2f0] sm:$0xf0] }
 0x19a   :  { %v5818_v45 = vor.u32 %v6733_v1, %v5817_v37  ;;  %v5481_v1 = vld [vmem:[%s10338_s8 + $0x38] sm:$0xf] }
 0x19c   :  { %2331 = vmatpush.bf16.msrb.mxu3 %v5326_v33  ;;  %v6013_v33 = vld [vmem:[%s10338_s8 + $0x460] sm:$0xf] }
 0x19d   :  { %v6014_v51 = vor.u32 %v6782_v34, %v6013_v33  ;;  %v6737_v33 = vld [vmem:[%s10338_s8 + $0x314] sm:$0xf]  ;;  %v5847_v34 = vld [vmem:[%s10338_s8 + $0x32c] sm:$0xf0] }
 0x1b9   :  { %v8710_v0 = vpop.f32.mrf.mxu2 }
 0x1ba   :  { %v2043_v3 = vadd.f32 %v8710_v0, %v8706_v38  ;;  %v5359_v38 = vld [vmem:[%s10336_s6 + $0x50] sm:$0xf0]  ;;  %v5365_v0 = vld [vmem:[%s10336_s6 + $0x48] sm:$0xf] }
 0x1bb   :  { %v5362_v10 = vor.u32 %v6615_v8, %v5359_v38  ;;  %v5366_v13 = vor.u32 %v6618_v11, %v5365_v0  ;;  %v6684_v8 = vld [vmem:[%s10338_s8 + $0x168] sm:$0xf0]  ;;  %v6069_v38 = vld [vmem:[%s10338_s8 + $0x4d0] sm:$0xf]  ;;  %v5789_v11 = vld [vmem:[%s10338_s8 + $0x2a0] sm:$0xf] }
 0x1bc   :  { %v5622_v9 = vor.u32 %v6684_v8, %v5621_v6  ;;  %v6796_v0 = vld [vmem:[%s10338_s8 + $0x4e8] sm:$0xf0]  ;;  %v5929_v6 = vld [vmem:[%s10338_s8 + $0x3b8] sm:$0xf]  ;;  %v6761_v8 = vld [vmem:[%s10338_s8 + $0x3d0] sm:$0xf0] }
 0x1bd   :  { %2342 = vmatpush.bf16.msrb.mxu1 %v5362_v10  ;;  %2355 = vmatpush.bf16.msrb.mxu2 %v5366_v13  ;;  %v6070_v10 = vor.u32 %v6796_v0, %v6069_v38  ;;  %v6237_v13 = vld [vmem:[%s10338_s8 + $0x620] sm:$0xf]  ;;  %v6698_v38 = vld [vmem:[%s10338_s8 + $0x1d8] sm:$0xf0] }
 0x1be   :  { %v6238_v29 = vor.u32 %v6838_v7, %v6237_v13  ;;  %v6125_v0 = vld [vmem:[%s10338_s8 + $0x540] sm:$0xf]  ;;  %v6323_v13 = vld [vmem:[%s10338_s8 + $0x6e4] sm:$0xf0] }
 0x1bf   :  { %v5453_v7 = vld [vmem:[%s10338_s8] sm:$0xf] }
 0x1c1   :  { %v2044_v12 = vpop.f32.mrf.mxu2  ;;  %2343 = vmatpush.bf16.msrb.mxu1 %v5346_v20  ;;  %2356 = vmatpush.bf16.msrb.mxu2 %v5350_v24  ;;  %v5761_v24 = vld [vmem:[%s10338_s8 + $0x268] sm:$0xf] }
 0x1c2   :  { %v6616_v12 = vld [vmem:[%s10336_s6 + $0x4c] sm:$0xf]  ;;  %s4248_s6 = sshll.u32 %s6974_s20, 4  ;;  %s4249_s6 = int_to_ptr.vmem [resolvable:$true] %s4248_s6 }
 0x1c3   :  { %v5370_v17 = vor.u32 %v6616_v12, %v5367_v14  ;;  %v6726_v12 = vld [vmem:[%s10338_s8 + $0x2b8] sm:$0xf0] }
 0x1c4   :  { %v5790_v23 = vor.u32 %v6726_v12, %v5789_v11  ;;  %v5875_v11 = vld [vmem:[%s10338_s8 + $0x364] sm:$0xf0]  ;;  %v6856_v12 = vld [vmem:[%s10338_s8 + $0x6cc] sm:$0xf] }
 0x1c5   :  { %2368 = vmatpush.bf16.msrb.mxu0 %v5370_v17  ;;  %2344 = vmatpush.bf16.msrb.mxu1 %v5330_v39  ;;  %v5593_v17 = vld [vmem:[%s10338_s8 + $0x118] sm:$0xf]  ;;  %v2114_v39 = vld [vmem:[%s10331_s1] sm:$0xff]  ;;  %s4261_s1 = sshll.u32 %s10342_s12, 4  ;;  %s4237_s12 = sshll.u32 %s6976_s11, 4  ;;  %s4262_s1 = int_to_ptr.hbm [resolvable:$true] %s4261_s1  ;;  %s4238_s12 = int_to_ptr.vmem [resolvable:$true] %s4237_s12 }
 0x1c6   :  { %2357 = vmatpush.bf16.msrb.mxu2 %v5334_v42  ;;  %v5594_v20 = vor.u32 %v6677_v18, %v5593_v17  ;;  %v6663_v42 = vld [vmem:[%s10338_s8 + $0xc0] sm:$0xf0]  ;;  %v6642_v17 = vld [vmem:[%s10338_s8 + $0x18] sm:$0xf0]  ;;  %v5901_v18 = vld [vmem:[%s10338_s8 + $0x380] sm:$0xf] }
 0x1c9   :  { %v8769_v28 = vpop.f32.mrf.mxu2  ;;  %2369 = vmatpush.bf16.msrb.mxu0 %v5354_v32  ;;  %3821 = vmatpush.bf16.msra.mxu1 %v5874_v25  ;;  %v6719_v32 = vld [vmem:[%s10338_s8 + $0x280] sm:$0xf0]  ;;  %v5733_v25 = vld [vmem:[%s10338_s8 + $0x230] sm:$0xf] }
 0x1ca   :  { %v2095_v48 = vadd.f32 %v8769_v28, %v8708_v61  ;;  %v6691_v61 = vld [vmem:[%s10338_s8 + $0x1a0] sm:$0xf0]  ;;  %v6097_v28 = vld [vmem:[%s10338_s8 + $0x508] sm:$0xf] }
 0x1cb   :  { %v6098_v62 = vor.u32 %v6803_v56, %v6097_v28  ;;  %v6768_v28 = vld [vmem:[%s10338_s8 + $0x408] sm:$0xf0] }
 0x1cd   :  { %2370 = vmatpush.bf16.msrb.mxu0 %v5338_v57  ;;  %3834 = vmatpush.bf16.msra.mxu2 %v6098_v62  ;;  %v5985_v57 = vld [vmem:[%s10338_s8 + $0x428] sm:$0xf] }
 0x1ce   :  { %3822 = vmatpush.bf16.msra.mxu1 %v5846_v31  ;;  %v5986_v50 = vor.u32 %v6775_v43, %v5985_v57  ;;  %v6656_v31 = vld [vmem:[%s10338_s8 + $0x88] sm:$0xf0]  ;;  %v6793_v57 = vld [vmem:[%s10338_s8 + $0x4d4] sm:$0xf]  ;;  %v6071_v43 = vld [vmem:[%s10338_s8 + $0x4ec] sm:$0xf0] }
 0x1cf   :  { %v5510_v62 = vor.u32 %v6656_v31, %v5509_v52  ;;  %v5595_v52 = vld [vmem:[%s10338_s8 + $0x134] sm:$0xf0] }
 0x1d1   :  { %v2096_v53 = vpop.f32.mrf.mxu2  ;;  %3847 = vmatpush.bf16.msra.mxu0 %v6322_v49  ;;  %3835 = vmatpush.bf16.msra.mxu2 %v6070_v10  ;;  %v5538_v49 = vor.u32 %v6663_v42, %v5537_v15  ;;  %v6744_v10 = vld [vmem:[%s10338_s8 + $0x34c] sm:$0xf]  ;;  %v6102_v15 = vor.u32 %v6800_v26, %v6099_v27  ;;  %v5623_v42 = vld [vmem:[%s10338_s8 + $0x16c] sm:$0xf0]  ;;  %v6814_v27 = vld [vmem:[%s10338_s8 + $0x57c] sm:$0xf] }
 0x1d2   :  { %v5649_v53 = vld [vmem:[%s10338_s8 + $0x188] sm:$0xf]  ;;  %3823 = vmatpush.bf16.msra.mxu1 %v5818_v45  ;;  %v6810_v45 = vld [vmem:[%s10338_s8 + $0x558] sm:$0xf0] }
 0x1d3   :  { %v5650_v60 = vor.u32 %v6691_v61, %v5649_v53  ;;  %v5957_v61 = vld [vmem:[%s10338_s8 + $0x3f0] sm:$0xf] }
 0x1d4   :  { %v5958_v37 = vor.u32 %v6768_v28, %v5957_v61  ;;  %v6723_v28 = vld [vmem:[%s10338_s8 + $0x2a4] sm:$0xf] }
 0x1d5   :  { %3808 = vmatpush.bf16.msra.mxu3 %v5650_v60  ;;  %3848 = vmatpush.bf16.msra.mxu0 %v6294_v59  ;;  %v6153_v59 = vld [vmem:[%s10338_s8 + $0x578] sm:$0xf]  ;;  %v6817_v60 = vld [vmem:[%s10338_s8 + $0x590] sm:$0xf0] }
 0x1d6   :  { %3836 = vmatpush.bf16.msra.mxu2 %v6042_v21  ;;  %3824 = vmatpush.bf16.msra.mxu1 %v5790_v23  ;;  %v6126_v23 = vor.u32 %v6810_v45, %v6125_v0 }
 0x1d7   :  { %v2055_v63 = vpop.f32.mrf.mxu0 }
 0x1d8   :  { %v8851_v55 = vadd.f32 %v2055_v63, %v2043_v3  ;;  %v6265_v3 = vld [vmem:[%s10338_s8 + $0x658] sm:$0xf] }
 0x1d9   :  { %v6266_v16 = vor.u32 %v6845_v4, %v6265_v3  ;;  %3809 = vmatpush.bf16.msra.mxu3 %v5622_v9  ;;  %v6649_v4 = vld [vmem:[%s10338_s8 + $0x50] sm:$0xf0]  ;;  %v5677_v9 = vld [vmem:[%s10338_s8 + $0x1c0] sm:$0xf] }
 0x1da   :  { %4230 = vst.msk [vmem:[#allocation5] sm:$0xff] %vm2118_vm1, %v8851_v55  ;;  %3837 = vmatpush.bf16.msra.mxu2 %v6014_v51 }
 0x1db   :  { %3849 = vmatpush.bf16.msra.mxu0 %v6266_v16  ;;  %v5930_v16 = vor.u32 %v6761_v8, %v5929_v6  ;;  %v6716_v8 = vld [vmem:[%s10338_s8 + $0x26c] sm:$0xf]  ;;  %4253 = dma.vmem_to_hbm [thread:$0]  %s4249_s6, 128, %s4251_s19, [#allocation6]  }
 0x1dd   :  { %3810 = vmatpush.bf16.msra.mxu3 %v5594_v20  ;;  %v6688_v20 = vld [vmem:[%s10338_s8 + $0x18c] sm:$0xf] }
 0x1de   :  { %3838 = vmatpush.bf16.msra.mxu2 %v5986_v50  ;;  %v6674_v50 = vld [vmem:[%s10338_s8 + $0x11c] sm:$0xf] }
 0x1df   :  { %v2057_v41 = vpop.f32.mrf.mxu0  ;;  %3850 = vmatpush.bf16.msra.mxu0 %v6238_v29  ;;  %v5878_v29 = vor.u32 %v6744_v10, %v5875_v11 }
 0x1e0   :  { %v5762_v41 = vor.u32 %v6719_v32, %v5761_v24  ;;  %v5651_v24 = vld [vmem:[%s10338_s8 + $0x1a4] sm:$0xf0]  ;;  %v6326_v32 = vor.u32 %v6856_v12, %v6323_v13  ;;  %v6709_v12 = vld [vmem:[%s10338_s8 + $0x234] sm:$0xf]  ;;  %v5735_v13 = vld [vmem:[%s10338_s8 + $0x24c] sm:$0xf0] }
 0x1e1   :  { %3811 = vmatpush.bf16.msra.mxu3 %v5566_v40  ;;  %v5902_v40 = vor.u32 %v6754_v19, %v5901_v18  ;;  %v5654_v51 = vor.u32 %v6688_v20, %v5651_v24  ;;  %v6660_v18 = vld [vmem:[%s10338_s8 + $0xac] sm:$0xf]  ;;  %v5707_v24 = vld [vmem:[%s10338_s8 + $0x214] sm:$0xf0] }
 0x1e2   :  { %3825 = vmatpush.bf16.msra.mxu1 %v5762_v41  ;;  %3839 = vmatpush.bf16.msra.mxu2 %v5958_v37  ;;  %v6681_v41 = vld [vmem:[%s10338_s8 + $0x154] sm:$0xf]  ;;  %v5567_v37 = vld [vmem:[%s10338_s8 + $0xfc] sm:$0xf0]  ;;  %v6772_v19 = vld [vmem:[%s10338_s8 + $0x42c] sm:$0xf] }
 0x1e3   :  { %3851 = vmatpush.bf16.msra.mxu0 %v6210_v46  ;;  %v6298_v46 = vor.u32 %v6849_v36, %v6295_v2  ;;  %v6765_v36 = vld [vmem:[%s10338_s8 + $0x3f4] sm:$0xf] }
 0x1e5   :  { %3812 = vmatpush.bf16.msra.mxu3 %v5538_v49  ;;  %v6074_v49 = vor.u32 %v6793_v57, %v6071_v43  ;;  %v6127_v57 = vld [vmem:[%s10338_s8 + $0x55c] sm:$0xf0] }
 0x1e6   :  { %3840 = vmatpush.bf16.msra.mxu2 %v5930_v16  ;;  %v6183_v16 = vld [vmem:[%s10338_s8 + $0x5cc] sm:$0xf0] }
 0x1e7   :  { %v2107_v54 = vpop.f32.mrf.mxu0 }
 0x1e8   :  { %v2108_v58 = vadd.f32 %v2107_v54, %v2095_v48  ;;  %v6824_v48 = vld [vmem:[%s10338_s8 + $0x5c8] sm:$0xf0]  ;;  %v5734_v54 = vor.u32 %v6712_v30, %v5733_v25  ;;  %v6730_v25 = vld [vmem:[%s10338_s8 + $0x2dc] sm:$0xf]  ;;  %v5819_v30 = vld [vmem:[%s10338_s8 + $0x2f4] sm:$0xf0] }
 0x1e9   :  { %v6182_v56 = vor.u32 %v6824_v48, %v6181_v47  ;;  %3813 = vmatpush.bf16.msra.mxu3 %v5510_v62  ;;  %v6267_v47 = vld [vmem:[%s10338_s8 + $0x674] sm:$0xf0]  ;;  %v5626_v48 = vor.u32 %v6681_v41, %v5623_v42  ;;  %v5822_v31 = vor.u32 %v6730_v25, %v5819_v30  ;;  %v6667_v62 = vld [vmem:[%s10338_s8 + $0xe4] sm:$0xf]  ;;  %v6758_v25 = vld [vmem:[%s10338_s8 + $0x3bc] sm:$0xf] }
 0x1ea   :  { %v2111_v63 = vmul.f32 0.5, %v2108_v58  ;;  %4231 = vst.msk [vmem:[#allocation7] sm:$0xff] %vm2118_vm1, %v2108_v58  ;;  %v6705_v58 = vld [vmem:[%s10338_s8 + $0x210] sm:$0xf0]  ;;  %3826 = vmatpush.bf16.msra.mxu1 %v5734_v54  ;;  %3841 = vmatpush.bf16.msra.mxu2 %v5902_v40  ;;  %v6043_v54 = vld [vmem:[%s10338_s8 + $0x4b4] sm:$0xf0]  ;;  %v5570_v0 = vor.u32 %v6667_v62, %v5567_v37 }
 0x1eb   :  { %3852 = vmatpush.bf16.msra.mxu0 %v6182_v56  ;;  %v5791_v56 = vld [vmem:[%s10338_s8 + $0x2bc] sm:$0xf0]  ;;  %v6807_v41 = vld [vmem:[%s10338_s8 + $0x544] sm:$0xf]  ;;  %v6329_v37 = vld [vmem:[%s10338_s8 + $0x6d0] sm:$0xf] }
 0x1ec   :  { %v2112_v14 = vmul.f32 1.442695, %v2111_v63  ;;  %v6154_v63 = vor.u32 %v6817_v60, %v6153_v59  ;;  %v5598_v59 = vor.u32 %v6674_v50, %v5595_v52  ;;  %v6130_v43 = vor.u32 %v6807_v41, %v6127_v57  ;;  %v6751_v52 = vld [vmem:[%s10338_s8 + $0x384] sm:$0xf]  ;;  %v6077_v41 = vld [vmem:[%s10338_s8 + $0x4d8] sm:$0xf] }
 0x1ed   :  { %4264 = dma.vmem_to_hbm [thread:$0]  %s4260_s23, 128, %s4262_s1, [#allocation6]  }
 0x1ee   :  { %6867 = vpow2.f32 %v2112_v14  ;;  %v5482_v14 = vor.u32 %v6649_v4, %v5481_v1  ;;  %v6779_v1 = vld [vmem:[%s10338_s8 + $0x464] sm:$0xf]  ;;  %v5794_v4 = vor.u32 %v6723_v28, %v5791_v56 }
 0x1ef   :  { %v2109_v22 = vpop.f32.mrf.mxu0  ;;  %3853 = vmatpush.bf16.msra.mxu0 %v6154_v63  ;;  %v5763_v63 = vld [vmem:[%s10338_s8 + $0x284] sm:$0xf0] }
 0x1f0   :  { %v5678_v22 = vor.u32 %v6698_v38, %v5677_v9  ;;  %3814 = vmatpush.bf16.msra.mxu3 %v5482_v14  ;;  %v6828_v9 = vld [vmem:[%s10338_s8 + $0x5ec] sm:$0xf]  ;;  %v6211_v38 = vld [vmem:[%s10338_s8 + $0x604] sm:$0xf0]  ;;  %v5766_v10 = vor.u32 %v6716_v8, %v5763_v63  ;;  %v6821_v14 = vld [vmem:[%s10338_s8 + $0x5b4] sm:$0xf] }
 0x1f1   :  { %v6214_v11 = vor.u32 %v6828_v9, %v6211_v38 }
 0x1f3   :  { %3854 = vmatpush.bf16.msra.mxu0 %v6126_v23  ;;  %v6702_v23 = vld [vmem:[%s10338_s8 + $0x1fc] sm:$0xf] }
 0x1f4   :  { %v6868_v44 = vpop.eup %6867  ;;  %v5710_v26 = vor.u32 %v6702_v23, %v5707_v24 }
 0x1f5   :  { %v2115_v35 = vmul.f32 %v6868_v44, %v2114_v39  ;;  %v5454_v39 = vor.u32 %v6642_v17, %v5453_v7  ;;  %v5850_v44 = vor.u32 %v6737_v33, %v5847_v34  ;;  %v5738_v7 = vor.u32 %v6709_v12, %v5735_v13  ;;  %v6653_v33 = vld [vmem:[%s10338_s8 + $0x74] sm:$0xf]  ;;  %v5511_v34 = vld [vmem:[%s10338_s8 + $0x8c] sm:$0xf0]  ;;  %v6301_v12 = vld [vmem:[%s10338_s8 + $0x698] sm:$0xf] }
 0x1f6   :  { %v6186_v17 = vor.u32 %v6821_v14, %v6183_v16  ;;  %v5514_v2 = vor.u32 %v6653_v33, %v5511_v34  ;;  %v6853_v13 = vld [vmem:[%s10338_s8 + $0x6b0] sm:$0xf0]  ;;  %v6273_v33 = vld [vmem:[%s10338_s8 + $0x660] sm:$0xf]  ;;  %v6846_v34 = vld [vmem:[%s10338_s8 + $0x678] sm:$0xf0] }
 0x1f7   :  { %v2116_v53 = vadd.f32 %v2115_v35, %v8851_v55  ;;  %v5705_v55 = vld [vmem:[%s10338_s8 + $0x1f8] sm:$0xf]  ;;  %3815 = vmatpush.bf16.msra.mxu3 %v5454_v39  ;;  %v6842_v35 = vld [vmem:[%s10338_s8 + $0x65c] sm:$0xf]  ;;  %v5959_v39 = vld [vmem:[%s10338_s8 + $0x40c] sm:$0xf0]  ;;  %v6302_v24 = vor.u32 %v6853_v13, %v6301_v12  ;;  %v6274_v57 = vor.u32 %v6846_v34, %v6273_v33 }
 0x1f8   :  { %v5706_v3 = vor.u32 %v6705_v58, %v5705_v55  ;;  %v6270_v61 = vor.u32 %v6842_v35, %v6267_v47  ;;  %v6835_v55 = vld [vmem:[%s10338_s8 + $0x624] sm:$0xf]  ;;  %v6239_v58 = vld [vmem:[%s10338_s8 + $0x63c] sm:$0xf0]  ;;  %v5962_v40 = vor.u32 %v6765_v36, %v5959_v39  ;;  %v5931_v35 = vld [vmem:[%s10338_s8 + $0x3d4] sm:$0xf0] }
 0x1f9   :  { %2119 = vst.msk [vmem:[#allocation2] sm:$0xff] %vm2118_vm1, %v2116_v53  ;;  %v6786_v53 = vld [vmem:[%s10338_s8 + $0x49c] sm:$0xf]  ;;  %v6242_v6 = vor.u32 %v6835_v55, %v6239_v58  ;;  %v5934_v47 = vor.u32 %v6758_v25, %v5931_v35  ;;  %v5629_v39 = vld [vmem:[%s10338_s8 + $0x158] sm:$0xf] }
 0x1fa   :  { %3827 = vmatpush.bf16.msra.mxu1 %v5706_v3  ;;  %v6046_v60 = vor.u32 %v6786_v53, %v6043_v54  ;;  %v6015_v3 = vld [vmem:[%s10338_s8 + $0x47c] sm:$0xf0]  ;;  %v6839_v35 = vld [vmem:[%s10338_s8 + $0x640] sm:$0xf0]  ;;  %v6664_v12 = vld [vmem:[%s10338_s8 + $0xc8] sm:$0xf0] }
 0x1fb   :  { %v6018_v45 = vor.u32 %v6779_v1, %v6015_v3  ;;  %v5903_v53 = vld [vmem:[%s10338_s8 + $0x39c] sm:$0xf0]  ;;  %v6860_v1 = vld [vmem:[%s10338_s8 + $0x6e8] sm:$0xf0]  ;;  %v6699_v33 = vld [vmem:[%s10338_s8 + $0x1e0] sm:$0xf0] }
 0x1fc   :  { %v5906_v54 = vor.u32 %v6751_v52, %v5903_v53  ;;  %v6330_v38 = vor.u32 %v6860_v1, %v6329_v37  ;;  %v6049_v53 = vld [vmem:[%s10338_s8 + $0x4a0] sm:$0xf]  ;;  %v6021_v1 = vld [vmem:[%s10338_s8 + $0x468] sm:$0xf] }
 0x1fd   :  { %v6133_v34 = vld [vmem:[%s10338_s8 + $0x548] sm:$0xf] }
 0x1fe   :  { %3828 = vmatpush.bf16.msra.mxu1 %v5678_v22 }
 0x200   :  { %v2120_v5 = vld [vmem:[#allocation2] sm:$0xff] }
 0x201   :  { %v2121_v21 = vpack.c.bf16 %v2120_v5, %v2120_v5  ;;  %v5539_v5 = vld [vmem:[%s10338_s8 + $0xc4] sm:$0xf0] }
 0x202   :  { %v5542_v20 = vor.u32 %v6660_v18, %v5539_v5 }
 0x203   :  { %2332 = vmatmul.bf16.vlgmr.msrb.gmra.mxu3 %v2121_v21  ;;  %2345 = vmatmul.bf16.vlgmr.msrb.gmra.mxu1 %v2121_v21 }
 0x204   :  { %2358 = vmatmul.bf16.vlgmr.msrb.gmra.mxu2 %v2121_v21  ;;  %2371 = vmatmul.bf16.vlgmr.msrb.gmra.mxu0 %v2121_v21  ;;  %v5987_v21 = vld [vmem:[%s10338_s8 + $0x444] sm:$0xf0] }
 0x205   :  { %3873 = vmatpush.bf16.msrb.mxu1 %v5878_v29  ;;  %3899 = vmatpush.bf16.msrb.mxu0 %v6326_v32  ;;  %v5990_v22 = vor.u32 %v6772_v19, %v5987_v21  ;;  %v6155_v29 = vld [vmem:[%s10338_s8 + $0x594] sm:$0xf0]  ;;  %v6804_v21 = vld [vmem:[%s10338_s8 + $0x528] sm:$0xf0] }
 0x206   :  { %3860 = vmatpush.bf16.msrb.mxu3 %v5654_v51  ;;  %3886 = vmatpush.bf16.msrb.mxu2 %v6102_v15  ;;  %v6158_v32 = vor.u32 %v6814_v27, %v6155_v29  ;;  %v6695_v51 = vld [vmem:[%s10338_s8 + $0x1c4] sm:$0xf]  ;;  %v5679_v15 = vld [vmem:[%s10338_s8 + $0x1dc] sm:$0xf0]  ;;  %v6734_v27 = vld [vmem:[%s10338_s8 + $0x2f8] sm:$0xf0] }
 0x207   :  { %v5682_v42 = vor.u32 %v6695_v51, %v5679_v15 }
 0x209   :  { %3874 = vmatpush.bf16.msrb.mxu1 %v5850_v44  ;;  %3900 = vmatpush.bf16.msrb.mxu0 %v6298_v46  ;;  %v6646_v44 = vld [vmem:[%s10338_s8 + $0x3c] sm:$0xf]  ;;  %v5483_v46 = vld [vmem:[%s10338_s8 + $0x54] sm:$0xf0] }
 0x20a   :  { %3861 = vmatpush.bf16.msrb.mxu3 %v5626_v48  ;;  %3887 = vmatpush.bf16.msrb.mxu2 %v6074_v49  ;;  %v5486_v30 = vor.u32 %v6646_v44, %v5483_v46  ;;  %v6639_v48 = vld [vmem:[%s10338_s8 + $0x4] sm:$0xf]  ;;  %v5455_v49 = vld [vmem:[%s10338_s8 + $0x1c] sm:$0xf0] }
 0x20b   :  { %v5458_v50 = vor.u32 %v6639_v48, %v5455_v49  ;;  %v6727_v44 = vld [vmem:[%s10338_s8 + $0x2c0] sm:$0xf0]  ;;  %v5601_v49 = vld [vmem:[%s10338_s8 + $0x120] sm:$0xf] }
 0x20d   :  { %3875 = vmatpush.bf16.msrb.mxu1 %v5822_v31  ;;  %3901 = vmatpush.bf16.msrb.mxu0 %v6270_v61  ;;  %v2154_v31 = vld [vmem:[%s10337_s7] sm:$0xf] }
 0x20e   :  { %3862 = vmatpush.bf16.msrb.mxu3 %v5598_v59  ;;  %3888 = vmatpush.bf16.msrb.mxu2 %v6046_v60  ;;  %v2157_v61 = vperm.slane %v2154_v31, 1  ;;  %v2159_v28 = vperm.slane %v2154_v31, 3  ;;  %v5881_v59 = vld [vmem:[%s10338_s8 + $0x350] sm:$0xf]  ;;  %v6748_v60 = vld [vmem:[%s10338_s8 + $0x368] sm:$0xf0] }
 0x20f   :  { %v2158_v8 = vperm.slane %v2154_v31, 2  ;;  %v5882_v63 = vor.u32 %v6748_v60, %v5881_v59  ;;  %v5573_v60 = vld [vmem:[%s10338_s8 + $0xe8] sm:$0xf] }
 0x211   :  { %3876 = vmatpush.bf16.msrb.mxu1 %v5794_v4  ;;  %3902 = vmatpush.bf16.msrb.mxu0 %v6242_v6  ;;  %v2156_v4 = vperm.slane %v2154_v31, 0 }
 0x212   :  { %3863 = vmatpush.bf16.msrb.mxu3 %v5570_v0  ;;  %3889 = vmatpush.bf16.msrb.mxu2 %v6018_v45  ;;  %v5853_v0 = vld [vmem:[%s10338_s8 + $0x318] sm:$0xf]  ;;  %v6741_v45 = vld [vmem:[%s10338_s8 + $0x330] sm:$0xf0] }
 0x213   :  { %v5854_v19 = vor.u32 %v6741_v45, %v5853_v0  ;;  %v6825_v0 = vld [vmem:[%s10338_s8 + $0x5d0] sm:$0xf0] }
 0x215   :  { %3877 = vmatpush.bf16.msrb.mxu1 %v5766_v10  ;;  %3903 = vmatpush.bf16.msrb.mxu0 %v6214_v11 }
 0x216   :  { %3864 = vmatpush.bf16.msrb.mxu3 %v5542_v20  ;;  %3890 = vmatpush.bf16.msrb.mxu2 %v5990_v22  ;;  %v6105_v20 = vld [vmem:[%s10338_s8 + $0x510] sm:$0xf] }
 0x219   :  { %3878 = vmatpush.bf16.msrb.mxu1 %v5738_v7  ;;  %3904 = vmatpush.bf16.msrb.mxu0 %v6186_v17  ;;  %v5657_v7 = vld [vmem:[%s10338_s8 + $0x190] sm:$0xf]  ;;  %v6692_v17 = vld [vmem:[%s10338_s8 + $0x1a8] sm:$0xf0] }
 0x21a   :  { %3865 = vmatpush.bf16.msrb.mxu3 %v5514_v2  ;;  %3891 = vmatpush.bf16.msrb.mxu2 %v5962_v40  ;;  %v6106_v2 = vor.u32 %v6804_v21, %v6105_v20  ;;  %v6685_v40 = vld [vmem:[%s10338_s8 + $0x170] sm:$0xf0]  ;;  %v6818_v20 = vld [vmem:[%s10338_s8 + $0x598] sm:$0xf0] }
 0x21b   :  { %v5630_v25 = vor.u32 %v6685_v40, %v5629_v39  ;;  %v6745_v40 = vld [vmem:[%s10338_s8 + $0x354] sm:$0xf] }
 0x21d   :  { %3879 = vmatpush.bf16.msrb.mxu1 %v5710_v26  ;;  %3905 = vmatpush.bf16.msrb.mxu0 %v6158_v32  ;;  %v5825_v26 = vld [vmem:[%s10338_s8 + $0x2e0] sm:$0xf]  ;;  %v5658_v32 = vor.u32 %v6692_v17, %v5657_v7 }
 0x21e   :  { %3866 = vmatpush.bf16.msrb.mxu3 %v5486_v30  ;;  %3892 = vmatpush.bf16.msrb.mxu2 %v5934_v47  ;;  %v5826_v15 = vor.u32 %v6734_v27, %v5825_v26  ;;  %v6245_v30 = vld [vmem:[%s10338_s8 + $0x628] sm:$0xf]  ;;  %v5713_v17 = vld [vmem:[%s10338_s8 + $0x200] sm:$0xf]  ;;  %v5965_v26 = vld [vmem:[%s10338_s8 + $0x3f8] sm:$0xf] }
 0x21f   :  { %v6246_v31 = vor.u32 %v6839_v35, %v6245_v30  ;;  %v6769_v27 = vld [vmem:[%s10338_s8 + $0x410] sm:$0xf0]  ;;  %v6762_v30 = vld [vmem:[%s10338_s8 + $0x3d8] sm:$0xf0] }
 0x221   :  { %3880 = vmatpush.bf16.msrb.mxu1 %v5682_v42  ;;  %3906 = vmatpush.bf16.msrb.mxu0 %v6130_v43  ;;  %v6797_v42 = vld [vmem:[%s10338_s8 + $0x4f0] sm:$0xf0]  ;;  %v5797_v43 = vld [vmem:[%s10338_s8 + $0x2a8] sm:$0xf] }
 0x222   :  { %3867 = vmatpush.bf16.msrb.mxu3 %v5458_v50  ;;  %3893 = vmatpush.bf16.msrb.mxu2 %v5906_v54  ;;  %v6078_v48 = vor.u32 %v6797_v42, %v6077_v41  ;;  %v6678_v50 = vld [vmem:[%s10338_s8 + $0x138] sm:$0xf0]  ;;  %v5798_v52 = vor.u32 %v6727_v44, %v5797_v43  ;;  %v6857_v41 = vld [vmem:[%s10338_s8 + $0x6d4] sm:$0xf]  ;;  %v5966_v42 = vor.u32 %v6769_v27, %v5965_v26  ;;  %v5489_v43 = vld [vmem:[%s10338_s8 + $0x40] sm:$0xf] }
 0x223   :  { %v6790_v54 = vld [vmem:[%s10338_s8 + $0x4b8] sm:$0xf0]  ;;  %v6787_v26 = vld [vmem:[%s10338_s8 + $0x4a4] sm:$0xf]  ;;  %v6051_v27 = vld [vmem:[%s10338_s8 + $0x4bc] sm:$0xf0] }
 0x224   :  { %v6050_v59 = vor.u32 %v6790_v54, %v6049_v53  ;;  %v6650_v44 = vld [vmem:[%s10338_s8 + $0x58] sm:$0xf0]  ;;  %v6303_v54 = vld [vmem:[%s10338_s8 + $0x6b4] sm:$0xf0] }
 0x225   :  { %v6850_v53 = vld [vmem:[%s10338_s8 + $0x69c] sm:$0xf] }
 0x280   :  { %v2346_v56 = vpop.f32.mrf.mxu1 }
 0x281   :  { %v2347_v55 = vadd.f32 %v2346_v56, %v2157_v61  ;;  %v2372_v58 = vpop.f32.mrf.mxu0  ;;  %v5769_v61 = vld [vmem:[%s10338_s8 + $0x270] sm:$0xf]  ;;  %v5602_v56 = vor.u32 %v6678_v50, %v5601_v49  ;;  %v5490_v50 = vor.u32 %v6650_v44, %v5489_v43  ;;  %v6023_v43 = vld [vmem:[%s10338_s8 + $0x484] sm:$0xf0] }
 0x282   :  { %v2373_v62 = vadd.f32 %v2372_v58, %v2159_v28  ;;  %v6720_v28 = vld [vmem:[%s10338_s8 + $0x288] sm:$0xf0] }
 0x283   :  { %v2377_v3 = vmax.f32 %v2347_v55, 0.0  ;;  %v6217_v55 = vld [vmem:[%s10338_s8 + $0x5f0] sm:$0xf]  ;;  %v6832_v58 = vld [vmem:[%s10338_s8 + $0x608] sm:$0xf0]  ;;  %v5770_v37 = vor.u32 %v6720_v28, %v5769_v61 }
 0x284   :  { %v2379_v6 = vmax.f32 %v2373_v62, 0.0  ;;  %v6671_v62 = vld [vmem:[%s10338_s8 + $0x100] sm:$0xf0]  ;;  %v5461_v61 = vld [vmem:[%s10338_s8 + $0x8] sm:$0xf] }
 0x285   :  { %v9319_v9 = vpack.c.bf16 %v2377_v3, %v2377_v3  ;;  %v6783_v3 = vld [vmem:[%s10338_s8 + $0x480] sm:$0xf0] }
 0x286   :  { %v9327_v10 = vpack.c.bf16 %v2379_v6, %v2379_v6  ;;  %v2333_v11 = vpop.f32.mrf.mxu3  ;;  %v5741_v6 = vld [vmem:[%s10338_s8 + $0x238] sm:$0xf]  ;;  %v6022_v45 = vor.u32 %v6783_v3, %v6021_v1  ;;  %v6643_v28 = vld [vmem:[%s10338_s8 + $0x20] sm:$0xf0]  ;;  %v6306_v1 = vor.u32 %v6850_v53, %v6303_v54  ;;  %v6773_v53 = vld [vmem:[%s10338_s8 + $0x434] sm:$0xf] }
 0x287   :  { %v2334_v14 = vadd.f32 %v2333_v11, %v2156_v4  ;;  %v2359_v16 = vpop.f32.mrf.mxu2  ;;  %3829 = vmatmul.bf16.vlgmr.msra.gmra.mxu1 %v9319_v9  ;;  %v6218_v4 = vor.u32 %v6832_v58, %v6217_v55  ;;  %v5545_v11 = vld [vmem:[%s10338_s8 + $0xb0] sm:$0xf]  ;;  %v6755_v55 = vld [vmem:[%s10338_s8 + $0x3a0] sm:$0xf0]  ;;  %v6689_v58 = vld [vmem:[%s10338_s8 + $0x194] sm:$0xf]  ;;  %v5462_v3 = vor.u32 %v6643_v28, %v5461_v61 }
 0x288   :  { %v2360_v18 = vadd.f32 %v2359_v16, %v2158_v8  ;;  %3855 = vmatmul.bf16.vlgmr.msra.gmra.mxu0 %v9327_v10  ;;  %3925 = vmatpush.bf16.msra.mxu1 %v5882_v63  ;;  %v2348_v5 = vpop.f32.mrf.mxu1  ;;  %v6713_v8 = vld [vmem:[%s10338_s8 + $0x250] sm:$0xf0]  ;;  %v5574_v63 = vor.u32 %v6671_v62, %v5573_v60  ;;  %v6776_v16 = vld [vmem:[%s10338_s8 + $0x448] sm:$0xf0]  ;;  %v5995_v54 = vld [vmem:[%s10338_s8 + $0x44c] sm:$0xf0] }
 0x289   :  { %v2376_v22 = vmax.f32 %v2334_v14, 0.0  ;;  %3951 = vmatpush.bf16.msra.mxu0 %v6330_v38  ;;  %v2374_v23 = vpop.f32.mrf.mxu0  ;;  %v6189_v38 = vld [vmem:[%s10338_s8 + $0x5b8] sm:$0xf]  ;;  %v5742_v13 = vor.u32 %v6713_v8, %v5741_v6  ;;  %v5993_v14 = vld [vmem:[%s10338_s8 + $0x430] sm:$0xf]  ;;  %v5546_v5 = vor.u32 %v6664_v12, %v5545_v11 }
 0x28a   :  { %v2378_v29 = vmax.f32 %v2360_v18, 0.0  ;;  %v6190_v7 = vor.u32 %v6825_v0, %v6189_v38  ;;  %v6706_v18 = vld [vmem:[%s10338_s8 + $0x218] sm:$0xf0]  ;;  %v5994_v21 = vor.u32 %v6776_v16, %v5993_v14  ;;  %v6657_v23 = vld [vmem:[%s10338_s8 + $0x90] sm:$0xf0] }
 0x28b   :  { %v9361_v36 = vpack.c.bf16 %v2376_v22, %v2376_v22  ;;  %v5517_v22 = vld [vmem:[%s10338_s8 + $0x78] sm:$0xf]  ;;  %v6801_v62 = vld [vmem:[%s10338_s8 + $0x514] sm:$0xf]  ;;  %v5827_v6 = vld [vmem:[%s10338_s8 + $0x2fc] sm:$0xf0] }
 0x28c   :  { %v9369_v51 = vpack.c.bf16 %v2378_v29, %v2378_v29  ;;  %3926 = vmatpush.bf16.msra.mxu1 %v5854_v19  ;;  %v6161_v19 = vld [vmem:[%s10338_s8 + $0x580] sm:$0xf]  ;;  %v5685_v29 = vld [vmem:[%s10338_s8 + $0x1c8] sm:$0xf]  ;;  %v5518_v39 = vor.u32 %v6657_v23, %v5517_v22  ;;  %v6843_v38 = vld [vmem:[%s10338_s8 + $0x664] sm:$0xf] }
 0x28d   :  { %3952 = vmatpush.bf16.msra.mxu0 %v6302_v24  ;;  %3816 = vmatmul.bf16.vlgmr.msra.gmra.mxu3 %v9361_v36  ;;  %v5714_v24 = vor.u32 %v6706_v18, %v5713_v17  ;;  %v6275_v0 = vld [vmem:[%s10338_s8 + $0x67c] sm:$0xf0]  ;;  %v6682_v11 = vld [vmem:[%s10338_s8 + $0x15c] sm:$0xf]  ;;  %v5631_v12 = vld [vmem:[%s10338_s8 + $0x174] sm:$0xf0] }
 0x28e   :  { %3842 = vmatmul.bf16.vlgmr.msra.gmra.mxu2 %v9369_v51  ;;  %3912 = vmatpush.bf16.msra.mxu3 %v5658_v32  ;;  %v2335_v46 = vpop.f32.mrf.mxu3  ;;  %v6162_v32 = vor.u32 %v6818_v20, %v6161_v19  ;;  %v6794_v14 = vld [vmem:[%s10338_s8 + $0x4dc] sm:$0xf]  ;;  %v6079_v16 = vld [vmem:[%s10338_s8 + $0x4f4] sm:$0xf0]  ;;  %v6724_v17 = vld [vmem:[%s10338_s8 + $0x2ac] sm:$0xf] }
 0x28f   :  { %3938 = vmatpush.bf16.msra.mxu2 %v6106_v2  ;;  %v2361_v47 = vpop.f32.mrf.mxu2  ;;  %v6811_v2 = vld [vmem:[%s10338_s8 + $0x560] sm:$0xf0]  ;;  %v5686_v46 = vor.u32 %v6699_v33, %v5685_v29  ;;  %v5799_v18 = vld [vmem:[%s10338_s8 + $0x2c4] sm:$0xf0]  ;;  %v6836_v19 = vld [vmem:[%s10338_s8 + $0x62c] sm:$0xf] }
 0x290   :  { %3927 = vmatpush.bf16.msra.mxu1 %v5826_v15  ;;  %v5883_v15 = vld [vmem:[%s10338_s8 + $0x36c] sm:$0xf0]  ;;  %v6134_v35 = vor.u32 %v6811_v2, %v6133_v34  ;;  %v6247_v20 = vld [vmem:[%s10338_s8 + $0x644] sm:$0xf0]  ;;  %v6675_v22 = vld [vmem:[%s10338_s8 + $0x124] sm:$0xf] }
 0x291   :  { %3953 = vmatpush.bf16.msra.mxu0 %v6274_v57  ;;  %v6331_v57 = vld [vmem:[%s10338_s8 + $0x6ec] sm:$0xf0]  ;;  %v5886_v47 = vor.u32 %v6745_v40, %v5883_v15  ;;  %v5603_v23 = vld [vmem:[%s10338_s8 + $0x13c] sm:$0xf0]  ;;  %v6250_v29 = vor.u32 %v6836_v19, %v6247_v20  ;;  %v6829_v2 = vld [vmem:[%s10338_s8 + $0x5f4] sm:$0xf]  ;;  %v6054_v40 = vor.u32 %v6787_v26, %v6051_v27 }
 0x292   :  { %3913 = vmatpush.bf16.msra.mxu3 %v5630_v25  ;;  %v5937_v25 = vld [vmem:[%s10338_s8 + $0x3c0] sm:$0xf]  ;;  %v6334_v49 = vor.u32 %v6857_v41, %v6331_v57  ;;  %v5771_v33 = vld [vmem:[%s10338_s8 + $0x28c] sm:$0xf0]  ;;  %v5606_v34 = vor.u32 %v6675_v22, %v5603_v23  ;;  %v6668_v15 = vld [vmem:[%s10338_s8 + $0xec] sm:$0xf] }
 0x293   :  { %3939 = vmatpush.bf16.msra.mxu2 %v6078_v48  ;;  %v6738_v48 = vld [vmem:[%s10338_s8 + $0x31c] sm:$0xf]  ;;  %v5575_v41 = vld [vmem:[%s10338_s8 + $0x104] sm:$0xf0]  ;;  %v6780_v57 = vld [vmem:[%s10338_s8 + $0x46c] sm:$0xf] }
 0x294   :  { %3928 = vmatpush.bf16.msra.mxu1 %v5798_v52  ;;  %v5855_v52 = vld [vmem:[%s10338_s8 + $0x334] sm:$0xf0]  ;;  %v6703_v61 = vld [vmem:[%s10338_s8 + $0x204] sm:$0xf]  ;;  %v5715_v28 = vld [vmem:[%s10338_s8 + $0x21c] sm:$0xf0] }
 0x295   :  { %3954 = vmatpush.bf16.msra.mxu0 %v6246_v31  ;;  %v5938_v31 = vor.u32 %v6762_v30, %v5937_v25  ;;  %v5858_v60 = vor.u32 %v6738_v48, %v5855_v52  ;;  %v5743_v25 = vld [vmem:[%s10338_s8 + $0x254] sm:$0xf0]  ;;  %v5578_v30 = vor.u32 %v6668_v15, %v5575_v41  ;;  %v6026_v48 = vor.u32 %v6780_v57, %v6023_v43  ;;  %v6309_v26 = vld [vmem:[%s10338_s8 + $0x6a0] sm:$0xf]  ;;  %v6854_v27 = vld [vmem:[%s10338_s8 + $0x6b8] sm:$0xf0] }
 0x296   :  { %3914 = vmatpush.bf16.msra.mxu3 %v5602_v56  ;;  %v5909_v56 = vld [vmem:[%s10338_s8 + $0x388] sm:$0xf]  ;;  %v6113_v41 = vld [vmem:[%s10338_s8 + $0x518] sm:$0xf]  ;;  %v6310_v57 = vor.u32 %v6854_v27, %v6309_v26  ;;  %v6777_v27 = vld [vmem:[%s10338_s8 + $0x450] sm:$0xf0] }
 0x297   :  { %3940 = vmatpush.bf16.msra.mxu2 %v6050_v59  ;;  %3881 = vmatmul.bf16.vlgmr.msrb.gmra.mxu1 %v9319_v9  ;;  %v5659_v59 = vld [vmem:[%s10338_s8 + $0x1ac] sm:$0xf0]  ;;  %v5910_v8 = vor.u32 %v6755_v55, %v5909_v56  ;;  %v6815_v55 = vld [vmem:[%s10338_s8 + $0x584] sm:$0xf]  ;;  %v6001_v26 = vld [vmem:[%s10338_s8 + $0x438] sm:$0xf] }
 0x298   :  { %3907 = vmatmul.bf16.vlgmr.msrb.gmra.mxu0 %v9327_v10  ;;  %3929 = vmatpush.bf16.msra.mxu1 %v5770_v37  ;;  %v6107_v37 = vld [vmem:[%s10338_s8 + $0x52c] sm:$0xf0] }
 0x299   :  { %3955 = vmatpush.bf16.msra.mxu0 %v6218_v4  ;;  %v6731_v4 = vld [vmem:[%s10338_s8 + $0x2e4] sm:$0xf] }
 0x29a   :  { %3915 = vmatpush.bf16.msra.mxu3 %v5574_v63  ;;  %v5662_v63 = vor.u32 %v6689_v58, %v5659_v59  ;;  %v6163_v58 = vld [vmem:[%s10338_s8 + $0x59c] sm:$0xf0]  ;;  %v5998_v59 = vor.u32 %v6773_v53, %v5995_v54  ;;  %v6798_v54 = vld [vmem:[%s10338_s8 + $0x4f8] sm:$0xf0] }
 0x29b   :  { %3941 = vmatpush.bf16.msra.mxu2 %v6022_v45  ;;  %v6110_v45 = vor.u32 %v6801_v62, %v6107_v37  ;;  %v5519_v62 = vld [vmem:[%s10338_s8 + $0x94] sm:$0xf0]  ;;  %v5718_v37 = vor.u32 %v6703_v61, %v5715_v28  ;;  %v6085_v53 = vld [vmem:[%s10338_s8 + $0x4e0] sm:$0xf]  ;;  %v5805_v61 = vld [vmem:[%s10338_s8 + $0x2b0] sm:$0xf] }
 0x29c   :  { %3930 = vmatpush.bf16.msra.mxu1 %v5742_v13  ;;  %v5830_v13 = vor.u32 %v6731_v4, %v5827_v6  ;;  %v6696_v4 = vld [vmem:[%s10338_s8 + $0x1cc] sm:$0xf]  ;;  %v6166_v6 = vor.u32 %v6815_v55, %v6163_v58  ;;  %v6253_v55 = vld [vmem:[%s10338_s8 + $0x630] sm:$0xf] }
 0x29d   :  { %3956 = vmatpush.bf16.msra.mxu0 %v6190_v7  ;;  %3868 = vmatmul.bf16.vlgmr.msrb.gmra.mxu3 %v9361_v36  ;;  %v6278_v7 = vor.u32 %v6843_v38, %v6275_v0  ;;  %v6135_v38 = vld [vmem:[%s10338_s8 + $0x564] sm:$0xf0]  ;;  %v6728_v28 = vld [vmem:[%s10338_s8 + $0x2c8] sm:$0xf0] }
 0x29e   :  { %3894 = vmatmul.bf16.vlgmr.msrb.gmra.mxu2 %v9369_v51  ;;  %3916 = vmatpush.bf16.msra.mxu3 %v5546_v5  ;;  %v5634_v5 = vor.u32 %v6682_v11, %v5631_v12  ;;  %v6749_v11 = vld [vmem:[%s10338_s8 + $0x370] sm:$0xf0]  ;;  %v6337_v12 = vld [vmem:[%s10338_s8 + $0x6d8] sm:$0xf]  ;;  %v6840_v58 = vld [vmem:[%s10338_s8 + $0x648] sm:$0xf0] }
 0x29f   :  { %3942 = vmatpush.bf16.msra.mxu2 %v5994_v21  ;;  %v6082_v21 = vor.u32 %v6794_v14, %v6079_v16  ;;  %v6861_v14 = vld [vmem:[%s10338_s8 + $0x6f0] sm:$0xf0]  ;;  %v6647_v16 = vld [vmem:[%s10338_s8 + $0x44] sm:$0xf] }
 0x2a0   :  { %3931 = vmatpush.bf16.msra.mxu1 %v5714_v24  ;;  %v5802_v24 = vor.u32 %v6724_v17, %v5799_v18  ;;  %v6759_v18 = vld [vmem:[%s10338_s8 + $0x3c4] sm:$0xf]  ;;  %v6338_v22 = vor.u32 %v6861_v14, %v6337_v12  ;;  %v6672_v12 = vld [vmem:[%s10338_s8 + $0x108] sm:$0xf0]  ;;  %v6029_v14 = vld [vmem:[%s10338_s8 + $0x470] sm:$0xf] }
 0x2a1   :  { %3957 = vmatpush.bf16.msra.mxu0 %v6162_v32  ;;  %v6717_v32 = vld [vmem:[%s10338_s8 + $0x274] sm:$0xf] }
 0x2a2   :  { %3917 = vmatpush.bf16.msra.mxu3 %v5518_v39  ;;  %v6219_v39 = vld [vmem:[%s10338_s8 + $0x60c] sm:$0xf0] }
 0x2a3   :  { %3943 = vmatpush.bf16.msra.mxu2 %v5966_v42  ;;  %v5774_v42 = vor.u32 %v6717_v32, %v5771_v33  ;;  %v6222_v44 = vor.u32 %v6829_v2, %v6219_v39  ;;  %v6640_v32 = vld [vmem:[%s10338_s8 + $0xc] sm:$0xf]  ;;  %v5463_v33 = vld [vmem:[%s10338_s8 + $0x24] sm:$0xf0]  ;;  %v5665_v39 = vld [vmem:[%s10338_s8 + $0x198] sm:$0xf] }
 0x2a4   :  { %3932 = vmatpush.bf16.msra.mxu1 %v5686_v46  ;;  %v6710_v46 = vld [vmem:[%s10338_s8 + $0x23c] sm:$0xf]  ;;  %v5911_v2 = vld [vmem:[%s10338_s8 + $0x3a4] sm:$0xf0]  ;;  %v5466_v43 = vor.u32 %v6640_v32, %v5463_v33  ;;  %v6707_v33 = vld [vmem:[%s10338_s8 + $0x220] sm:$0xf0] }
 0x2a5   :  { %3958 = vmatpush.bf16.msra.mxu0 %v6134_v35  ;;  %v6822_v35 = vld [vmem:[%s10338_s8 + $0x5bc] sm:$0xf]  ;;  %v5746_v52 = vor.u32 %v6710_v46, %v5743_v25  ;;  %v6735_v46 = vld [vmem:[%s10338_s8 + $0x300] sm:$0xf0]  ;;  %v5721_v32 = vld [vmem:[%s10338_s8 + $0x208] sm:$0xf] }
 0x2a6   :  { %3918 = vmatpush.bf16.msra.mxu3 %v5490_v50  ;;  %v5547_v50 = vld [vmem:[%s10338_s8 + $0xcc] sm:$0xf0] }
 0x2a7   :  { %3944 = vmatpush.bf16.msra.mxu2 %v5938_v31  ;;  %3933 = vmatmul.bf16.vlgmr.msra.gmra.mxu1 %v9319_v9 }
 0x2a8   :  { %3977 = vmatpush.bf16.msrb.mxu1 %v5886_v47  ;;  %3959 = vmatmul.bf16.vlgmr.msra.gmra.mxu0 %v9327_v10  ;;  %v6191_v47 = vld [vmem:[%s10338_s8 + $0x5d4] sm:$0xf0] }
 0x2a9   :  { %4003 = vmatpush.bf16.msrb.mxu0 %v6334_v49  ;;  %v6661_v49 = vld [vmem:[%s10338_s8 + $0xb4] sm:$0xf]  ;;  %v6194_v31 = vor.u32 %v6822_v35, %v6191_v47  ;;  %v6281_v35 = vld [vmem:[%s10338_s8 + $0x668] sm:$0xf]  ;;  %v6847_v47 = vld [vmem:[%s10338_s8 + $0x680] sm:$0xf0] }
 0x2aa   :  { %3919 = vmatpush.bf16.msra.mxu3 %v5462_v3  ;;  %v5550_v56 = vor.u32 %v6661_v49, %v5547_v50  ;;  %v5967_v3 = vld [vmem:[%s10338_s8 + $0x414] sm:$0xf0]  ;;  %v5637_v49 = vld [vmem:[%s10338_s8 + $0x160] sm:$0xf]  ;;  %v6686_v50 = vld [vmem:[%s10338_s8 + $0x178] sm:$0xf0] }
 0x2ab   :  { %3945 = vmatpush.bf16.msra.mxu2 %v5910_v8  ;;  %v5687_v8 = vld [vmem:[%s10338_s8 + $0x1e4] sm:$0xf0] }
 0x2ac   :  { %3978 = vmatpush.bf16.msrb.mxu1 %v5858_v60  ;;  %v6654_v60 = vld [vmem:[%s10338_s8 + $0x7c] sm:$0xf]  ;;  %v5690_v17 = vor.u32 %v6696_v4, %v5687_v8  ;;  %v6254_v4 = vor.u32 %v6840_v58, %v6253_v55  ;;  %v6721_v8 = vld [vmem:[%s10338_s8 + $0x290] sm:$0xf0] }
 0x2ad   :  { %4004 = vmatpush.bf16.msrb.mxu0 %v6306_v1  ;;  %3920 = vmatmul.bf16.vlgmr.msra.gmra.mxu3 %v9361_v36  ;;  %v6766_v1 = vld [vmem:[%s10338_s8 + $0x3fc] sm:$0xf]  ;;  %v5522_v0 = vor.u32 %v6654_v60, %v5519_v62  ;;  %v5609_v60 = vld [vmem:[%s10338_s8 + $0x128] sm:$0xf]  ;;  %v6679_v62 = vld [vmem:[%s10338_s8 + $0x140] sm:$0xf0] }
 0x2ae   :  { %3964 = vmatpush.bf16.msrb.mxu3 %v5662_v63  ;;  %3946 = vmatmul.bf16.vlgmr.msra.gmra.mxu2 %v9369_v51  ;;  %v6808_v63 = vld [vmem:[%s10338_s8 + $0x54c] sm:$0xf] }
 0x2af   :  { %3990 = vmatpush.bf16.msrb.mxu2 %v6110_v45  ;;  %v5889_v45 = vld [vmem:[%s10338_s8 + $0x358] sm:$0xf]  ;;  %v6138_v19 = vor.u32 %v6808_v63, %v6135_v38  ;;  %v5610_v63 = vor.u32 %v6679_v62, %v5609_v60 }
 0x2b0   :  { %3979 = vmatpush.bf16.msrb.mxu1 %v5830_v13  ;;  %v5970_v13 = vor.u32 %v6766_v1, %v5967_v3  ;;  %v5890_v20 = vor.u32 %v6749_v11, %v5889_v45  ;;  %v6057_v1 = vld [vmem:[%s10338_s8 + $0x4a8] sm:$0xf]  ;;  %v6791_v3 = vld [vmem:[%s10338_s8 + $0x4c0] sm:$0xf0]  ;;  %v6225_v38 = vld [vmem:[%s10338_s8 + $0x5f8] sm:$0xf] }
 0x2b1   :  { %4005 = vmatpush.bf16.msrb.mxu0 %v6278_v7  ;;  %v5491_v7 = vld [vmem:[%s10338_s8 + $0x5c] sm:$0xf0]  ;;  %v6058_v45 = vor.u32 %v6791_v3, %v6057_v1  ;;  %v5581_v11 = vld [vmem:[%s10338_s8 + $0xf0] sm:$0xf]  ;;  %v6851_v1 = vld [vmem:[%s10338_s8 + $0x6a4] sm:$0xf] }
 0x2b2   :  { %3965 = vmatpush.bf16.msrb.mxu3 %v5634_v5  ;;  %v5939_v5 = vld [vmem:[%s10338_s8 + $0x3dc] sm:$0xf0]  ;;  %v5494_v23 = vor.u32 %v6647_v16, %v5491_v7  ;;  %v6784_v16 = vld [vmem:[%s10338_s8 + $0x488] sm:$0xf0] }
 0x2b3   :  { %3991 = vmatpush.bf16.msrb.mxu2 %v6082_v21  ;;  %v5861_v21 = vld [vmem:[%s10338_s8 + $0x320] sm:$0xf] }
 0x2b4   :  { %3980 = vmatpush.bf16.msrb.mxu1 %v5802_v24  ;;  %v6742_v24 = vld [vmem:[%s10338_s8 + $0x338] sm:$0xf0]  ;;  %v6311_v3 = vld [vmem:[%s10338_s8 + $0x6bc] sm:$0xf0] }
 0x2b5   :  { %4006 = vmatpush.bf16.msrb.mxu0 %v6250_v29  ;;  %v5942_v29 = vor.u32 %v6759_v18, %v5939_v5  ;;  %v5862_v15 = vor.u32 %v6742_v24, %v5861_v21  ;;  %v6714_v18 = vld [vmem:[%s10338_s8 + $0x258] sm:$0xf0]  ;;  %v5582_v5 = vor.u32 %v6672_v12, %v5581_v11  ;;  %v6030_v21 = vor.u32 %v6784_v16, %v6029_v14 }
 0x2b6   :  { %3966 = vmatpush.bf16.msrb.mxu3 %v5606_v34  ;;  %v6752_v34 = vld [vmem:[%s10338_s8 + $0x38c] sm:$0xf]  ;;  %v6802_v12 = vld [vmem:[%s10338_s8 + $0x51c] sm:$0xf]  ;;  %v6314_v14 = vor.u32 %v6851_v1, %v6311_v3  ;;  %v6003_v3 = vld [vmem:[%s10338_s8 + $0x454] sm:$0xf0] }
 0x2b7   :  { %3992 = vmatpush.bf16.msrb.mxu2 %v6054_v40  ;;  %v6693_v40 = vld [vmem:[%s10338_s8 + $0x1b0] sm:$0xf0]  ;;  %v5914_v25 = vor.u32 %v6752_v34, %v5911_v2  ;;  %v6169_v2 = vld [vmem:[%s10338_s8 + $0x588] sm:$0xf]  ;;  %v6774_v1 = vld [vmem:[%s10338_s8 + $0x43c] sm:$0xf] }
 0x2b8   :  { %3981 = vmatpush.bf16.msrb.mxu1 %v5774_v42  ;;  %v6805_v42 = vld [vmem:[%s10338_s8 + $0x530] sm:$0xf0] }
 0x2b9   :  { %4007 = vmatpush.bf16.msrb.mxu0 %v6222_v44  ;;  %v5833_v44 = vld [vmem:[%s10338_s8 + $0x2e8] sm:$0xf] }
 0x2ba   :  { %3967 = vmatpush.bf16.msrb.mxu3 %v5578_v30  ;;  %v5666_v30 = vor.u32 %v6693_v40, %v5665_v39  ;;  %v6819_v39 = vld [vmem:[%s10338_s8 + $0x5a0] sm:$0xf0]  ;;  %v6002_v40 = vor.u32 %v6777_v27, %v6001_v26  ;;  %v6087_v27 = vld [vmem:[%s10338_s8 + $0x4fc] sm:$0xf0] }
 0x2bb   :  { %3993 = vmatpush.bf16.msrb.mxu2 %v6026_v48  ;;  %v6114_v48 = vor.u32 %v6805_v42, %v6113_v41  ;;  %v6658_v41 = vld [vmem:[%s10338_s8 + $0x98] sm:$0xf0]  ;;  %v5722_v42 = vor.u32 %v6707_v33, %v5721_v32  ;;  %v6795_v26 = vld [vmem:[%s10338_s8 + $0x4e4] sm:$0xf]  ;;  %v6725_v32 = vld [vmem:[%s10338_s8 + $0x2b4] sm:$0xf] }
 0x2bc   :  { %3982 = vmatpush.bf16.msrb.mxu1 %v5746_v52  ;;  %v5834_v52 = vor.u32 %v6735_v46, %v5833_v44  ;;  %v5693_v44 = vld [vmem:[%s10338_s8 + $0x1d0] sm:$0xf]  ;;  %v6170_v46 = vor.u32 %v6819_v39, %v6169_v2  ;;  %v6837_v2 = vld [vmem:[%s10338_s8 + $0x634] sm:$0xf] }
 0x2bd   :  { %4008 = vmatpush.bf16.msrb.mxu0 %v6194_v31  ;;  %v6282_v31 = vor.u32 %v6847_v47, %v6281_v35  ;;  %v6812_v35 = vld [vmem:[%s10338_s8 + $0x568] sm:$0xf0]  ;;  %v5807_v33 = vld [vmem:[%s10338_s8 + $0x2cc] sm:$0xf0] }
 0x2be   :  { %3968 = vmatpush.bf16.msrb.mxu3 %v5550_v56  ;;  %v5638_v56 = vor.u32 %v6686_v50, %v5637_v49  ;;  %v5891_v49 = vld [vmem:[%s10338_s8 + $0x374] sm:$0xf0]  ;;  %v6858_v50 = vld [vmem:[%s10338_s8 + $0x6dc] sm:$0xf]  ;;  %v6255_v39 = vld [vmem:[%s10338_s8 + $0x64c] sm:$0xf0] }
 0x2bf   :  { %3994 = vmatpush.bf16.msrb.mxu2 %v5998_v59  ;;  %v6086_v59 = vor.u32 %v6798_v54, %v6085_v53  ;;  %v6339_v53 = vld [vmem:[%s10338_s8 + $0x6f4] sm:$0xf0]  ;;  %v5497_v54 = vld [vmem:[%s10338_s8 + $0x48] sm:$0xf] }
 0x2c0   :  { %3983 = vmatpush.bf16.msrb.mxu1 %v5718_v37  ;;  %v5806_v37 = vor.u32 %v6728_v28, %v5805_v61  ;;  %v5945_v28 = vld [vmem:[%s10338_s8 + $0x3c8] sm:$0xf]  ;;  %v6342_v60 = vor.u32 %v6858_v50, %v6339_v53  ;;  %v5583_v50 = vld [vmem:[%s10338_s8 + $0x10c] sm:$0xf0]  ;;  %v6781_v53 = vld [vmem:[%s10338_s8 + $0x474] sm:$0xf] }
 0x2c1   :  { %4009 = vmatpush.bf16.msrb.mxu0 %v6166_v6  ;;  %v5777_v6 = vld [vmem:[%s10338_s8 + $0x278] sm:$0xf] }
 0x2c2   :  { %3969 = vmatpush.bf16.msrb.mxu3 %v5522_v0  ;;  %v6833_v0 = vld [vmem:[%s10338_s8 + $0x610] sm:$0xf0] }
 0x2c3   :  { %3995 = vmatpush.bf16.msrb.mxu2 %v5970_v13  ;;  %v5778_v13 = vor.u32 %v6721_v8, %v5777_v6  ;;  %v6226_v7 = vor.u32 %v6833_v0, %v6225_v38  ;;  %v5469_v6 = vld [vmem:[%s10338_s8 + $0x10] sm:$0xf]  ;;  %v6644_v8 = vld [vmem:[%s10338_s8 + $0x28] sm:$0xf0]  ;;  %v6690_v0 = vld [vmem:[%s10338_s8 + $0x19c] sm:$0xf] }
 0x2c4   :  { %3984 = vmatpush.bf16.msrb.mxu1 %v5690_v17  ;;  %v5749_v17 = vld [vmem:[%s10338_s8 + $0x240] sm:$0xf]  ;;  %v6756_v38 = vld [vmem:[%s10338_s8 + $0x3a8] sm:$0xf0]  ;;  %v5470_v16 = vor.u32 %v6644_v8, %v5469_v6  ;;  %v5723_v8 = vld [vmem:[%s10338_s8 + $0x224] sm:$0xf0] }
 0x2c5   :  { %4010 = vmatpush.bf16.msrb.mxu0 %v6138_v19  ;;  %v6197_v19 = vld [vmem:[%s10338_s8 + $0x5c0] sm:$0xf]  ;;  %v5750_v24 = vor.u32 %v6714_v18, %v5749_v17  ;;  %v5835_v17 = vld [vmem:[%s10338_s8 + $0x304] sm:$0xf0]  ;;  %v6704_v6 = vld [vmem:[%s10338_s8 + $0x20c] sm:$0xf] }
 0x2c6   :  { %3970 = vmatpush.bf16.msrb.mxu3 %v5494_v23  ;;  %v6665_v23 = vld [vmem:[%s10338_s8 + $0xd0] sm:$0xf0] }
 0x2c7   :  { %3996 = vmatpush.bf16.msrb.mxu2 %v5942_v29  ;;  %3985 = vmatmul.bf16.vlgmr.msrb.gmra.mxu1 %v9319_v9 }
 0x2c8   :  { %4029 = vmatpush.bf16.msra.mxu1 %v5890_v20  ;;  %4011 = vmatmul.bf16.vlgmr.msrb.gmra.mxu0 %v9327_v10  ;;  %v6826_v20 = vld [vmem:[%s10338_s8 + $0x5d8] sm:$0xf0] }
 0x2c9   :  { %4055 = vmatpush.bf16.msra.mxu0 %v6338_v22  ;;  %v5553_v22 = vld [vmem:[%s10338_s8 + $0xb8] sm:$0xf]  ;;  %v6198_v29 = vor.u32 %v6826_v20, %v6197_v19  ;;  %v6844_v19 = vld [vmem:[%s10338_s8 + $0x66c] sm:$0xf]  ;;  %v6283_v20 = vld [vmem:[%s10338_s8 + $0x684] sm:$0xf0] }
 0x2ca   :  { %3971 = vmatpush.bf16.msrb.mxu3 %v5466_v43  ;;  %v5554_v34 = vor.u32 %v6665_v23, %v5553_v22  ;;  %v6770_v43 = vld [vmem:[%s10338_s8 + $0x418] sm:$0xf0]  ;;  %v6683_v22 = vld [vmem:[%s10338_s8 + $0x164] sm:$0xf]  ;;  %v5639_v23 = vld [vmem:[%s10338_s8 + $0x17c] sm:$0xf0] }
 0x2cb   :  { %3997 = vmatpush.bf16.msrb.mxu2 %v5914_v25  ;;  %v6700_v25 = vld [vmem:[%s10338_s8 + $0x1e8] sm:$0xf0] }
 0x2cc   :  { %4030 = vmatpush.bf16.msra.mxu1 %v5862_v15  ;;  %v5525_v15 = vld [vmem:[%s10338_s8 + $0x80] sm:$0xf]  ;;  %v5694_v61 = vor.u32 %v6700_v25, %v5693_v44  ;;  %v6258_v44 = vor.u32 %v6837_v2, %v6255_v39  ;;  %v5779_v25 = vld [vmem:[%s10338_s8 + $0x294] sm:$0xf0] }
 0x2cd   :  { %4056 = vmatpush.bf16.msra.mxu0 %v6310_v57  ;;  %3972 = vmatmul.bf16.vlgmr.msrb.gmra.mxu3 %v9361_v36  ;;  %v5973_v57 = vld [vmem:[%s10338_s8 + $0x400] sm:$0xf]  ;;  %v5526_v47 = vor.u32 %v6658_v41, %v5525_v15  ;;  %v6676_v15 = vld [vmem:[%s10338_s8 + $0x12c] sm:$0xf]  ;;  %v5611_v41 = vld [vmem:[%s10338_s8 + $0x144] sm:$0xf0] }
 0x2ce   :  { %4016 = vmatpush.bf16.msra.mxu3 %v5666_v30  ;;  %3998 = vmatmul.bf16.vlgmr.msrb.gmra.mxu2 %v9369_v51  ;;  %v6141_v30 = vld [vmem:[%s10338_s8 + $0x550] sm:$0xf] }
 0x2cf   :  { %4042 = vmatpush.bf16.msra.mxu2 %v6114_v48  ;;  %v6746_v48 = vld [vmem:[%s10338_s8 + $0x35c] sm:$0xf]  ;;  %v6142_v55 = vor.u32 %v6812_v35, %v6141_v30  ;;  %v5614_v30 = vor.u32 %v6676_v15, %v5611_v41 }
 0x2d0   :  { %4031 = vmatpush.bf16.msra.mxu1 %v5834_v52  ;;  %v5974_v52 = vor.u32 %v6770_v43, %v5973_v57  ;;  %v5894_v58 = vor.u32 %v6746_v48, %v5891_v49  ;;  %v6788_v57 = vld [vmem:[%s10338_s8 + $0x4ac] sm:$0xf]  ;;  %v6059_v43 = vld [vmem:[%s10338_s8 + $0x4c4] sm:$0xf0]  ;;  %v6830_v35 = vld [vmem:[%s10338_s8 + $0x5fc] sm:$0xf] }
 0x2d1   :  { %4057 = vmatpush.bf16.msra.mxu0 %v6282_v31  ;;  %v6651_v31 = vld [vmem:[%s10338_s8 + $0x60] sm:$0xf0]  ;;  %v6062_v48 = vor.u32 %v6788_v57, %v6059_v43  ;;  %v6669_v49 = vld [vmem:[%s10338_s8 + $0xf4] sm:$0xf]  ;;  %v6317_v57 = vld [vmem:[%s10338_s8 + $0x6a8] sm:$0xf] }
 0x2d2   :  { %4017 = vmatpush.bf16.msra.mxu3 %v5638_v56  ;;  %v6763_v56 = vld [vmem:[%s10338_s8 + $0x3e0] sm:$0xf0]  ;;  %v5498_v62 = vor.u32 %v6651_v31, %v5497_v54  ;;  %v6031_v54 = vld [vmem:[%s10338_s8 + $0x48c] sm:$0xf0] }
 0x2d3   :  { %4043 = vmatpush.bf16.msra.mxu2 %v6086_v59  ;;  %v6739_v59 = vld [vmem:[%s10338_s8 + $0x324] sm:$0xf] }
 0x2d4   :  { %4032 = vmatpush.bf16.msra.mxu1 %v5806_v37  ;;  %v5863_v37 = vld [vmem:[%s10338_s8 + $0x33c] sm:$0xf0]  ;;  %v6855_v43 = vld [vmem:[%s10338_s8 + $0x6c0] sm:$0xf0] }
 0x2d5   :  { %4058 = vmatpush.bf16.msra.mxu0 %v6254_v4  ;;  %v5946_v4 = vor.u32 %v6763_v56, %v5945_v28  ;;  %v5866_v11 = vor.u32 %v6739_v59, %v5863_v37  ;;  %v5751_v28 = vld [vmem:[%s10338_s8 + $0x25c] sm:$0xf0]  ;;  %v5586_v56 = vor.u32 %v6669_v49, %v5583_v50  ;;  %v6034_v59 = vor.u32 %v6781_v53, %v6031_v54 }
 0x2d6   :  { %4018 = vmatpush.bf16.msra.mxu3 %v5610_v63  ;;  %v5917_v63 = vld [vmem:[%s10338_s8 + $0x390] sm:$0xf]  ;;  %v6121_v50 = vld [vmem:[%s10338_s8 + $0x520] sm:$0xf]  ;;  %v6318_v53 = vor.u32 %v6855_v43, %v6317_v57  ;;  %v6666_v43 = vld [vmem:[%s10338_s8 + $0xd8] sm:$0xf0] }
 0x2d7   :  { %4044 = vmatpush.bf16.msra.mxu2 %v6058_v45  ;;  %v5667_v45 = vld [vmem:[%s10338_s8 + $0x1b4] sm:$0xf0]  ;;  %v5918_v18 = vor.u32 %v6756_v38, %v5917_v63  ;;  %v6816_v38 = vld [vmem:[%s10338_s8 + $0x58c] sm:$0xf]  ;;  %v5561_v57 = vld [vmem:[%s10338_s8 + $0xc0] sm:$0xf] }
 0x2d8   :  { %4033 = vmatpush.bf16.msra.mxu1 %v5778_v13  ;;  %v6115_v13 = vld [vmem:[%s10338_s8 + $0x534] sm:$0xf0] }
 0x2d9   :  { %4059 = vmatpush.bf16.msra.mxu0 %v6226_v7  ;;  %v6732_v7 = vld [vmem:[%s10338_s8 + $0x2ec] sm:$0xf] }
 0x2da   :  { %4019 = vmatpush.bf16.msra.mxu3 %v5582_v5  ;;  %v5670_v5 = vor.u32 %v6690_v0, %v5667_v45  ;;  %v6171_v0 = vld [vmem:[%s10338_s8 + $0x5a4] sm:$0xf0]  ;;  %v6006_v45 = vor.u32 %v6774_v1, %v6003_v3  ;;  %v6799_v3 = vld [vmem:[%s10338_s8 + $0x500] sm:$0xf0] }
 0x2db   :  { %4045 = vmatpush.bf16.msra.mxu2 %v6030_v21  ;;  %v6118_v21 = vor.u32 %v6802_v12, %v6115_v13  ;;  %v5527_v12 = vld [vmem:[%s10338_s8 + $0x9c] sm:$0xf0]  ;;  %v5726_v13 = vor.u32 %v6704_v6, %v5723_v8  ;;  %v6093_v1 = vld [vmem:[%s10338_s8 + $0x4e8] sm:$0xf]  ;;  %v5813_v6 = vld [vmem:[%s10338_s8 + $0x2b8] sm:$0xf] }
 0x2dc   :  { %4034 = vmatpush.bf16.msra.mxu1 %v5750_v24  ;;  %v5838_v24 = vor.u32 %v6732_v7, %v5835_v17  ;;  %v6697_v7 = vld [vmem:[%s10338_s8 + $0x1d4] sm:$0xf]  ;;  %v6174_v17 = vor.u32 %v6816_v38, %v6171_v0  ;;  %v6261_v38 = vld [vmem:[%s10338_s8 + $0x638] sm:$0xf] }
 0x2dd   :  { %4060 = vmatpush.bf16.msra.mxu0 %v6198_v29  ;;  %v6286_v29 = vor.u32 %v6844_v19, %v6283_v20  ;;  %v6143_v19 = vld [vmem:[%s10338_s8 + $0x56c] sm:$0xf0]  ;;  %v6729_v8 = vld [vmem:[%s10338_s8 + $0x2d0] sm:$0xf0] }
 0x2de   :  { %4020 = vmatpush.bf16.msra.mxu3 %v5554_v34  ;;  %v5642_v34 = vor.u32 %v6683_v22, %v5639_v23  ;;  %v6750_v22 = vld [vmem:[%s10338_s8 + $0x378] sm:$0xf0]  ;;  %v6345_v23 = vld [vmem:[%s10338_s8 + $0x6e0] sm:$0xf]  ;;  %v6841_v0 = vld [vmem:[%s10338_s8 + $0x650] sm:$0xf0] }
 0x2df   :  { %4046 = vmatpush.bf16.msra.mxu2 %v6002_v40  ;;  %v6090_v40 = vor.u32 %v6795_v26, %v6087_v27  ;;  %v6862_v26 = vld [vmem:[%s10338_s8 + $0x6f8] sm:$0xf0]  ;;  %v6648_v27 = vld [vmem:[%s10338_s8 + $0x4c] sm:$0xf] }
 0x2e0   :  { %4035 = vmatpush.bf16.msra.mxu1 %v5722_v42  ;;  %v5810_v42 = vor.u32 %v6725_v32, %v5807_v33  ;;  %v6760_v33 = vld [vmem:[%s10338_s8 + $0x3cc] sm:$0xf]  ;;  %v6346_v15 = vor.u32 %v6862_v26, %v6345_v23  ;;  %v6673_v26 = vld [vmem:[%s10338_s8 + $0x110] sm:$0xf0] }
 0x2e1   :  { %4061 = vmatpush.bf16.msra.mxu0 %v6170_v46  ;;  %v6718_v46 = vld [vmem:[%s10338_s8 + $0x27c] sm:$0xf] }
 0x2e2   :  { %4021 = vmatpush.bf16.msra.mxu3 %v5526_v47  ;;  %v6227_v47 = vld [vmem:[%s10338_s8 + $0x614] sm:$0xf0] }
 0x2e3   :  { %4047 = vmatpush.bf16.msra.mxu2 %v5974_v52  ;;  %v5782_v52 = vor.u32 %v6718_v46, %v5779_v25  ;;  %v6230_v31 = vor.u32 %v6830_v35, %v6227_v47  ;;  %v6641_v46 = vld [vmem:[%s10338_s8 + $0x14] sm:$0xf]  ;;  %v5471_v25 = vld [vmem:[%s10338_s8 + $0x2c] sm:$0xf0]  ;;  %v5673_v47 = vld [vmem:[%s10338_s8 + $0x1a0] sm:$0xf] }
 0x2e4   :  { %4036 = vmatpush.bf16.msra.mxu1 %v5694_v61  ;;  %v6711_v61 = vld [vmem:[%s10338_s8 + $0x244] sm:$0xf]  ;;  %v5919_v35 = vld [vmem:[%s10338_s8 + $0x3ac] sm:$0xf0]  ;;  %v5474_v54 = vor.u32 %v6641_v46, %v5471_v25  ;;  %v6009_v25 = vld [vmem:[%s10338_s8 + $0x440] sm:$0xf] }
 0x2e5   :  { %4062 = vmatpush.bf16.msra.mxu0 %v6142_v55  ;;  %v6823_v55 = vld [vmem:[%s10338_s8 + $0x5c4] sm:$0xf]  ;;  %v5754_v37 = vor.u32 %v6711_v61, %v5751_v28  ;;  %v6736_v61 = vld [vmem:[%s10338_s8 + $0x308] sm:$0xf0] }
 0x2e6   :  { %4022 = vmatpush.bf16.msra.mxu3 %v5498_v62  ;;  %v5555_v62 = vld [vmem:[%s10338_s8 + $0xd4] sm:$0xf0] }
 0x2e7   :  { %4048 = vmatpush.bf16.msra.mxu2 %v5946_v4  ;;  %4037 = vmatmul.bf16.vlgmr.msra.gmra.mxu1 %v9319_v9 }
 0x2e8   :  { %4081 = vmatpush.bf16.msrb.mxu1 %v5894_v58  ;;  %4063 = vmatmul.bf16.vlgmr.msra.gmra.mxu0 %v9327_v10  ;;  %v6199_v58 = vld [vmem:[%s10338_s8 + $0x5dc] sm:$0xf0] }
 0x2e9   :  { %4107 = vmatpush.bf16.msrb.mxu0 %v6342_v60  ;;  %v6662_v60 = vld [vmem:[%s10338_s8 + $0xbc] sm:$0xf]  ;;  %v6202_v4 = vor.u32 %v6823_v55, %v6199_v58  ;;  %v6289_v55 = vld [vmem:[%s10338_s8 + $0x670] sm:$0xf]  ;;  %v6848_v58 = vld [vmem:[%s10338_s8 + $0x688] sm:$0xf0] }
 0x2ea   :  { %4023 = vmatpush.bf16.msra.mxu3 %v5470_v16  ;;  %v5558_v63 = vor.u32 %v6662_v60, %v5555_v62  ;;  %v5975_v16 = vld [vmem:[%s10338_s8 + $0x41c] sm:$0xf0]  ;;  %v5645_v60 = vld [vmem:[%s10338_s8 + $0x168] sm:$0xf]  ;;  %v6687_v62 = vld [vmem:[%s10338_s8 + $0x180] sm:$0xf0] }
 0x2eb   :  { %4049 = vmatpush.bf16.msra.mxu2 %v5918_v18  ;;  %v5695_v18 = vld [vmem:[%s10338_s8 + $0x1ec] sm:$0xf0] }
 0x2ec   :  { %4082 = vmatpush.bf16.msrb.mxu1 %v5866_v11  ;;  %v6655_v11 = vld [vmem:[%s10338_s8 + $0x84] sm:$0xf]  ;;  %v5698_v32 = vor.u32 %v6697_v7, %v5695_v18  ;;  %v6792_v7 = vld [vmem:[%s10338_s8 + $0x4c8] sm:$0xf0]  ;;  %v6262_v18 = vor.u32 %v6841_v0, %v6261_v38  ;;  %v5505_v0 = vld [vmem:[%s10338_s8 + $0x50] sm:$0xf] }
 0x2ed   :  { %4108 = vmatpush.bf16.msrb.mxu0 %v6314_v14  ;;  %4024 = vmatmul.bf16.vlgmr.msra.gmra.mxu3 %v9361_v36  ;;  %v6767_v14 = vld [vmem:[%s10338_s8 + $0x404] sm:$0xf]  ;;  %v5530_v20 = vor.u32 %v6655_v11, %v5527_v12  ;;  %v5617_v11 = vld [vmem:[%s10338_s8 + $0x130] sm:$0xf]  ;;  %v6680_v12 = vld [vmem:[%s10338_s8 + $0x148] sm:$0xf0] }
 0x2ee   :  { %4068 = vmatpush.bf16.msrb.mxu3 %v5670_v5  ;;  %4050 = vmatmul.bf16.vlgmr.msra.gmra.mxu2 %v9369_v51  ;;  %v6809_v5 = vld [vmem:[%s10338_s8 + $0x554] sm:$0xf] }
 0x2ef   :  { %4094 = vmatpush.bf16.msrb.mxu2 %v6118_v21  ;;  %v5897_v21 = vld [vmem:[%s10338_s8 + $0x360] sm:$0xf]  ;;  %v6146_v2 = vor.u32 %v6809_v5, %v6143_v19  ;;  %v6722_v19 = vld [vmem:[%s10338_s8 + $0x298] sm:$0xf0] }
 0x2f0   :  { %4083 = vmatpush.bf16.msrb.mxu1 %v5838_v24  ;;  %v5978_v24 = vor.u32 %v6767_v14, %v5975_v16  ;;  %v5898_v39 = vor.u32 %v6750_v22, %v5897_v21  ;;  %v5814_v14 = vor.u32 %v6729_v8, %v5813_v6  ;;  %v6065_v16 = vld [vmem:[%s10338_s8 + $0x4b0] sm:$0xf]  ;;  %v5785_v5 = vld [vmem:[%s10338_s8 + $0x280] sm:$0xf]  ;;  %v6834_v22 = vld [vmem:[%s10338_s8 + $0x618] sm:$0xf0] }
 0x2f1   :  { %4109 = vmatpush.bf16.msrb.mxu0 %v6286_v29  ;;  %v5499_v29 = vld [vmem:[%s10338_s8 + $0x64] sm:$0xf0]  ;;  %v6233_v21 = vld [vmem:[%s10338_s8 + $0x600] sm:$0xf]  ;;  %v6066_v23 = vor.u32 %v6792_v7, %v6065_v16  ;;  %v6149_v6 = vld [vmem:[%s10338_s8 + $0x558] sm:$0xf] }
 0x2f2   :  { %4069 = vmatpush.bf16.msrb.mxu3 %v5642_v34  ;;  %v5947_v34 = vld [vmem:[%s10338_s8 + $0x3e4] sm:$0xf0]  ;;  %v5502_v41 = vor.u32 %v6648_v27, %v5499_v29  ;;  %v5786_v27 = vor.u32 %v6722_v19, %v5785_v5  ;;  %v6037_v29 = vld [vmem:[%s10338_s8 + $0x478] sm:$0xf]  ;;  %v6813_v8 = vld [vmem:[%s10338_s8 + $0x570] sm:$0xf0] }
 0x2f3   :  { %4095 = vmatpush.bf16.msrb.mxu2 %v6090_v40  ;;  %v5869_v40 = vld [vmem:[%s10338_s8 + $0x328] sm:$0xf] }
 0x2f4   :  { %4084 = vmatpush.bf16.msrb.mxu1 %v5810_v42  ;;  %v6743_v42 = vld [vmem:[%s10338_s8 + $0x340] sm:$0xf0] }
 0x2f5   :  { %4110 = vmatpush.bf16.msrb.mxu0 %v6258_v44  ;;  %v5950_v44 = vor.u32 %v6760_v33, %v5947_v34  ;;  %v5870_v49 = vor.u32 %v6743_v42, %v5869_v40  ;;  %v6234_v33 = vor.u32 %v6834_v22, %v6233_v21  ;;  %v5757_v34 = vld [vmem:[%s10338_s8 + $0x248] sm:$0xf]  ;;  %v6645_v21 = vld [vmem:[%s10338_s8 + $0x30] sm:$0xf0] }
 0x2f6   :  { %4070 = vmatpush.bf16.msrb.mxu3 %v5614_v30  ;;  %v6753_v30 = vld [vmem:[%s10338_s8 + $0x394] sm:$0xf]  ;;  %v6205_v40 = vld [vmem:[%s10338_s8 + $0x5c8] sm:$0xf] }
 0x2f7   :  { %4096 = vmatpush.bf16.msrb.mxu2 %v6062_v48  ;;  %v6694_v48 = vld [vmem:[%s10338_s8 + $0x1b8] sm:$0xf0]  ;;  %v5922_v28 = vor.u32 %v6753_v30, %v5919_v35 }
 0x2f8   :  { %4085 = vmatpush.bf16.msrb.mxu1 %v5782_v52  ;;  %v6806_v52 = vld [vmem:[%s10338_s8 + $0x538] sm:$0xf0] }
 0x2f9   :  { %4111 = vmatpush.bf16.msrb.mxu0 %v6230_v31  ;;  %v5841_v31 = vld [vmem:[%s10338_s8 + $0x2f0] sm:$0xf]  ;;  %v6778_v30 = vld [vmem:[%s10338_s8 + $0x458] sm:$0xf0] }
 0x2fa   :  { %4071 = vmatpush.bf16.msrb.mxu3 %v5586_v56  ;;  %v5674_v56 = vor.u32 %v6694_v48, %v5673_v47 }
 0x2fb   :  { %4097 = vmatpush.bf16.msrb.mxu2 %v6034_v59  ;;  %v6122_v59 = vor.u32 %v6806_v52, %v6121_v50  ;;  %v6708_v50 = vld [vmem:[%s10338_s8 + $0x228] sm:$0xf0]  ;;  %v5562_v52 = vor.u32 %v6666_v43, %v5561_v57 }
 0x2fc   :  { %4086 = vmatpush.bf16.msrb.mxu1 %v5754_v37  ;;  %v5842_v37 = vor.u32 %v6736_v61, %v5841_v31  ;;  %v6010_v31 = vor.u32 %v6778_v30, %v6009_v25  ;;  %v5533_v61 = vld [vmem:[%s10338_s8 + $0x88] sm:$0xf] }
 0x2fd   :  { %4112 = vmatpush.bf16.msrb.mxu0 %v6202_v4  ;;  %v6290_v4 = vor.u32 %v6848_v58, %v6289_v55  ;;  %v5981_v58 = vld [vmem:[%s10338_s8 + $0x408] sm:$0xf] }
 0x2fe   :  { %4072 = vmatpush.bf16.msrb.mxu3 %v5558_v63  ;;  %v5646_v63 = vor.u32 %v6687_v62, %v5645_v60 }
 0x2ff   :  { %4098 = vmatpush.bf16.msrb.mxu2 %v6006_v45  ;;  %v6094_v45 = vor.u32 %v6799_v3, %v6093_v1  ;;  %v5701_v1 = vld [vmem:[%s10338_s8 + $0x1d8] sm:$0xf]  ;;  %v6701_v3 = vld [vmem:[%s10338_s8 + $0x1f0] sm:$0xf0] }
 0x300   :  { %4087 = vmatpush.bf16.msrb.mxu1 %v5726_v13 }
 0x301   :  { %4113 = vmatpush.bf16.msrb.mxu0 %v6174_v17 }
 0x302   :  { %4073 = vmatpush.bf16.msrb.mxu3 %v5530_v20  ;;  %v5618_v20 = vor.u32 %v6680_v12, %v5617_v11  ;;  %v5702_v12 = vor.u32 %v6701_v3, %v5701_v1 }
 0x303   :  { %4099 = vmatpush.bf16.msrb.mxu2 %v5978_v24  ;;  %v5589_v24 = vld [vmem:[%s10338_s8 + $0xf8] sm:$0xf] }
 0x304   :  { %4088 = vmatpush.bf16.msrb.mxu1 %v5698_v32  ;;  %v10184_v13 = vpop.f32.mrf.mxu1  ;;  %v6785_v32 = vld [vmem:[%s10338_s8 + $0x490] sm:$0xf0] }
 0x305   :  { %4114 = vmatpush.bf16.msrb.mxu0 %v6146_v2  ;;  %v10193_v17 = vpop.f32.mrf.mxu0  ;;  %v6715_v2 = vld [vmem:[%s10338_s8 + $0x260] sm:$0xf0]  ;;  %v6038_v42 = vor.u32 %v6785_v32, %v6037_v29 }
 0x306   :  { %4074 = vmatpush.bf16.msrb.mxu3 %v5502_v41  ;;  %v10234_v41 = vld [vmem:[%s10339_s9] sm:$0x7f]  ;;  %v5758_v46 = vor.u32 %v6715_v2, %v5757_v34 }
 0x307   :  { %4100 = vmatpush.bf16.msrb.mxu2 %v5950_v44  ;;  %4089 = vmatmul.bf16.vlgmr.msrb.gmra.mxu1 %v9319_v9  ;;  %v2642_v48 = vperm.slane %v10234_v41, 0 }
 0x308   :  { %4133 = vmatpush.bf16.msra.mxu1 %v5898_v39  ;;  %4115 = vmatmul.bf16.vlgmr.msrb.gmra.mxu0 %v9327_v10  ;;  %v5590_v39 = vor.u32 %v6673_v26, %v5589_v24  ;;  %v6757_v24 = vld [vmem:[%s10338_s8 + $0x3b0] sm:$0xf0] }
 0x309   :  { %4159 = vmatpush.bf16.msra.mxu0 %v6346_v15  ;;  %v6827_v15 = vld [vmem:[%s10338_s8 + $0x5e0] sm:$0xf0] }
 0x30a   :  { %4075 = vmatpush.bf16.msrb.mxu3 %v5474_v54  ;;  %v6206_v47 = vor.u32 %v6827_v15, %v6205_v40  ;;  %v6820_v54 = vld [vmem:[%s10338_s8 + $0x5a8] sm:$0xf0] }
 0x30b   :  { %4101 = vmatpush.bf16.msrb.mxu2 %v5922_v28  ;;  %v6659_v28 = vld [vmem:[%s10338_s8 + $0xa0] sm:$0xf0] }
 0x30c   :  { %4134 = vmatpush.bf16.msra.mxu1 %v5870_v49  ;;  %v3832_v44 = vpop.f32.mrf.mxu1  ;;  %v5729_v49 = vld [vmem:[%s10338_s8 + $0x210] sm:$0xf] }
 0x30d   :  { %4160 = vmatpush.bf16.msra.mxu0 %v6318_v53  ;;  %4076 = vmatmul.bf16.vlgmr.msrb.gmra.mxu3 %v9361_v36  ;;  %v3858_v35 = vpop.f32.mrf.mxu0  ;;  %v6177_v53 = vld [vmem:[%s10338_s8 + $0x590] sm:$0xf]  ;;  %v5730_v55 = vor.u32 %v6708_v50, %v5729_v49 }
 0x30e   :  { %4120 = vmatpush.bf16.msra.mxu3 %v5674_v56  ;;  %4102 = vmatmul.bf16.vlgmr.msrb.gmra.mxu2 %v9369_v51 }
 0x30f   :  { %4146 = vmatpush.bf16.msra.mxu2 %v6122_v59  ;;  %v6771_v59 = vld [vmem:[%s10338_s8 + $0x420] sm:$0xf0] }
 0x310   :  { %4135 = vmatpush.bf16.msra.mxu1 %v5842_v37  ;;  %v3817_v56 = vpop.f32.mrf.mxu3  ;;  %v6178_v37 = vor.u32 %v6820_v54, %v6177_v53  ;;  %v5982_v38 = vor.u32 %v6771_v59, %v5981_v58  ;;  %v2644_v54 = vperm.slane %v10234_v41, 2 }
 0x311   :  { %4161 = vmatpush.bf16.msra.mxu0 %v6290_v4  ;;  %v3818_v60 = vadd.f32 %v3817_v56, %v2642_v48  ;;  %v3843_v62 = vpop.f32.mrf.mxu2  ;;  %v5534_v4 = vor.u32 %v6659_v28, %v5533_v61 }
 0x312   :  { %4121 = vmatpush.bf16.msra.mxu3 %v5646_v63 }
 0x313   :  { %4147 = vmatpush.bf16.msra.mxu2 %v6094_v45  ;;  %v3831_v63 = vadd.f32 %v10184_v13, %v3818_v60  ;;  %v6652_v45 = vld [vmem:[%s10338_s8 + $0x68] sm:$0xf0] }
 0x314   :  { %4136 = vmatpush.bf16.msra.mxu1 %v5814_v14  ;;  %v3882_v11 = vpop.f32.mrf.mxu1  ;;  %v5953_v14 = vld [vmem:[%s10338_s8 + $0x3d0] sm:$0xf]  ;;  %v6764_v13 = vld [vmem:[%s10338_s8 + $0x3e8] sm:$0xf0]  ;;  %v5506_v5 = vor.u32 %v6652_v45, %v5505_v0  ;;  %v2645_v45 = vperm.slane %v10234_v41, 3 }
 0x315   :  { %4162 = vmatpush.bf16.msra.mxu0 %v6262_v18  ;;  %v3844_v16 = vadd.f32 %v3843_v62, %v3831_v63  ;;  %v3908_v7 = vpop.f32.mrf.mxu0  ;;  %v6150_v18 = vor.u32 %v6813_v8, %v6149_v6  ;;  %v5954_v19 = vor.u32 %v6764_v13, %v5953_v14 }
 0x316   :  { %4122 = vmatpush.bf16.msra.mxu3 %v5618_v20  ;;  %v5477_v20 = vld [vmem:[%s10338_s8 + $0x18] sm:$0xf] }
 0x317   :  { %4148 = vmatpush.bf16.msra.mxu2 %v6066_v23  ;;  %v5925_v23 = vld [vmem:[%s10338_s8 + $0x398] sm:$0xf]  ;;  %v3857_v26 = vadd.f32 %v10193_v17, %v3844_v16  ;;  %v5478_v29 = vor.u32 %v6645_v21, %v5477_v20 }
 0x318   :  { %4137 = vmatpush.bf16.msra.mxu1 %v5786_v27  ;;  %v3819_v22 = vpop.f32.mrf.mxu3  ;;  %v5926_v32 = vor.u32 %v6757_v24, %v5925_v23 }
 0x319   :  { %4163 = vmatpush.bf16.msra.mxu0 %v6234_v33  ;;  %v3845_v27 = vpop.f32.mrf.mxu2  ;;  %v4172_v34 = vsub.f32 0.0, %v3857_v26 }
 0x31a   :  { %4123 = vmatpush.bf16.msra.mxu3 %v5590_v39  ;;  %v2643_v39 = vperm.slane %v10234_v41, 1 }
 0x31b   :  { %4149 = vmatpush.bf16.msra.mxu2 %v6038_v42  ;;  %v4179_v15 = vmul.f32 1.442695, %v4172_v34 }
 0x31c   :  { %4138 = vmatpush.bf16.msra.mxu1 %v5758_v46  ;;  %v3884_v33 = vpop.f32.mrf.mxu1 }
 0x31d   :  { %4164 = vmatpush.bf16.msra.mxu0 %v6206_v47  ;;  %v3910_v2 = vpop.f32.mrf.mxu0  ;;  %6869 = vpow2.f32 %v4179_v15 }
 0x31e   :  { %4124 = vmatpush.bf16.msra.mxu3 %v5562_v52 }
 0x31f   :  { %4150 = vmatpush.bf16.msra.mxu2 %v6010_v31 }
 0x320   :  { %4139 = vmatpush.bf16.msra.mxu1 %v5730_v55  ;;  %v3869_v40 = vpop.f32.mrf.mxu3 }
 0x321   :  { %4165 = vmatpush.bf16.msra.mxu0 %v6178_v37  ;;  %v3870_v17 = vadd.f32 %v3869_v40, %v2643_v39  ;;  %v3895_v42 = vpop.f32.mrf.mxu2 }
 0x322   :  { %4125 = vmatpush.bf16.msra.mxu3 %v5534_v4 }
 0x323   :  { %4151 = vmatpush.bf16.msra.mxu2 %v5982_v38  ;;  %v3883_v57 = vadd.f32 %v3882_v11, %v3870_v17  ;;  %v6870_v35 = vpop.eup %6869 }
 0x324   :  { %4140 = vmatpush.bf16.msra.mxu1 %v5702_v12  ;;  %v4193_v50 = vadd.f32 1.0, %v6870_v35 }
 0x325   :  { %4166 = vmatpush.bf16.msra.mxu0 %v6150_v18  ;;  %v3896_v43 = vadd.f32 %v3895_v42, %v3883_v57 }
 0x326   :  { %4126 = vmatpush.bf16.msra.mxu3 %v5506_v5 }
 0x327   :  { %4152 = vmatpush.bf16.msra.mxu2 %v5954_v19  ;;  %4141 = vmatmul.bf16.vlgmr.msra.gmra.mxu1 %v9319_v9  ;;  %v3934_v9 = vpop.f32.mrf.mxu1  ;;  %v3909_v44 = vadd.f32 %v3908_v7, %v3896_v43  ;;  %v2646_v43 = vperm.slane %v10234_v41, 4 }
 0x328   :  { %4167 = vmatmul.bf16.vlgmr.msra.gmra.mxu0 %v9327_v10  ;;  %v3960_v10 = vpop.f32.mrf.mxu0  ;;  %v3871_v46 = vpop.f32.mrf.mxu3 }
 0x329   :  { %v4173_v25 = vsub.f32 0.0, %v3909_v44  ;;  %v3897_v30 = vpop.f32.mrf.mxu2 }
 0x32a   :  { %4127 = vmatpush.bf16.msra.mxu3 %v5478_v29 }
 0x32b   :  { %4153 = vmatpush.bf16.msra.mxu2 %v5926_v32  ;;  %v4181_v47 = vmul.f32 1.442695, %v4173_v25 }
 0x32d   :  { %4128 = vmatmul.bf16.vlgmr.msra.gmra.mxu3 %v9361_v36  ;;  %6871 = vpow2.f32 %v4181_v47 }
 0x32e   :  { %4154 = vmatmul.bf16.vlgmr.msra.gmra.mxu2 %v9369_v51  ;;  %6873 = vrcp.f32 %v4193_v50 }
 0x32f   :  { %v3936_v48 = vpop.f32.mrf.mxu1 }
 0x330   :  { %v3962_v49 = vpop.f32.mrf.mxu0  ;;  %v3921_v52 = vpop.f32.mrf.mxu3 }
 0x331   :  { %v3947_v53 = vpop.f32.mrf.mxu2  ;;  %v3922_v56 = vadd.f32 %v3921_v52, %v2644_v54 }
 0x333   :  { %v6872_v36 = vpop.eup %6871  ;;  %v3935_v60 = vadd.f32 %v3934_v9, %v3922_v56 }
 0x334   :  { %v4194_v51 = vadd.f32 1.0, %v6872_v36  ;;  %v6874_v31 = vpop.eup %6873 }
 0x335   :  { %v4207_v55 = vmax.f32 %v6874_v31, 0.0  ;;  %v3948_v4 = vadd.f32 %v3947_v53, %v3935_v60  ;;  %v2647_v53 = vperm.slane %v10234_v41, 5 }
 0x336   :  { %6875 = vrcp.f32 %v4194_v51 }
 0x337   :  { %v4214_v62 = vmin.f32 %v4207_v55, 1.0  ;;  %v3961_v8 = vadd.f32 %v3960_v10, %v3948_v4 }
 0x338   :  { %v3923_v61 = vpop.f32.mrf.mxu3 }
 0x339   :  { %v3949_v28 = vpop.f32.mrf.mxu2  ;;  %v4174_v38 = vsub.f32 0.0, %v3961_v8 }
 0x33b   :  { %v4183_v12 = vmul.f32 1.442695, %v4174_v38 }
 0x33c   :  { %v6876_v58 = vpop.eup %6875 }
 0x33d   :  { %v4208_v59 = vmax.f32 %v6876_v58, 0.0  ;;  %6877 = vpow2.f32 %v4183_v12 }
 0x33f   :  { %v4215_v37 = vmin.f32 %v4208_v59, 1.0 }
 0x341   :  { %v4221_v3 = vpack.c.bf16 %v4215_v37, %v4214_v62 }
 0x343   :  { %4225 = vst [vmem:[#allocation3] sm:$0xff] %v4221_v3  ;;  %v6878_v21 = vpop.eup %6877 }
 0x344   :  { %v3986_v1 = vpop.f32.mrf.mxu1  ;;  %v4195_v23 = vadd.f32 1.0, %v6878_v21 }
 0x345   :  { %v4012_v6 = vpop.f32.mrf.mxu0 }
 0x34c   :  { %v3988_v63 = vpop.f32.mrf.mxu1 }
 0x34d   :  { %v4014_v0 = vpop.f32.mrf.mxu0 }
 0x34e   :  { %v2648_v0 = vperm.slane %v10234_v41, 6 }
 0x350   :  { %v3973_v11 = vpop.f32.mrf.mxu3 }
 0x351   :  { %v3974_v14 = vadd.f32 %v3973_v11, %v2645_v45  ;;  %v3999_v13 = vpop.f32.mrf.mxu2 }
 0x353   :  { %v3987_v16 = vadd.f32 %v3986_v1, %v3974_v14 }
 0x355   :  { %v4000_v7 = vadd.f32 %v3999_v13, %v3987_v16 }
 0x357   :  { %v4013_v18 = vadd.f32 %v4012_v6, %v4000_v7 }
 0x358   :  { %v3975_v5 = vpop.f32.mrf.mxu3 }
 0x359   :  { %v4175_v19 = vsub.f32 0.0, %v4013_v18  ;;  %v4001_v20 = vpop.f32.mrf.mxu2 }
 0x35b   :  { %v4185_v22 = vmul.f32 1.442695, %v4175_v19 }
 0x35d   :  { %6879 = vpow2.f32 %v4185_v22 }
 0x35e   :  { %6881 = vrcp.f32 %v4195_v23 }
 0x363   :  { %v6880_v27 = vpop.eup %6879 }
 0x364   :  { %v4038_v24 = vpop.f32.mrf.mxu1  ;;  %v4196_v29 = vadd.f32 1.0, %v6880_v27  ;;  %v6882_v32 = vpop.eup %6881 }
 0x365   :  { %v4064_v26 = vpop.f32.mrf.mxu0  ;;  %v4209_v2 = vmax.f32 %v6882_v32, 0.0 }
 0x366   :  { %6883 = vrcp.f32 %v4196_v29 }
 0x367   :  { %v4216_v42 = vmin.f32 %v4209_v2, 1.0 }
 0x36c   :  { %v4040_v33 = vpop.f32.mrf.mxu1  ;;  %v6884_v39 = vpop.eup %6883 }
 0x36d   :  { %v4066_v34 = vpop.f32.mrf.mxu0  ;;  %v4210_v40 = vmax.f32 %v6884_v39, 0.0 }
 0x36f   :  { %v4217_v57 = vmin.f32 %v4210_v40, 1.0 }
 0x370   :  { %v4025_v15 = vpop.f32.mrf.mxu3 }
 0x371   :  { %v4051_v17 = vpop.f32.mrf.mxu2  ;;  %v4222_v9 = vpack.c.bf16 %v4217_v57, %v4216_v42  ;;  %v4026_v46 = vadd.f32 %v4025_v15, %v2646_v43 }
 0x373   :  { %4226 = vst [vmem:[#allocation3 + $0x8] sm:$0xff] %v4222_v9  ;;  %v4039_v25 = vadd.f32 %v4038_v24, %v4026_v46 }
 0x375   :  { %v4052_v35 = vadd.f32 %v4051_v17, %v4039_v25 }
 0x377   :  { %v4065_v48 = vadd.f32 %v4064_v26, %v4052_v35 }
 0x378   :  { %v4027_v10 = vpop.f32.mrf.mxu3 }
 0x379   :  { %v4053_v44 = vpop.f32.mrf.mxu2  ;;  %v4176_v50 = vsub.f32 0.0, %v4065_v48 }
 0x37b   :  { %v4187_v51 = vmul.f32 1.442695, %v4176_v50 }
 0x37d   :  { %6885 = vpow2.f32 %v4187_v51 }
 0x383   :  { %v6886_v60 = vpop.eup %6885 }
 0x384   :  { %v4090_v30 = vpop.f32.mrf.mxu1  ;;  %v4197_v37 = vadd.f32 1.0, %v6886_v60 }
 0x385   :  { %v4116_v47 = vpop.f32.mrf.mxu0 }
 0x38c   :  { %v4092_v49 = vpop.f32.mrf.mxu1 }
 0x38d   :  { %v4118_v52 = vpop.f32.mrf.mxu0 }
 0x390   :  { %v4077_v36 = vpop.f32.mrf.mxu3 }
 0x391   :  { %v4078_v54 = vadd.f32 %v4077_v36, %v2647_v53  ;;  %v4103_v31 = vpop.f32.mrf.mxu2 }
 0x393   :  { %v4091_v61 = vadd.f32 %v4090_v30, %v4078_v54 }
 0x395   :  { %v4104_v28 = vadd.f32 %v4103_v31, %v4091_v61 }
 0x397   :  { %v4117_v56 = vadd.f32 %v4116_v47, %v4104_v28 }
 0x398   :  { %v4079_v55 = vpop.f32.mrf.mxu3 }
 0x399   :  { %v4177_v58 = vsub.f32 0.0, %v4117_v56  ;;  %v4105_v59 = vpop.f32.mrf.mxu2 }
 0x39b   :  { %v4189_v62 = vmul.f32 1.442695, %v4177_v58 }
 0x39d   :  { %6887 = vpow2.f32 %v4189_v62 }
 0x39e   :  { %6889 = vrcp.f32 %v4197_v37 }
 0x3a3   :  { %v6888_v4 = vpop.eup %6887 }
 0x3a4   :  { %v4142_v1 = vpop.f32.mrf.mxu1  ;;  %v4198_v6 = vadd.f32 1.0, %v6888_v4  ;;  %v6890_v8 = vpop.eup %6889 }
 0x3a5   :  { %v4168_v3 = vpop.f32.mrf.mxu0  ;;  %v4211_v45 = vmax.f32 %v6890_v8, 0.0 }
 0x3a6   :  { %6891 = vrcp.f32 %v4198_v6 }
 0x3a7   :  { %v4218_v7 = vmin.f32 %v4211_v45, 1.0 }
 0x3ac   :  { %v4144_v63 = vpop.f32.mrf.mxu1  ;;  %v6892_v11 = vpop.eup %6891 }
 0x3ad   :  { %v4170_v38 = vpop.f32.mrf.mxu0  ;;  %v4212_v12 = vmax.f32 %v6892_v11, 0.0 }
 0x3af   :  { %v4219_v18 = vmin.f32 %v4212_v12, 1.0 }
 0x3b0   :  { %v4129_v14 = vpop.f32.mrf.mxu3 }
 0x3b1   :  { %v4130_v13 = vadd.f32 %v4129_v14, %v2648_v0  ;;  %v4155_v16 = vpop.f32.mrf.mxu2  ;;  %v4223_v19 = vpack.c.bf16 %v4219_v18, %v4218_v7 }
 0x3b3   :  { %v4143_v5 = vadd.f32 %v4142_v1, %v4130_v13  ;;  %4227 = vst [vmem:[#allocation3 + $0x10] sm:$0xff] %v4223_v19 }
 0x3b5   :  { %v4156_v20 = vadd.f32 %v4155_v16, %v4143_v5 }
 0x3b7   :  { %v4169_v21 = vadd.f32 %v4168_v3, %v4156_v20 }
 0x3b8   :  { %v4131_v22 = vpop.f32.mrf.mxu3 }
 0x3b9   :  { %v4178_v23 = vsub.f32 0.0, %v4169_v21  ;;  %v4157_v24 = vpop.f32.mrf.mxu2 }
 0x3bb   :  { %v4191_v26 = vmul.f32 1.442695, %v4178_v23 }
 0x3bd   :  { %6893 = vpow2.f32 %v4191_v26 }
 0x3c3   :  { %v6894_v27 = vpop.eup %6893 }
 0x3c4   :  { %v4199_v41 = vadd.f32 1.0, %v6894_v27 }
 0x3c6   :  { %6895 = vrcp.f32 %v4199_v41 }
 0x3cc   :  { %v6896_v29 = vpop.eup %6895 }
 0x3cd   :  { %v4213_v32 = vmax.f32 %v6896_v29, 0.0 }
 0x3cf   :  { %v4220_v33 = vmin.f32 %v4213_v32, 1.0 }
 0x3d1   :  { %v4224_v34 = vpack.c.bf16 %v4220_v33, %v4220_v33 }
 0x3d3   :  { %4229 = vst.msk [vmem:[#allocation3 + $0x18] sm:$0xf] %vm4228_vm2, %v4224_v34 }
 0x3d4   :  { %4242 = dma.vmem_to_hbm [thread:$0]  %s4238_s12, 448, %s4240_s5, [#allocation4]  }
 0x3d5   :  { %6969 = dma.done.wait [#allocation4], 448  }
 0x3d6   :  { %6970 = vsyncadd [#allocation4], 4294966848 }
 0x3d7   :  { %6971 = dma.done.wait [#allocation6], 256  }
 0x3d8   :  { %6972 = vsyncadd [#allocation6], 4294967040 }
 0x3d9   :  { %4277 = vsyncpa [#allocation4], 1 }
 0x3da   :  { %4278 = vsyncpa [#allocation6], 1 }

</bundles_post_ra>
